<compile_context>
chip_gen: v7x
topology: tpu7x:2x2x1
jax: 0.10.0
libtpu: 0.0.40
codegen_flags: <defaults>
</compile_context>

<pallas_src>
import functools

import jax
import jax.numpy as jnp
from jax.experimental import pallas as pl
from jax.experimental.pallas import tpu as pltpu


# v7x-safe default (v7x has 64 MiB VMEM per TensorCore; leave headroom).
DEFAULT_VMEM_LIMIT = 48 * 1024 * 1024


# ----------------------------- helpers -------------------------------------

def _sublane_align(dtype):
    """Sublane alignment for the second-to-last block dim (8 f32, 16 bf16, 32 int8)."""
    return {2: 16, 1: 32}.get(jnp.dtype(dtype).itemsize, 8)


def _pick_tile(size, target, align):
    """Largest tile <= target that divides `size` and is a multiple of `align`.
    Falls back to the full dimension (always a legal block)."""
    if size <= target:
        return size
    t = (target // align) * align
    while t >= align:
        if size % t == 0:
            return t
        t -= align
    return size


def _pick_lane_tile(size, target):
    """Lane-dim tile: prefer 256-aligned (v6e/v7x MXU width), fall back to 128."""
    if size % 256 == 0 and target >= 256:
        t = _pick_tile(size, target, 256)
        if t % 256 == 0:
            return t
    return _pick_tile(size, target, 128)


# ----------------------------- tiled linear ---------------------------------

def _linear_acc_kernel(x_ref, w_ref, b_ref, o_ref, acc_ref):
    """K-accumulating matmul with f32 scratch (for narrow output dtypes)."""
    k = pl.program_id(2)

    @pl.when(k == 0)
    def _init():
        acc_ref[...] = jnp.zeros_like(acc_ref)

    acc_ref[...] += jnp.dot(x_ref[...], w_ref[...],
                            preferred_element_type=jnp.float32)

    @pl.when(k == pl.num_programs(2) - 1)
    def _done():
        o_ref[...] = (acc_ref[...] + b_ref[...].astype(jnp.float32)).astype(o_ref.dtype)


def _linear_f32_kernel(x_ref, w_ref, b_ref, o_ref):
    """f32 output: accumulate directly into the resident output block (no scratch)."""
    k = pl.program_id(2)

    @pl.when(k == 0)
    def _init():
        o_ref[...] = jnp.zeros_like(o_ref)

    o_ref[...] += jnp.dot(x_ref[...], w_ref[...],
                          preferred_element_type=jnp.float32)

    @pl.when(k == pl.num_programs(2) - 1)
    def _done():
        o_ref[...] += b_ref[...].astype(jnp.float32)


def linear_pallas(x, w, b, *, tm=256, tn=256, tk=512, compute_dtype=None,
                  out_dtype=None, vmem_limit_bytes=DEFAULT_VMEM_LIMIT):
    """y = x @ w + b, tiled & pipelined. Operands optionally cast to bf16; acc f32.
    # TODO(synk): on v5e enlarge tm/tn toward 512 (128 MiB VMEM) for higher HBM roofline.
    """
    M, K = x.shape
    Kw, N = w.shape
    assert K == Kw and b.shape == (N,)
    if compute_dtype is not None:
        x = x.astype(compute_dtype)
        w = w.astype(compute_dtype)
    out_dtype = jnp.dtype(out_dtype if out_dtype is not None else jnp.float32)

    tm = _pick_tile(M, tm, _sublane_align(x.dtype))
    tn = _pick_lane_tile(N, tn)
    tk = _pick_lane_tile(K, tk)
    grid = (M // tm, N // tn, K // tk)

    if out_dtype == jnp.dtype(jnp.float32):
        kernel = _linear_f32_kernel
        scratch = []
    else:
        kernel = _linear_acc_kernel
        scratch = [pltpu.VMEM((tm, tn), jnp.float32)]

    itemsize = jnp.dtype(x.dtype).itemsize
    cost = pl.CostEstimate(
        flops=2 * M * N * K,
        transcendentals=0,
        bytes_accessed=itemsize * (M * K * (N // tn) + K * N * (M // tm))
        + out_dtype.itemsize * M * N + 4 * N,
    )
    return pl.pallas_call(
        kernel,
        out_shape=jax.ShapeDtypeStruct((M, N), out_dtype),
        grid_spec=pltpu.PrefetchScalarGridSpec(
            num_scalar_prefetch=0,
            grid=grid,
            in_specs=[
                pl.BlockSpec((tm, tk), lambda i, j, k: (i, k)),
                pl.BlockSpec((tk, tn), lambda i, j, k: (k, j)),
                pl.BlockSpec((1, tn), lambda i, j, k: (0, j)),
            ],
            out_specs=pl.BlockSpec((tm, tn), lambda i, j, k: (i, j)),
            scratch_shapes=scratch,
        ),
        compiler_params=pltpu.CompilerParams(
            dimension_semantics=("parallel", "parallel", "arbitrary"),
            vmem_limit_bytes=vmem_limit_bytes,
        ),
        cost_estimate=cost,
    )(x, w, b.reshape(1, N))


# ----------------------------- flash attention core -------------------------

def _attn_kernel(q_ref, k_ref, v_ref, rhw_ref, e_ref, o_ref,
                 m_sc, l_sc, acc_sc, qcat_sc,
                 *, num_heads, head_dim, tkv, scale):
    kv = pl.program_id(2)
    last_kv = pl.num_programs(2) - 1

    @pl.when(kv == 0)
    def _init():
        m_sc[...] = jnp.full_like(m_sc, -jnp.inf)
        l_sc[...] = jnp.zeros_like(l_sc)
        acc_sc[...] = jnp.zeros_like(acc_sc)
        # Cache the fused q-side operand [q_h*scale, rel_hw_h] once per (b, q-tile);
        # q_ref / rhw_ref are resident across the kv axis so this is done once.
        q = q_ref[0]                                    # (tq, C)
        for h in range(num_heads):
            lo, hi = h * head_dim, (h + 1) * head_dim
            q_h = q[:, lo:hi] * jnp.asarray(scale, q.dtype)
            qcat_sc[h] = jnp.concatenate([q_h, rhw_ref[0, h]], axis=-1)

    k = k_ref[0]                                        # (tkv, C)
    v = v_ref[0]                                        # (tkv, C)
    start = pl.multiple_of(kv * tkv, tkv)
    e_tile = e_ref[pl.ds(start, tkv), :]                # (tkv, H+W), resident ehw slice

    # TODO(synk): for num_heads >= 12 switch to lax.fori_loop to bound vreg live ranges.
    for h in range(num_heads):
        lo, hi = h * head_dim, (h + 1) * head_dim
        # Fused scores: (q*scale)@k^T + rel_hw@e^T as ONE MXU contraction of width hd+H+W.
        k_cat = jnp.concatenate([k[:, lo:hi], e_tile], axis=-1)
        s = jax.lax.dot_general(qcat_sc[h], k_cat, (((1,), (1,)), ((), ())),
                                preferred_element_type=jnp.float32)   # (tq, tkv) f32

        # online softmax (per-head running max / denominator, all f32)
        m_prev = m_sc[h]
        m_new = jnp.maximum(m_prev, jnp.max(s, axis=-1, keepdims=True))
        alpha = jnp.exp(m_prev - m_new)
        p = jnp.exp(s - m_new)
        l_sc[h] = alpha * l_sc[h] + jnp.sum(p, axis=-1, keepdims=True)
        acc_sc[h] = alpha * acc_sc[h] + jnp.dot(p.astype(v.dtype), v[:, lo:hi],
                                                preferred_element_type=jnp.float32)
        m_sc[h] = m_new

    @pl.when(kv == last_kv)
    def _finish():
        # Normalize each head's accumulator once (EUP approx reciprocal + Newton step),
        # assemble the full (tq, C) slab and do ONE lane-dense store.
        parts = []
        for h in range(num_heads):
            l = l_sc[h]
            inv = pl.reciprocal(l, approx=True)
            inv = inv * (2.0 - l * inv)
            parts.append(acc_sc[h] * inv)
        o_ref[0] = jnp.concatenate(parts, axis=-1).astype(o_ref.dtype)


def attn_pallas(qkv, rel_hw, ehw, *, num_heads, H, W, scale,
                tq_target=128, tkv_target=256, compute_dtype=None, out_dtype=None,
                vmem_limit_bytes=DEFAULT_VMEM_LIMIT):
    B, N, C3 = qkv.shape
    C = C3 // 3
    head_dim = C // num_heads
    assert N == H * W
    # Column-offset BlockSpecs into the (B, N, 3C) qkv buffer need a lane-aligned C.
    assert C % 128 == 0, "attention kernel requires num_heads*head_dim % 128 == 0"

    if compute_dtype is not None:
        qkv = qkv.astype(compute_dtype)
        rel_hw = rel_hw.astype(compute_dtype)
    ehw = ehw.astype(qkv.dtype)
    out_dtype = jnp.dtype(out_dtype if out_dtype is not None else jnp.float32)

    align = _sublane_align(qkv.dtype)
    tq = _pick_tile(N, tq_target, align)
    tkv = _pick_tile(N, tkv_target, align)
    grid = (B, N // tq, N // tkv)

    itemsize = jnp.dtype(qkv.dtype).itemsize
    cost = pl.CostEstimate(
        flops=2 * B * num_heads * N * N * (2 * head_dim + (H + W)),
        transcendentals=B * num_heads * N * N,
        bytes_accessed=itemsize * (B * N * 3 * C * (N // tq)
                                   + B * num_heads * N * (H + W)
                                   + N * (H + W))
        + out_dtype.itemsize * B * N * C,
    )

    kernel = functools.partial(_attn_kernel, num_heads=num_heads,
                               head_dim=head_dim, tkv=tkv, scale=scale)
    return pl.pallas_call(
        kernel,
        out_shape=jax.ShapeDtypeStruct((B, N, C), out_dtype),
        grid_spec=pltpu.PrefetchScalarGridSpec(
            num_scalar_prefetch=0,
            grid=grid,
            in_specs=[
                # q / k / v sliced out of the same qkv buffer by last-axis block index
                pl.BlockSpec((1, tq, C), lambda b, qi, kv: (b, qi, 0)),
                pl.BlockSpec((1, tkv, C), lambda b, qi, kv: (b, kv, 1)),
                pl.BlockSpec((1, tkv, C), lambda b, qi, kv: (b, kv, 2)),
                pl.BlockSpec((1, num_heads, tq, H + W), lambda b, qi, kv: (b, 0, qi, 0)),
                # one-hot expansion matrix stays fully resident; sliced with pl.ds in-kernel
                pl.BlockSpec((N, H + W), lambda b, qi, kv: (0, 0)),
            ],
            out_specs=pl.BlockSpec((1, tq, C), lambda b, qi, kv: (b, qi, 0)),
            scratch_shapes=[
                pltpu.VMEM((num_heads, tq, 1), jnp.float32),                   # running max
                pltpu.VMEM((num_heads, tq, 1), jnp.float32),                   # running denom
                pltpu.VMEM((num_heads, tq, head_dim), jnp.float32),            # PV accumulator
                pltpu.VMEM((num_heads, tq, head_dim + H + W), qkv.dtype),      # fused q operand
            ],
        ),
        compiler_params=pltpu.CompilerParams(
            dimension_semantics=("parallel", "parallel", "arbitrary"),
            vmem_limit_bytes=vmem_limit_bytes,
        ),
        cost_estimate=cost,
    )(qkv, qkv, qkv, rel_hw, ehw)


# ----------------------------- JAX glue -------------------------------------

def get_rel_pos_jax(q_size, k_size, rel_pos):
    # TODO(synk): F.interpolate branch (rel_pos.shape[0] != 2*max-1) not needed here.
    max_rel_dist = 2 * max(q_size, k_size) - 1
    assert rel_pos.shape[0] == max_rel_dist
    q_coords = jnp.arange(q_size)[:, None] * max(k_size / q_size, 1.0)
    k_coords = jnp.arange(k_size)[None, :] * max(q_size / k_size, 1.0)
    rel_coords = (q_coords - k_coords + (k_size - 1) * max(q_size / k_size, 1.0)).astype(jnp.int32)
    return rel_pos[rel_coords]  # (q_size, k_size, head_dim)


def attention_forward(x, params, num_heads, *, compute_dtype=None):
    B, H, W, C = x.shape
    head_dim = C // num_heads
    N = H * W
    scale = head_dim ** (-0.5)
    # Intermediates (qkv buffer, attention output) use the compute dtype (bf16 path
    # halves their HBM traffic); the final module output stays f32.
    inter_dtype = compute_dtype if compute_dtype is not None else jnp.float32

    # 1) qkv projection (tiled Pallas matmul); keep (B, N, 3C) layout (no transposes).
    qkv = linear_pallas(x.reshape(B * N, C), params["w_qkv"], params["b_qkv"],
                        compute_dtype=compute_dtype, out_dtype=inter_dtype)
    qkv = qkv.reshape(B, N, 3 * C)

    # 2) decomposed rel-pos row terms (small einsums, f32); (N, N) bias never built.
    Rh = get_rel_pos_jax(H, H, params["rel_pos_h"])      # (H, H, hd)
    Rw = get_rel_pos_jax(W, W, params["rel_pos_w"])      # (W, W, hd)
    q_glue = qkv[:, :, :C].astype(jnp.float32).reshape(B, H, W, num_heads, head_dim)
    rel_h = jnp.einsum("bhwnc,hkc->bnhwk", q_glue, Rh).reshape(B, num_heads, N, H)
    rel_w = jnp.einsum("bhwnc,wkc->bnhwk", q_glue, Rw).reshape(B, num_heads, N, W)
    rel_hw = jnp.concatenate([rel_h, rel_w], axis=-1)    # (B, nh, N, H+W)

    j = jnp.arange(N)
    ehw = jnp.concatenate([jax.nn.one_hot(j // W, H, dtype=jnp.float32),
                           jax.nn.one_hot(j % W, W, dtype=jnp.float32)],
                          axis=-1)                       # (N, H+W), one-hot expansion

    # 3) flash-style attention core with fused QK^T + rel-pos bias contraction.
    out = attn_pallas(qkv, rel_hw, ehw, num_heads=num_heads, H=H, W=W, scale=scale,
                      compute_dtype=compute_dtype, out_dtype=inter_dtype)  # (B, N, C)

    # 4) output projection (tiled Pallas matmul, f32 output).
    y = linear_pallas(out.reshape(B * N, C), params["w_proj"], params["b_proj"],
                      compute_dtype=compute_dtype, out_dtype=jnp.float32)
    return y.reshape(B, H, W, C)


def attention_reference(x, params, num_heads):
    B, H, W, C = x.shape
    c = C // num_heads
    N = H * W
    scale = c ** (-0.5)
    qkv = x.reshape(B * N, C) @ params["w_qkv"] + params["b_qkv"]
    qkv = qkv.reshape(B, N, 3, num_heads, c).transpose(2, 0, 3, 1, 4)
    qkv = qkv.reshape(3, B * num_heads, N, c)
    q, k, v = qkv[0], qkv[1], qkv[2]
    attn = (q * scale) @ jnp.swapaxes(k, -2, -1)
    Rh = get_rel_pos_jax(H, H, params["rel_pos_h"])
    Rw = get_rel_pos_jax(W, W, params["rel_pos_w"])
    r_q = q.reshape(B * num_heads, H, W, c)
    rel_h = jnp.einsum("bhwc,hkc->bhwk", r_q, Rh)
    rel_w = jnp.einsum("bhwc,wkc->bhwk", r_q, Rw)
    attn = (attn.reshape(B * num_heads, H, W, H, W)
            + rel_h[:, :, :, :, None] + rel_w[:, :, :, None, :]).reshape(B * num_heads, N, N)
    attn = jax.nn.softmax(attn, axis=-1)
    out = (attn @ v).reshape(B, num_heads, H, W, c).transpose(0, 2, 3, 1, 4).reshape(B, H, W, C)
    y = out.reshape(B * N, C) @ params["w_proj"] + params["b_proj"]
    return y.reshape(B, H, W, C)


# ----------------------------- driver --------------------------------------

if __name__ == "__main__":
    B, H, W = 2, 8, 8
    dim, num_heads = 128, 4          # C = 128 keeps the qkv column blocks lane-aligned
    head_dim = dim // num_heads

    key = jax.random.PRNGKey(0)
    kx, k1, k2, k3, k4, k5, k6 = jax.random.split(key, 7)
    x = jax.random.normal(kx, (B, H, W, dim), dtype=jnp.float32)

    # nn.Linear(dim, 3*dim) weight is (3*dim, dim) in torch; stored transposed here.
    # rel_pos params are zero-init in the module; small random values exercise the path.
    params = {
        "w_qkv": 0.05 * jax.random.normal(k1, (dim, 3 * dim), dtype=jnp.float32),
        "b_qkv": 0.05 * jax.random.normal(k2, (3 * dim,), dtype=jnp.float32),
        "w_proj": 0.05 * jax.random.normal(k3, (dim, dim), dtype=jnp.float32),
        "b_proj": 0.05 * jax.random.normal(k4, (dim,), dtype=jnp.float32),
        "rel_pos_h": 0.05 * jax.random.normal(k5, (2 * H - 1, head_dim), dtype=jnp.float32),
        "rel_pos_w": 0.05 * jax.random.normal(k6, (2 * W - 1, head_dim), dtype=jnp.float32),
    }

    # f32 path: numerical check against the pure-JAX reference.
    fwd_f32 = jax.jit(functools.partial(attention_forward, num_heads=num_heads))
    out = jax.block_until_ready(fwd_f32(x, params))

    ref = attention_reference(x, params, num_heads)
    assert out.shape == (B, H, W, dim)
    err = float(jnp.max(jnp.abs(out - ref)))
    assert jnp.allclose(out, ref, atol=2e-3, rtol=2e-3), err

    # bf16-I/O / f32-accumulation path (bandwidth-bound gens) — smoke test.
    fwd_bf16 = jax.jit(functools.partial(attention_forward, num_heads=num_heads,
                                         compute_dtype=jnp.bfloat16))
    out_bf16 = jax.block_until_ready(fwd_bf16(x, params))
    assert float(jnp.max(jnp.abs(out_bf16.astype(jnp.float32) - ref))) < 0.1

    print("KERNEL_OK")
</pallas_src>

<mosaic_0001>
module attributes {stable_mosaic.version = 11 : i64} {
  func.func @_linear_f32_kernel(%arg0: i32, %arg1: i32, %arg2: i32, %arg3: memref<128x128xf32, #tpu.memory_space<vmem>>, %arg4: memref<128x128xf32, #tpu.memory_space<vmem>>, %arg5: memref<1x128xf32, #tpu.memory_space<vmem>>, %arg6: memref<128x128xf32, #tpu.memory_space<vmem>>) attributes {dimension_semantics = [#tpu.dimension_semantics<parallel>, #tpu.dimension_semantics<parallel>, #tpu.dimension_semantics<arbitrary>], iteration_bounds = array<i64: 1, 3, 1>, scalar_prefetch = 0 : i64, scratch_operands = 0 : i64, tpu.core_type = #tpu.core_type<tc>, window_params = [{transform_indices = @transform_0, window_bounds = array<i64: 128, 128>}, {transform_indices = @transform_1, window_bounds = array<i64: 128, 128>}, {transform_indices = @transform_2, window_bounds = array<i64: 1, 128>}, {transform_indices = @transform_3, window_bounds = array<i64: 128, 128>}]} {
    %c0_i32 = arith.constant 0 : i32
    %0 = arith.cmpi eq, %arg2, %c0_i32 : i32
    %1 = arith.extui %0 : i1 to i32
    %c0_i32_0 = arith.constant 0 : i32
    %2 = arith.cmpi ne, %1, %c0_i32_0 : i32
    scf.if %2 {
      %cst_10 = arith.constant 0.000000e+00 : f32
      %12 = vector.broadcast %cst_10 : f32 to vector<128x128xf32>
      %c0_11 = arith.constant 0 : index
      %c0_12 = arith.constant 0 : index
      %13 = vector.load %arg6[%c0_11, %c0_12] : memref<128x128xf32, #tpu.memory_space<vmem>>, vector<128x128xf32>
      tpu.vector_store %arg6[%c0_11, %c0_12], %12 {strides = array<i32>} : memref<128x128xf32, #tpu.memory_space<vmem>>, vector<128x128xf32>,
    } else {
    }
    %c0 = arith.constant 0 : index
    %c0_1 = arith.constant 0 : index
    %3 = vector.load %arg6[%c0, %c0_1] : memref<128x128xf32, #tpu.memory_space<vmem>>, vector<128x128xf32>
    %c0_2 = arith.constant 0 : index
    %c0_3 = arith.constant 0 : index
    %4 = vector.load %arg3[%c0_2, %c0_3] : memref<128x128xf32, #tpu.memory_space<vmem>>, vector<128x128xf32>
    %c0_4 = arith.constant 0 : index
    %c0_5 = arith.constant 0 : index
    %5 = vector.load %arg4[%c0_4, %c0_5] : memref<128x128xf32, #tpu.memory_space<vmem>>, vector<128x128xf32>
    %cst = arith.constant dense<0.000000e+00> : vector<128x128xf32>
    %6 = tpu.matmul %4, %5, %cst {dimension_numbers = #tpu.dot_dimension_numbers<[1], [0], [0], [1], [0, 0, 1, 1], [], []>} : vector<128x128xf32>, vector<128x128xf32>, vector<128x128xf32> -> vector<128x128xf32>
    %7 = arith.addf %3, %6 : vector<128x128xf32>
    %c0_6 = arith.constant 0 : index
    %c0_7 = arith.constant 0 : index
    %8 = vector.load %arg6[%c0_6, %c0_7] : memref<128x128xf32, #tpu.memory_space<vmem>>, vector<128x128xf32>
    tpu.vector_store %arg6[%c0_6, %c0_7], %7 {strides = array<i32>} : memref<128x128xf32, #tpu.memory_space<vmem>>, vector<128x128xf32>,
    %c0_i32_8 = arith.constant 0 : i32
    %9 = arith.cmpi eq, %arg2, %c0_i32_8 : i32
    %10 = arith.extui %9 : i1 to i32
    %c0_i32_9 = arith.constant 0 : i32
    %11 = arith.cmpi ne, %10, %c0_i32_9 : i32
    scf.if %11 {
      %c0_10 = arith.constant 0 : index
      %c0_11 = arith.constant 0 : index
      %12 = vector.load %arg6[%c0_10, %c0_11] : memref<128x128xf32, #tpu.memory_space<vmem>>, vector<128x128xf32>
      %c0_12 = arith.constant 0 : index
      %c0_13 = arith.constant 0 : index
      %13 = vector.load %arg5[%c0_12, %c0_13] : memref<1x128xf32, #tpu.memory_space<vmem>>, vector<1x128xf32>
      %14 = vector.broadcast %13 : vector<1x128xf32> to vector<128x128xf32>
      %15 = arith.addf %12, %14 : vector<128x128xf32>
      %c0_14 = arith.constant 0 : index
      %c0_15 = arith.constant 0 : index
      %16 = vector.load %arg6[%c0_14, %c0_15] : memref<128x128xf32, #tpu.memory_space<vmem>>, vector<128x128xf32>
      tpu.vector_store %arg6[%c0_14, %c0_15], %15 {strides = array<i32>} : memref<128x128xf32, #tpu.memory_space<vmem>>, vector<128x128xf32>,
    } else {
    }
    return
  }
  func.func @transform_0(%arg0: i32, %arg1: i32, %arg2: i32) -> (i32, i32) {
    %c0_i32 = arith.constant 0 : i32
    return %arg0, %arg2 : i32, i32
  }
  func.func @transform_1(%arg0: i32, %arg1: i32, %arg2: i32) -> (i32, i32) {
    %c0_i32 = arith.constant 0 : i32
    return %arg2, %arg1 : i32, i32
  }
  func.func @transform_2(%arg0: i32, %arg1: i32, %arg2: i32) -> (i32, i32) {
    %c0_i32 = arith.constant 0 : i32
    %c0_i32_0 = arith.constant 0 : i32
    return %c0_i32, %arg1 : i32, i32
  }
  func.func @transform_3(%arg0: i32, %arg1: i32, %arg2: i32) -> (i32, i32) {
    %c0_i32 = arith.constant 0 : i32
    return %arg0, %arg1 : i32, i32
  }
}

module attributes {stable_mosaic.version = 11 : i64} {
  func.func @_attn_kernel(%arg0: i32, %arg1: i32, %arg2: i32, %arg3: memref<1x64x128xf32, #tpu.memory_space<vmem>>, %arg4: memref<1x64x128xf32, #tpu.memory_space<vmem>>, %arg5: memref<1x64x128xf32, #tpu.memory_space<vmem>>, %arg6: memref<1x4x64x16xf32, #tpu.memory_space<vmem>>, %arg7: memref<64x16xf32, #tpu.memory_space<vmem>>, %arg8: memref<1x64x128xf32, #tpu.memory_space<vmem>>, %arg9: memref<4x64x1xf32, #tpu.memory_space<vmem>>, %arg10: memref<4x64x1xf32, #tpu.memory_space<vmem>>, %arg11: memref<4x64x32xf32, #tpu.memory_space<vmem>>, %arg12: memref<4x64x48xf32, #tpu.memory_space<vmem>>) attributes {dimension_semantics = [#tpu.dimension_semantics<parallel>, #tpu.dimension_semantics<parallel>, #tpu.dimension_semantics<arbitrary>], iteration_bounds = array<i64: 2, 1, 1>, scalar_prefetch = 0 : i64, scratch_operands = 4 : i64, tpu.core_type = #tpu.core_type<tc>, window_params = [{transform_indices = @transform_0, window_bounds = array<i64: 1, 64, 128>}, {transform_indices = @transform_1, window_bounds = array<i64: 1, 64, 128>}, {transform_indices = @transform_2, window_bounds = array<i64: 1, 64, 128>}, {transform_indices = @transform_3, window_bounds = array<i64: 1, 4, 64, 16>}, {pipeline_mode = #tpu.pipeline_mode<synchronous>, transform_indices = @transform_4, window_bounds = array<i64: 64, 16>}, {transform_indices = @transform_5, window_bounds = array<i64: 1, 64, 128>}]} {
    %c0_i32 = arith.constant 0 : i32
    %0 = arith.cmpi eq, %arg2, %c0_i32 : i32
    %1 = arith.extui %0 : i1 to i32
    %c0_i32_0 = arith.constant 0 : i32
    %2 = arith.cmpi ne, %1, %c0_i32_0 : i32
    scf.if %2 {
      %cst_105 = arith.constant 0xFF800000 : f32
      %162 = vector.broadcast %cst_105 : f32 to vector<4x64x1xf32>
      %c0_106 = arith.constant 0 : index
      %c0_107 = arith.constant 0 : index
      %c0_108 = arith.constant 0 : index
      %163 = vector.load %arg9[%c0_106, %c0_107, %c0_108] : memref<4x64x1xf32, #tpu.memory_space<vmem>>, vector<4x64x1xf32>
      tpu.vector_store %arg9[%c0_106, %c0_107, %c0_108], %162 {strides = array<i32>} : memref<4x64x1xf32, #tpu.memory_space<vmem>>, vector<4x64x1xf32>,
      %cst_109 = arith.constant 0.000000e+00 : f32
      %164 = vector.broadcast %cst_109 : f32 to vector<4x64x1xf32>
      %c0_110 = arith.constant 0 : index
      %c0_111 = arith.constant 0 : index
      %c0_112 = arith.constant 0 : index
      %165 = vector.load %arg10[%c0_110, %c0_111, %c0_112] : memref<4x64x1xf32, #tpu.memory_space<vmem>>, vector<4x64x1xf32>
      tpu.vector_store %arg10[%c0_110, %c0_111, %c0_112], %164 {strides = array<i32>} : memref<4x64x1xf32, #tpu.memory_space<vmem>>, vector<4x64x1xf32>,
      %cst_113 = arith.constant 0.000000e+00 : f32
      %166 = vector.broadcast %cst_113 : f32 to vector<4x64x32xf32>
      %c0_114 = arith.constant 0 : index
      %c0_115 = arith.constant 0 : index
      %c0_116 = arith.constant 0 : index
      %167 = vector.load %arg11[%c0_114, %c0_115, %c0_116] : memref<4x64x32xf32, #tpu.memory_space<vmem>>, vector<4x64x32xf32>
      tpu.vector_store %arg11[%c0_114, %c0_115, %c0_116], %166 {strides = array<i32>} : memref<4x64x32xf32, #tpu.memory_space<vmem>>, vector<4x64x32xf32>,
      %c0_117 = arith.constant 0 : index
      %c0_118 = arith.constant 0 : index
      %c0_119 = arith.constant 0 : index
      %168 = vector.load %arg3[%c0_117, %c0_118, %c0_119] : memref<1x64x128xf32, #tpu.memory_space<vmem>>, vector<1x64x128xf32>
      %169 = vector.shape_cast %168 : vector<1x64x128xf32> to vector<64x128xf32>
      %170 = vector.extract_strided_slice %169 {offsets = [0, 0], sizes = [64, 32], strides = [1, 1]} : vector<64x128xf32> to vector<64x32xf32>
      %cst_120 = arith.constant 0.176776692 : f32
      %171 = vector.broadcast %cst_120 : f32 to vector<64x32xf32>
      %172 = arith.mulf %170, %171 : vector<64x32xf32>
      %c0_121 = arith.constant 0 : index
      %c0_122 = arith.constant 0 : index
      %c0_123 = arith.constant 0 : index
      %c0_124 = arith.constant 0 : index
      %173 = vector.load %arg6[%c0_121, %c0_122, %c0_123, %c0_124] : memref<1x4x64x16xf32, #tpu.memory_space<vmem>>, vector<1x1x64x16xf32>
      %174 = vector.shape_cast %173 : vector<1x1x64x16xf32> to vector<64x16xf32>
      %175 = tpu.concatenate %172, %174 in 1 : vector<64x32xf32>, vector<64x16xf32> -> vector<64x48xf32>
      %c0_125 = arith.constant 0 : index
      %c0_126 = arith.constant 0 : index
      %c0_127 = arith.constant 0 : index
      %176 = vector.load %arg12[%c0_125, %c0_126, %c0_127] : memref<4x64x48xf32, #tpu.memory_space<vmem>>, vector<1x64x48xf32>
      %177 = vector.shape_cast %176 : vector<1x64x48xf32> to vector<64x48xf32>
      %178 = vector.shape_cast %175 : vector<64x48xf32> to vector<1x64x48xf32>
      tpu.vector_store %arg12[%c0_125, %c0_126, %c0_127], %178 {strides = array<i32>} : memref<4x64x48xf32, #tpu.memory_space<vmem>>, vector<1x64x48xf32>,
      %179 = vector.extract_strided_slice %169 {offsets = [0, 32], sizes = [64, 32], strides = [1, 1]} : vector<64x128xf32> to vector<64x32xf32>
      %cst_128 = arith.constant 0.176776692 : f32
      %180 = vector.broadcast %cst_128 : f32 to vector<64x32xf32>
      %181 = arith.mulf %179, %180 : vector<64x32xf32>
      %c0_129 = arith.constant 0 : index
      %c1_130 = arith.constant 1 : index
      %c0_131 = arith.constant 0 : index
      %c0_132 = arith.constant 0 : index
      %182 = vector.load %arg6[%c0_129, %c1_130, %c0_131, %c0_132] : memref<1x4x64x16xf32, #tpu.memory_space<vmem>>, vector<1x1x64x16xf32>
      %183 = vector.shape_cast %182 : vector<1x1x64x16xf32> to vector<64x16xf32>
      %184 = tpu.concatenate %181, %183 in 1 : vector<64x32xf32>, vector<64x16xf32> -> vector<64x48xf32>
      %c1_133 = arith.constant 1 : index
      %c0_134 = arith.constant 0 : index
      %c0_135 = arith.constant 0 : index
      %185 = vector.load %arg12[%c1_133, %c0_134, %c0_135] : memref<4x64x48xf32, #tpu.memory_space<vmem>>, vector<1x64x48xf32>
      %186 = vector.shape_cast %185 : vector<1x64x48xf32> to vector<64x48xf32>
      %187 = vector.shape_cast %184 : vector<64x48xf32> to vector<1x64x48xf32>
      tpu.vector_store %arg12[%c1_133, %c0_134, %c0_135], %187 {strides = array<i32>} : memref<4x64x48xf32, #tpu.memory_space<vmem>>, vector<1x64x48xf32>,
      %188 = vector.extract_strided_slice %169 {offsets = [0, 64], sizes = [64, 32], strides = [1, 1]} : vector<64x128xf32> to vector<64x32xf32>
      %cst_136 = arith.constant 0.176776692 : f32
      %189 = vector.broadcast %cst_136 : f32 to vector<64x32xf32>
      %190 = arith.mulf %188, %189 : vector<64x32xf32>
      %c0_137 = arith.constant 0 : index
      %c2_138 = arith.constant 2 : index
      %c0_139 = arith.constant 0 : index
      %c0_140 = arith.constant 0 : index
      %191 = vector.load %arg6[%c0_137, %c2_138, %c0_139, %c0_140] : memref<1x4x64x16xf32, #tpu.memory_space<vmem>>, vector<1x1x64x16xf32>
      %192 = vector.shape_cast %191 : vector<1x1x64x16xf32> to vector<64x16xf32>
      %193 = tpu.concatenate %190, %192 in 1 : vector<64x32xf32>, vector<64x16xf32> -> vector<64x48xf32>
      %c2_141 = arith.constant 2 : index
      %c0_142 = arith.constant 0 : index
      %c0_143 = arith.constant 0 : index
      %194 = vector.load %arg12[%c2_141, %c0_142, %c0_143] : memref<4x64x48xf32, #tpu.memory_space<vmem>>, vector<1x64x48xf32>
      %195 = vector.shape_cast %194 : vector<1x64x48xf32> to vector<64x48xf32>
      %196 = vector.shape_cast %193 : vector<64x48xf32> to vector<1x64x48xf32>
      tpu.vector_store %arg12[%c2_141, %c0_142, %c0_143], %196 {strides = array<i32>} : memref<4x64x48xf32, #tpu.memory_space<vmem>>, vector<1x64x48xf32>,
      %197 = vector.extract_strided_slice %169 {offsets = [0, 96], sizes = [64, 32], strides = [1, 1]} : vector<64x128xf32> to vector<64x32xf32>
      %cst_144 = arith.constant 0.176776692 : f32
      %198 = vector.broadcast %cst_144 : f32 to vector<64x32xf32>
      %199 = arith.mulf %197, %198 : vector<64x32xf32>
      %c0_145 = arith.constant 0 : index
      %c3_146 = arith.constant 3 : index
      %c0_147 = arith.constant 0 : index
      %c0_148 = arith.constant 0 : index
      %200 = vector.load %arg6[%c0_145, %c3_146, %c0_147, %c0_148] : memref<1x4x64x16xf32, #tpu.memory_space<vmem>>, vector<1x1x64x16xf32>
      %201 = vector.shape_cast %200 : vector<1x1x64x16xf32> to vector<64x16xf32>
      %202 = tpu.concatenate %199, %201 in 1 : vector<64x32xf32>, vector<64x16xf32> -> vector<64x48xf32>
      %c3_149 = arith.constant 3 : index
      %c0_150 = arith.constant 0 : index
      %c0_151 = arith.constant 0 : index
      %203 = vector.load %arg12[%c3_149, %c0_150, %c0_151] : memref<4x64x48xf32, #tpu.memory_space<vmem>>, vector<1x64x48xf32>
      %204 = vector.shape_cast %203 : vector<1x64x48xf32> to vector<64x48xf32>
      %205 = vector.shape_cast %202 : vector<64x48xf32> to vector<1x64x48xf32>
      tpu.vector_store %arg12[%c3_149, %c0_150, %c0_151], %205 {strides = array<i32>} : memref<4x64x48xf32, #tpu.memory_space<vmem>>, vector<1x64x48xf32>,
    } else {
    }
    %c0 = arith.constant 0 : index
    %c0_1 = arith.constant 0 : index
    %c0_2 = arith.constant 0 : index
    %3 = vector.load %arg4[%c0, %c0_1, %c0_2] : memref<1x64x128xf32, #tpu.memory_space<vmem>>, vector<1x64x128xf32>
    %4 = vector.shape_cast %3 : vector<1x64x128xf32> to vector<64x128xf32>
    %c0_3 = arith.constant 0 : index
    %c0_4 = arith.constant 0 : index
    %c0_5 = arith.constant 0 : index
    %5 = vector.load %arg5[%c0_3, %c0_4, %c0_5] : memref<1x64x128xf32, #tpu.memory_space<vmem>>, vector<1x64x128xf32>
    %6 = vector.shape_cast %5 : vector<1x64x128xf32> to vector<64x128xf32>
    %c64_i32 = arith.constant 64 : i32
    %7 = arith.muli %arg2, %c64_i32 : i32
    %8 = tpu.assume_multiple %7, 64 : i32
    %9 = arith.index_cast %8 : i32 to index
    %c0_6 = arith.constant 0 : index
    %10 = vector.load %arg7[%9, %c0_6] : memref<64x16xf32, #tpu.memory_space<vmem>>, vector<64x16xf32>
    %11 = vector.extract_strided_slice %4 {offsets = [0, 0], sizes = [64, 32], strides = [1, 1]} : vector<64x128xf32> to vector<64x32xf32>
    %12 = tpu.concatenate %11, %10 in 1 : vector<64x32xf32>, vector<64x16xf32> -> vector<64x48xf32>
    %c0_7 = arith.constant 0 : index
    %c0_8 = arith.constant 0 : index
    %c0_9 = arith.constant 0 : index
    %13 = vector.load %arg12[%c0_7, %c0_8, %c0_9] : memref<4x64x48xf32, #tpu.memory_space<vmem>>, vector<1x64x48xf32>
    %14 = vector.shape_cast %13 : vector<1x64x48xf32> to vector<64x48xf32>
    %cst = arith.constant dense<0.000000e+00> : vector<64x64xf32>
    %15 = tpu.matmul %14, %12, %cst {dimension_numbers = #tpu.dot_dimension_numbers<[1], [1], [0], [0], [0, 0, 1, 0], [], []>} : vector<64x48xf32>, vector<64x48xf32>, vector<64x64xf32> -> vector<64x64xf32>
    %c0_10 = arith.constant 0 : index
    %c0_11 = arith.constant 0 : index
    %c0_12 = arith.constant 0 : index
    %16 = vector.load %arg9[%c0_10, %c0_11, %c0_12] : memref<4x64x1xf32, #tpu.memory_space<vmem>>, vector<1x64x1xf32>
    %17 = vector.shape_cast %16 : vector<1x64x1xf32> to vector<64x1xf32>
    %cst_13 = arith.constant dense<0xFF800000> : vector<64xf32>
    %18 = vector.multi_reduction <maximumf>, %15, %cst_13 [1] : vector<64x64xf32> to vector<64xf32>
    %19 = vector.shape_cast %18 : vector<64xf32> to vector<64x1xf32>
    %20 = arith.maximumf %17, %19 : vector<64x1xf32>
    %21 = arith.subf %17, %20 : vector<64x1xf32>
    %22 = math.exp %21 : vector<64x1xf32>
    %23 = vector.broadcast %20 : vector<64x1xf32> to vector<64x64xf32>
    %24 = arith.subf %15, %23 : vector<64x64xf32>
    %25 = math.exp %24 : vector<64x64xf32>
    %c0_14 = arith.constant 0 : index
    %c0_15 = arith.constant 0 : index
    %c0_16 = arith.constant 0 : index
    %26 = vector.load %arg10[%c0_14, %c0_15, %c0_16] : memref<4x64x1xf32, #tpu.memory_space<vmem>>, vector<1x64x1xf32>
    %27 = vector.shape_cast %26 : vector<1x64x1xf32> to vector<64x1xf32>
    %28 = arith.mulf %22, %27 : vector<64x1xf32>
    %cst_17 = arith.constant dense<0.000000e+00> : vector<64xf32>
    %29 = vector.multi_reduction <add>, %25, %cst_17 [1] : vector<64x64xf32> to vector<64xf32>
    %30 = vector.shape_cast %29 : vector<64xf32> to vector<64x1xf32>
    %31 = arith.addf %28, %30 : vector<64x1xf32>
    %c0_18 = arith.constant 0 : index
    %c0_19 = arith.constant 0 : index
    %c0_20 = arith.constant 0 : index
    %32 = vector.load %arg10[%c0_18, %c0_19, %c0_20] : memref<4x64x1xf32, #tpu.memory_space<vmem>>, vector<1x64x1xf32>
    %33 = vector.shape_cast %32 : vector<1x64x1xf32> to vector<64x1xf32>
    %34 = vector.shape_cast %31 : vector<64x1xf32> to vector<1x64x1xf32>
    tpu.vector_store %arg10[%c0_18, %c0_19, %c0_20], %34 {strides = array<i32>} : memref<4x64x1xf32, #tpu.memory_space<vmem>>, vector<1x64x1xf32>,
    %c0_21 = arith.constant 0 : index
    %c0_22 = arith.constant 0 : index
    %c0_23 = arith.constant 0 : index
    %35 = vector.load %arg11[%c0_21, %c0_22, %c0_23] : memref<4x64x32xf32, #tpu.memory_space<vmem>>, vector<1x64x32xf32>
    %36 = vector.shape_cast %35 : vector<1x64x32xf32> to vector<64x32xf32>
    %37 = vector.broadcast %22 : vector<64x1xf32> to vector<64x32xf32>
    %38 = arith.mulf %37, %36 : vector<64x32xf32>
    %39 = vector.extract_strided_slice %6 {offsets = [0, 0], sizes = [64, 32], strides = [1, 1]} : vector<64x128xf32> to vector<64x32xf32>
    %cst_24 = arith.constant dense<0.000000e+00> : vector<64x32xf32>
    %40 = tpu.matmul %25, %39, %cst_24 {dimension_numbers = #tpu.dot_dimension_numbers<[1], [0], [0], [1], [0, 0, 1, 1], [], []>} : vector<64x64xf32>, vector<64x32xf32>, vector<64x32xf32> -> vector<64x32xf32>
    %41 = arith.addf %38, %40 : vector<64x32xf32>
    %c0_25 = arith.constant 0 : index
    %c0_26 = arith.constant 0 : index
    %c0_27 = arith.constant 0 : index
    %42 = vector.load %arg11[%c0_25, %c0_26, %c0_27] : memref<4x64x32xf32, #tpu.memory_space<vmem>>, vector<1x64x32xf32>
    %43 = vector.shape_cast %42 : vector<1x64x32xf32> to vector<64x32xf32>
    %44 = vector.shape_cast %41 : vector<64x32xf32> to vector<1x64x32xf32>
    tpu.vector_store %arg11[%c0_25, %c0_26, %c0_27], %44 {strides = array<i32>} : memref<4x64x32xf32, #tpu.memory_space<vmem>>, vector<1x64x32xf32>,
    %c0_28 = arith.constant 0 : index
    %c0_29 = arith.constant 0 : index
    %c0_30 = arith.constant 0 : index
    %45 = vector.load %arg9[%c0_28, %c0_29, %c0_30] : memref<4x64x1xf32, #tpu.memory_space<vmem>>, vector<1x64x1xf32>
    %46 = vector.shape_cast %45 : vector<1x64x1xf32> to vector<64x1xf32>
    %47 = vector.shape_cast %20 : vector<64x1xf32> to vector<1x64x1xf32>
    tpu.vector_store %arg9[%c0_28, %c0_29, %c0_30], %47 {strides = array<i32>} : memref<4x64x1xf32, #tpu.memory_space<vmem>>, vector<1x64x1xf32>,
    %48 = vector.extract_strided_slice %4 {offsets = [0, 32], sizes = [64, 32], strides = [1, 1]} : vector<64x128xf32> to vector<64x32xf32>
    %49 = tpu.concatenate %48, %10 in 1 : vector<64x32xf32>, vector<64x16xf32> -> vector<64x48xf32>
    %c1 = arith.constant 1 : index
    %c0_31 = arith.constant 0 : index
    %c0_32 = arith.constant 0 : index
    %50 = vector.load %arg12[%c1, %c0_31, %c0_32] : memref<4x64x48xf32, #tpu.memory_space<vmem>>, vector<1x64x48xf32>
    %51 = vector.shape_cast %50 : vector<1x64x48xf32> to vector<64x48xf32>
    %cst_33 = arith.constant dense<0.000000e+00> : vector<64x64xf32>
    %52 = tpu.matmul %51, %49, %cst_33 {dimension_numbers = #tpu.dot_dimension_numbers<[1], [1], [0], [0], [0, 0, 1, 0], [], []>} : vector<64x48xf32>, vector<64x48xf32>, vector<64x64xf32> -> vector<64x64xf32>
    %c1_34 = arith.constant 1 : index
    %c0_35 = arith.constant 0 : index
    %c0_36 = arith.constant 0 : index
    %53 = vector.load %arg9[%c1_34, %c0_35, %c0_36] : memref<4x64x1xf32, #tpu.memory_space<vmem>>, vector<1x64x1xf32>
    %54 = vector.shape_cast %53 : vector<1x64x1xf32> to vector<64x1xf32>
    %cst_37 = arith.constant dense<0xFF800000> : vector<64xf32>
    %55 = vector.multi_reduction <maximumf>, %52, %cst_37 [1] : vector<64x64xf32> to vector<64xf32>
    %56 = vector.shape_cast %55 : vector<64xf32> to vector<64x1xf32>
    %57 = arith.maximumf %54, %56 : vector<64x1xf32>
    %58 = arith.subf %54, %57 : vector<64x1xf32>
    %59 = math.exp %58 : vector<64x1xf32>
    %60 = vector.broadcast %57 : vector<64x1xf32> to vector<64x64xf32>
    %61 = arith.subf %52, %60 : vector<64x64xf32>
    %62 = math.exp %61 : vector<64x64xf32>
    %c1_38 = arith.constant 1 : index
    %c0_39 = arith.constant 0 : index
    %c0_40 = arith.constant 0 : index
    %63 = vector.load %arg10[%c1_38, %c0_39, %c0_40] : memref<4x64x1xf32, #tpu.memory_space<vmem>>, vector<1x64x1xf32>
    %64 = vector.shape_cast %63 : vector<1x64x1xf32> to vector<64x1xf32>
    %65 = arith.mulf %59, %64 : vector<64x1xf32>
    %cst_41 = arith.constant dense<0.000000e+00> : vector<64xf32>
    %66 = vector.multi_reduction <add>, %62, %cst_41 [1] : vector<64x64xf32> to vector<64xf32>
    %67 = vector.shape_cast %66 : vector<64xf32> to vector<64x1xf32>
    %68 = arith.addf %65, %67 : vector<64x1xf32>
    %c1_42 = arith.constant 1 : index
    %c0_43 = arith.constant 0 : index
    %c0_44 = arith.constant 0 : index
    %69 = vector.load %arg10[%c1_42, %c0_43, %c0_44] : memref<4x64x1xf32, #tpu.memory_space<vmem>>, vector<1x64x1xf32>
    %70 = vector.shape_cast %69 : vector<1x64x1xf32> to vector<64x1xf32>
    %71 = vector.shape_cast %68 : vector<64x1xf32> to vector<1x64x1xf32>
    tpu.vector_store %arg10[%c1_42, %c0_43, %c0_44], %71 {strides = array<i32>} : memref<4x64x1xf32, #tpu.memory_space<vmem>>, vector<1x64x1xf32>,
    %c1_45 = arith.constant 1 : index
    %c0_46 = arith.constant 0 : index
    %c0_47 = arith.constant 0 : index
    %72 = vector.load %arg11[%c1_45, %c0_46, %c0_47] : memref<4x64x32xf32, #tpu.memory_space<vmem>>, vector<1x64x32xf32>
    %73 = vector.shape_cast %72 : vector<1x64x32xf32> to vector<64x32xf32>
    %74 = vector.broadcast %59 : vector<64x1xf32> to vector<64x32xf32>
    %75 = arith.mulf %74, %73 : vector<64x32xf32>
    %76 = vector.extract_strided_slice %6 {offsets = [0, 32], sizes = [64, 32], strides = [1, 1]} : vector<64x128xf32> to vector<64x32xf32>
    %cst_48 = arith.constant dense<0.000000e+00> : vector<64x32xf32>
    %77 = tpu.matmul %62, %76, %cst_48 {dimension_numbers = #tpu.dot_dimension_numbers<[1], [0], [0], [1], [0, 0, 1, 1], [], []>} : vector<64x64xf32>, vector<64x32xf32>, vector<64x32xf32> -> vector<64x32xf32>
    %78 = arith.addf %75, %77 : vector<64x32xf32>
    %c1_49 = arith.constant 1 : index
    %c0_50 = arith.constant 0 : index
    %c0_51 = arith.constant 0 : index
    %79 = vector.load %arg11[%c1_49, %c0_50, %c0_51] : memref<4x64x32xf32, #tpu.memory_space<vmem>>, vector<1x64x32xf32>
    %80 = vector.shape_cast %79 : vector<1x64x32xf32> to vector<64x32xf32>
    %81 = vector.shape_cast %78 : vector<64x32xf32> to vector<1x64x32xf32>
    tpu.vector_store %arg11[%c1_49, %c0_50, %c0_51], %81 {strides = array<i32>} : memref<4x64x32xf32, #tpu.memory_space<vmem>>, vector<1x64x32xf32>,
    %c1_52 = arith.constant 1 : index
    %c0_53 = arith.constant 0 : index
    %c0_54 = arith.constant 0 : index
    %82 = vector.load %arg9[%c1_52, %c0_53, %c0_54] : memref<4x64x1xf32, #tpu.memory_space<vmem>>, vector<1x64x1xf32>
    %83 = vector.shape_cast %82 : vector<1x64x1xf32> to vector<64x1xf32>
    %84 = vector.shape_cast %57 : vector<64x1xf32> to vector<1x64x1xf32>
    tpu.vector_store %arg9[%c1_52, %c0_53, %c0_54], %84 {strides = array<i32>} : memref<4x64x1xf32, #tpu.memory_space<vmem>>, vector<1x64x1xf32>,
    %85 = vector.extract_strided_slice %4 {offsets = [0, 64], sizes = [64, 32], strides = [1, 1]} : vector<64x128xf32> to vector<64x32xf32>
    %86 = tpu.concatenate %85, %10 in 1 : vector<64x32xf32>, vector<64x16xf32> -> vector<64x48xf32>
    %c2 = arith.constant 2 : index
    %c0_55 = arith.constant 0 : index
    %c0_56 = arith.constant 0 : index
    %87 = vector.load %arg12[%c2, %c0_55, %c0_56] : memref<4x64x48xf32, #tpu.memory_space<vmem>>, vector<1x64x48xf32>
    %88 = vector.shape_cast %87 : vector<1x64x48xf32> to vector<64x48xf32>
    %cst_57 = arith.constant dense<0.000000e+00> : vector<64x64xf32>
    %89 = tpu.matmul %88, %86, %cst_57 {dimension_numbers = #tpu.dot_dimension_numbers<[1], [1], [0], [0], [0, 0, 1, 0], [], []>} : vector<64x48xf32>, vector<64x48xf32>, vector<64x64xf32> -> vector<64x64xf32>
    %c2_58 = arith.constant 2 : index
    %c0_59 = arith.constant 0 : index
    %c0_60 = arith.constant 0 : index
    %90 = vector.load %arg9[%c2_58, %c0_59, %c0_60] : memref<4x64x1xf32, #tpu.memory_space<vmem>>, vector<1x64x1xf32>
    %91 = vector.shape_cast %90 : vector<1x64x1xf32> to vector<64x1xf32>
    %cst_61 = arith.constant dense<0xFF800000> : vector<64xf32>
    %92 = vector.multi_reduction <maximumf>, %89, %cst_61 [1] : vector<64x64xf32> to vector<64xf32>
    %93 = vector.shape_cast %92 : vector<64xf32> to vector<64x1xf32>
    %94 = arith.maximumf %91, %93 : vector<64x1xf32>
    %95 = arith.subf %91, %94 : vector<64x1xf32>
    %96 = math.exp %95 : vector<64x1xf32>
    %97 = vector.broadcast %94 : vector<64x1xf32> to vector<64x64xf32>
    %98 = arith.subf %89, %97 : vector<64x64xf32>
    %99 = math.exp %98 : vector<64x64xf32>
    %c2_62 = arith.constant 2 : index
    %c0_63 = arith.constant 0 : index
    %c0_64 = arith.constant 0 : index
    %100 = vector.load %arg10[%c2_62, %c0_63, %c0_64] : memref<4x64x1xf32, #tpu.memory_space<vmem>>, vector<1x64x1xf32>
    %101 = vector.shape_cast %100 : vector<1x64x1xf32> to vector<64x1xf32>
    %102 = arith.mulf %96, %101 : vector<64x1xf32>
    %cst_65 = arith.constant dense<0.000000e+00> : vector<64xf32>
    %103 = vector.multi_reduction <add>, %99, %cst_65 [1] : vector<64x64xf32> to vector<64xf32>
    %104 = vector.shape_cast %103 : vector<64xf32> to vector<64x1xf32>
    %105 = arith.addf %102, %104 : vector<64x1xf32>
    %c2_66 = arith.constant 2 : index
    %c0_67 = arith.constant 0 : index
    %c0_68 = arith.constant 0 : index
    %106 = vector.load %arg10[%c2_66, %c0_67, %c0_68] : memref<4x64x1xf32, #tpu.memory_space<vmem>>, vector<1x64x1xf32>
    %107 = vector.shape_cast %106 : vector<1x64x1xf32> to vector<64x1xf32>
    %108 = vector.shape_cast %105 : vector<64x1xf32> to vector<1x64x1xf32>
    tpu.vector_store %arg10[%c2_66, %c0_67, %c0_68], %108 {strides = array<i32>} : memref<4x64x1xf32, #tpu.memory_space<vmem>>, vector<1x64x1xf32>,
    %c2_69 = arith.constant 2 : index
    %c0_70 = arith.constant 0 : index
    %c0_71 = arith.constant 0 : index
    %109 = vector.load %arg11[%c2_69, %c0_70, %c0_71] : memref<4x64x32xf32, #tpu.memory_space<vmem>>, vector<1x64x32xf32>
    %110 = vector.shape_cast %109 : vector<1x64x32xf32> to vector<64x32xf32>
    %111 = vector.broadcast %96 : vector<64x1xf32> to vector<64x32xf32>
    %112 = arith.mulf %111, %110 : vector<64x32xf32>
    %113 = vector.extract_strided_slice %6 {offsets = [0, 64], sizes = [64, 32], strides = [1, 1]} : vector<64x128xf32> to vector<64x32xf32>
    %cst_72 = arith.constant dense<0.000000e+00> : vector<64x32xf32>
    %114 = tpu.matmul %99, %113, %cst_72 {dimension_numbers = #tpu.dot_dimension_numbers<[1], [0], [0], [1], [0, 0, 1, 1], [], []>} : vector<64x64xf32>, vector<64x32xf32>, vector<64x32xf32> -> vector<64x32xf32>
    %115 = arith.addf %112, %114 : vector<64x32xf32>
    %c2_73 = arith.constant 2 : index
    %c0_74 = arith.constant 0 : index
    %c0_75 = arith.constant 0 : index
    %116 = vector.load %arg11[%c2_73, %c0_74, %c0_75] : memref<4x64x32xf32, #tpu.memory_space<vmem>>, vector<1x64x32xf32>
    %117 = vector.shape_cast %116 : vector<1x64x32xf32> to vector<64x32xf32>
    %118 = vector.shape_cast %115 : vector<64x32xf32> to vector<1x64x32xf32>
    tpu.vector_store %arg11[%c2_73, %c0_74, %c0_75], %118 {strides = array<i32>} : memref<4x64x32xf32, #tpu.memory_space<vmem>>, vector<1x64x32xf32>,
    %c2_76 = arith.constant 2 : index
    %c0_77 = arith.constant 0 : index
    %c0_78 = arith.constant 0 : index
    %119 = vector.load %arg9[%c2_76, %c0_77, %c0_78] : memref<4x64x1xf32, #tpu.memory_space<vmem>>, vector<1x64x1xf32>
    %120 = vector.shape_cast %119 : vector<1x64x1xf32> to vector<64x1xf32>
    %121 = vector.shape_cast %94 : vector<64x1xf32> to vector<1x64x1xf32>
    tpu.vector_store %arg9[%c2_76, %c0_77, %c0_78], %121 {strides = array<i32>} : memref<4x64x1xf32, #tpu.memory_space<vmem>>, vector<1x64x1xf32>,
    %122 = vector.extract_strided_slice %4 {offsets = [0, 96], sizes = [64, 32], strides = [1, 1]} : vector<64x128xf32> to vector<64x32xf32>
    %123 = tpu.concatenate %122, %10 in 1 : vector<64x32xf32>, vector<64x16xf32> -> vector<64x48xf32>
    %c3 = arith.constant 3 : index
    %c0_79 = arith.constant 0 : index
    %c0_80 = arith.constant 0 : index
    %124 = vector.load %arg12[%c3, %c0_79, %c0_80] : memref<4x64x48xf32, #tpu.memory_space<vmem>>, vector<1x64x48xf32>
    %125 = vector.shape_cast %124 : vector<1x64x48xf32> to vector<64x48xf32>
    %cst_81 = arith.constant dense<0.000000e+00> : vector<64x64xf32>
    %126 = tpu.matmul %125, %123, %cst_81 {dimension_numbers = #tpu.dot_dimension_numbers<[1], [1], [0], [0], [0, 0, 1, 0], [], []>} : vector<64x48xf32>, vector<64x48xf32>, vector<64x64xf32> -> vector<64x64xf32>
    %c3_82 = arith.constant 3 : index
    %c0_83 = arith.constant 0 : index
    %c0_84 = arith.constant 0 : index
    %127 = vector.load %arg9[%c3_82, %c0_83, %c0_84] : memref<4x64x1xf32, #tpu.memory_space<vmem>>, vector<1x64x1xf32>
    %128 = vector.shape_cast %127 : vector<1x64x1xf32> to vector<64x1xf32>
    %cst_85 = arith.constant dense<0xFF800000> : vector<64xf32>
    %129 = vector.multi_reduction <maximumf>, %126, %cst_85 [1] : vector<64x64xf32> to vector<64xf32>
    %130 = vector.shape_cast %129 : vector<64xf32> to vector<64x1xf32>
    %131 = arith.maximumf %128, %130 : vector<64x1xf32>
    %132 = arith.subf %128, %131 : vector<64x1xf32>
    %133 = math.exp %132 : vector<64x1xf32>
    %134 = vector.broadcast %131 : vector<64x1xf32> to vector<64x64xf32>
    %135 = arith.subf %126, %134 : vector<64x64xf32>
    %136 = math.exp %135 : vector<64x64xf32>
    %c3_86 = arith.constant 3 : index
    %c0_87 = arith.constant 0 : index
    %c0_88 = arith.constant 0 : index
    %137 = vector.load %arg10[%c3_86, %c0_87, %c0_88] : memref<4x64x1xf32, #tpu.memory_space<vmem>>, vector<1x64x1xf32>
    %138 = vector.shape_cast %137 : vector<1x64x1xf32> to vector<64x1xf32>
    %139 = arith.mulf %133, %138 : vector<64x1xf32>
    %cst_89 = arith.constant dense<0.000000e+00> : vector<64xf32>
    %140 = vector.multi_reduction <add>, %136, %cst_89 [1] : vector<64x64xf32> to vector<64xf32>
    %141 = vector.shape_cast %140 : vector<64xf32> to vector<64x1xf32>
    %142 = arith.addf %139, %141 : vector<64x1xf32>
    %c3_90 = arith.constant 3 : index
    %c0_91 = arith.constant 0 : index
    %c0_92 = arith.constant 0 : index
    %143 = vector.load %arg10[%c3_90, %c0_91, %c0_92] : memref<4x64x1xf32, #tpu.memory_space<vmem>>, vector<1x64x1xf32>
    %144 = vector.shape_cast %143 : vector<1x64x1xf32> to vector<64x1xf32>
    %145 = vector.shape_cast %142 : vector<64x1xf32> to vector<1x64x1xf32>
    tpu.vector_store %arg10[%c3_90, %c0_91, %c0_92], %145 {strides = array<i32>} : memref<4x64x1xf32, #tpu.memory_space<vmem>>, vector<1x64x1xf32>,
    %c3_93 = arith.constant 3 : index
    %c0_94 = arith.constant 0 : index
    %c0_95 = arith.constant 0 : index
    %146 = vector.load %arg11[%c3_93, %c0_94, %c0_95] : memref<4x64x32xf32, #tpu.memory_space<vmem>>, vector<1x64x32xf32>
    %147 = vector.shape_cast %146 : vector<1x64x32xf32> to vector<64x32xf32>
    %148 = vector.broadcast %133 : vector<64x1xf32> to vector<64x32xf32>
    %149 = arith.mulf %148, %147 : vector<64x32xf32>
    %150 = vector.extract_strided_slice %6 {offsets = [0, 96], sizes = [64, 32], strides = [1, 1]} : vector<64x128xf32> to vector<64x32xf32>
    %cst_96 = arith.constant dense<0.000000e+00> : vector<64x32xf32>
    %151 = tpu.matmul %136, %150, %cst_96 {dimension_numbers = #tpu.dot_dimension_numbers<[1], [0], [0], [1], [0, 0, 1, 1], [], []>} : vector<64x64xf32>, vector<64x32xf32>, vector<64x32xf32> -> vector<64x32xf32>
    %152 = arith.addf %149, %151 : vector<64x32xf32>
    %c3_97 = arith.constant 3 : index
    %c0_98 = arith.constant 0 : index
    %c0_99 = arith.constant 0 : index
    %153 = vector.load %arg11[%c3_97, %c0_98, %c0_99] : memref<4x64x32xf32, #tpu.memory_space<vmem>>, vector<1x64x32xf32>
    %154 = vector.shape_cast %153 : vector<1x64x32xf32> to vector<64x32xf32>
    %155 = vector.shape_cast %152 : vector<64x32xf32> to vector<1x64x32xf32>
    tpu.vector_store %arg11[%c3_97, %c0_98, %c0_99], %155 {strides = array<i32>} : memref<4x64x32xf32, #tpu.memory_space<vmem>>, vector<1x64x32xf32>,
    %c3_100 = arith.constant 3 : index
    %c0_101 = arith.constant 0 : index
    %c0_102 = arith.constant 0 : index
    %156 = vector.load %arg9[%c3_100, %c0_101, %c0_102] : memref<4x64x1xf32, #tpu.memory_space<vmem>>, vector<1x64x1xf32>
    %157 = vector.shape_cast %156 : vector<1x64x1xf32> to vector<64x1xf32>
    %158 = vector.shape_cast %131 : vector<64x1xf32> to vector<1x64x1xf32>
    tpu.vector_store %arg9[%c3_100, %c0_101, %c0_102], %158 {strides = array<i32>} : memref<4x64x1xf32, #tpu.memory_space<vmem>>, vector<1x64x1xf32>,
    %c0_i32_103 = arith.constant 0 : i32
    %159 = arith.cmpi eq, %arg2, %c0_i32_103 : i32
    %160 = arith.extui %159 : i1 to i32
    %c0_i32_104 = arith.constant 0 : i32
    %161 = arith.cmpi ne, %160, %c0_i32_104 : i32
    scf.if %161 {
      %c0_105 = arith.constant 0 : index
      %c0_106 = arith.constant 0 : index
      %c0_107 = arith.constant 0 : index
      %162 = vector.load %arg10[%c0_105, %c0_106, %c0_107] : memref<4x64x1xf32, #tpu.memory_space<vmem>>, vector<1x64x1xf32>
      %163 = vector.shape_cast %162 : vector<1x64x1xf32> to vector<64x1xf32>
      %164 = tpu.reciprocal %163 {approx = true} : vector<64x1xf32> -> vector<64x1xf32>
      %165 = arith.mulf %163, %164 : vector<64x1xf32>
      %cst_108 = arith.constant 2.000000e+00 : f32
      %166 = vector.broadcast %cst_108 : f32 to vector<64x1xf32>
      %167 = arith.subf %166, %165 : vector<64x1xf32>
      %168 = arith.mulf %164, %167 : vector<64x1xf32>
      %c0_109 = arith.constant 0 : index
      %c0_110 = arith.constant 0 : index
      %c0_111 = arith.constant 0 : index
      %169 = vector.load %arg11[%c0_109, %c0_110, %c0_111] : memref<4x64x32xf32, #tpu.memory_space<vmem>>, vector<1x64x32xf32>
      %170 = vector.shape_cast %169 : vector<1x64x32xf32> to vector<64x32xf32>
      %171 = vector.broadcast %168 : vector<64x1xf32> to vector<64x32xf32>
      %172 = arith.mulf %170, %171 : vector<64x32xf32>
      %c1_112 = arith.constant 1 : index
      %c0_113 = arith.constant 0 : index
      %c0_114 = arith.constant 0 : index
      %173 = vector.load %arg10[%c1_112, %c0_113, %c0_114] : memref<4x64x1xf32, #tpu.memory_space<vmem>>, vector<1x64x1xf32>
      %174 = vector.shape_cast %173 : vector<1x64x1xf32> to vector<64x1xf32>
      %175 = tpu.reciprocal %174 {approx = true} : vector<64x1xf32> -> vector<64x1xf32>
      %176 = arith.mulf %174, %175 : vector<64x1xf32>
      %cst_115 = arith.constant 2.000000e+00 : f32
      %177 = vector.broadcast %cst_115 : f32 to vector<64x1xf32>
      %178 = arith.subf %177, %176 : vector<64x1xf32>
      %179 = arith.mulf %175, %178 : vector<64x1xf32>
      %c1_116 = arith.constant 1 : index
      %c0_117 = arith.constant 0 : index
      %c0_118 = arith.constant 0 : index
      %180 = vector.load %arg11[%c1_116, %c0_117, %c0_118] : memref<4x64x32xf32, #tpu.memory_space<vmem>>, vector<1x64x32xf32>
      %181 = vector.shape_cast %180 : vector<1x64x32xf32> to vector<64x32xf32>
      %182 = vector.broadcast %179 : vector<64x1xf32> to vector<64x32xf32>
      %183 = arith.mulf %181, %182 : vector<64x32xf32>
      %c2_119 = arith.constant 2 : index
      %c0_120 = arith.constant 0 : index
      %c0_121 = arith.constant 0 : index
      %184 = vector.load %arg10[%c2_119, %c0_120, %c0_121] : memref<4x64x1xf32, #tpu.memory_space<vmem>>, vector<1x64x1xf32>
      %185 = vector.shape_cast %184 : vector<1x64x1xf32> to vector<64x1xf32>
      %186 = tpu.reciprocal %185 {approx = true} : vector<64x1xf32> -> vector<64x1xf32>
      %187 = arith.mulf %185, %186 : vector<64x1xf32>
      %cst_122 = arith.constant 2.000000e+00 : f32
      %188 = vector.broadcast %cst_122 : f32 to vector<64x1xf32>
      %189 = arith.subf %188, %187 : vector<64x1xf32>
      %190 = arith.mulf %186, %189 : vector<64x1xf32>
      %c2_123 = arith.constant 2 : index
      %c0_124 = arith.constant 0 : index
      %c0_125 = arith.constant 0 : index
      %191 = vector.load %arg11[%c2_123, %c0_124, %c0_125] : memref<4x64x32xf32, #tpu.memory_space<vmem>>, vector<1x64x32xf32>
      %192 = vector.shape_cast %191 : vector<1x64x32xf32> to vector<64x32xf32>
      %193 = vector.broadcast %190 : vector<64x1xf32> to vector<64x32xf32>
      %194 = arith.mulf %192, %193 : vector<64x32xf32>
      %c3_126 = arith.constant 3 : index
      %c0_127 = arith.constant 0 : index
      %c0_128 = arith.constant 0 : index
      %195 = vector.load %arg10[%c3_126, %c0_127, %c0_128] : memref<4x64x1xf32, #tpu.memory_space<vmem>>, vector<1x64x1xf32>
      %196 = vector.shape_cast %195 : vector<1x64x1xf32> to vector<64x1xf32>
      %197 = tpu.reciprocal %196 {approx = true} : vector<64x1xf32> -> vector<64x1xf32>
      %198 = arith.mulf %196, %197 : vector<64x1xf32>
      %cst_129 = arith.constant 2.000000e+00 : f32
      %199 = vector.broadcast %cst_129 : f32 to vector<64x1xf32>
      %200 = arith.subf %199, %198 : vector<64x1xf32>
      %201 = arith.mulf %197, %200 : vector<64x1xf32>
      %c3_130 = arith.constant 3 : index
      %c0_131 = arith.constant 0 : index
      %c0_132 = arith.constant 0 : index
      %202 = vector.load %arg11[%c3_130, %c0_131, %c0_132] : memref<4x64x32xf32, #tpu.memory_space<vmem>>, vector<1x64x32xf32>
      %203 = vector.shape_cast %202 : vector<1x64x32xf32> to vector<64x32xf32>
      %204 = vector.broadcast %201 : vector<64x1xf32> to vector<64x32xf32>
      %205 = arith.mulf %203, %204 : vector<64x32xf32>
      %206 = tpu.concatenate %172, %183, %194, %205 in 1 : vector<64x32xf32>, vector<64x32xf32>, vector<64x32xf32>, vector<64x32xf32> -> vector<64x128xf32>
      %c0_133 = arith.constant 0 : index
      %c0_134 = arith.constant 0 : index
      %c0_135 = arith.constant 0 : index
      %207 = vector.load %arg8[%c0_133, %c0_134, %c0_135] : memref<1x64x128xf32, #tpu.memory_space<vmem>>, vector<1x64x128xf32>
      %208 = vector.shape_cast %207 : vector<1x64x128xf32> to vector<64x128xf32>
      %209 = vector.shape_cast %206 : vector<64x128xf32> to vector<1x64x128xf32>
      tpu.vector_store %arg8[%c0_133, %c0_134, %c0_135], %209 {strides = array<i32>} : memref<1x64x128xf32, #tpu.memory_space<vmem>>, vector<1x64x128xf32>,
    } else {
    }
    return
  }
  func.func @transform_0(%arg0: i32, %arg1: i32, %arg2: i32) -> (i32, i32, i32) {
    %c0_i32 = arith.constant 0 : i32
    %c0_i32_0 = arith.constant 0 : i32
    return %arg0, %arg1, %c0_i32 : i32, i32, i32
  }
  func.func @transform_1(%arg0: i32, %arg1: i32, %arg2: i32) -> (i32, i32, i32) {
    %c1_i32 = arith.constant 1 : i32
    %c0_i32 = arith.constant 0 : i32
    return %arg0, %arg2, %c1_i32 : i32, i32, i32
  }
  func.func @transform_2(%arg0: i32, %arg1: i32, %arg2: i32) -> (i32, i32, i32) {
    %c2_i32 = arith.constant 2 : i32
    %c0_i32 = arith.constant 0 : i32
    return %arg0, %arg2, %c2_i32 : i32, i32, i32
  }
  func.func @transform_3(%arg0: i32, %arg1: i32, %arg2: i32) -> (i32, i32, i32, i32) {
    %c0_i32 = arith.constant 0 : i32
    %c0_i32_0 = arith.constant 0 : i32
    %c0_i32_1 = arith.constant 0 : i32
    return %arg0, %c0_i32, %arg1, %c0_i32_0 : i32, i32, i32, i32
  }
  func.func @transform_4(%arg0: i32, %arg1: i32, %arg2: i32) -> (i32, i32) {
    %c0_i32 = arith.constant 0 : i32
    %c0_i32_0 = arith.constant 0 : i32
    %c0_i32_1 = arith.constant 0 : i32
    return %c0_i32, %c0_i32_0 : i32, i32
  }
  func.func @transform_5(%arg0: i32, %arg1: i32, %arg2: i32) -> (i32, i32, i32) {
    %c0_i32 = arith.constant 0 : i32
    %c0_i32_0 = arith.constant 0 : i32
    return %arg0, %arg1, %c0_i32 : i32, i32, i32
  }
}

module attributes {stable_mosaic.version = 11 : i64} {
  func.func @_linear_f32_kernel(%arg0: i32, %arg1: i32, %arg2: i32, %arg3: memref<128x128xf32, #tpu.memory_space<vmem>>, %arg4: memref<128x128xf32, #tpu.memory_space<vmem>>, %arg5: memref<1x128xf32, #tpu.memory_space<vmem>>, %arg6: memref<128x128xf32, #tpu.memory_space<vmem>>) attributes {dimension_semantics = [#tpu.dimension_semantics<parallel>, #tpu.dimension_semantics<parallel>, #tpu.dimension_semantics<arbitrary>], iteration_bounds = array<i64: 1, 1, 1>, scalar_prefetch = 0 : i64, scratch_operands = 0 : i64, tpu.core_type = #tpu.core_type<tc>, window_params = [{transform_indices = @transform_0, window_bounds = array<i64: 128, 128>}, {transform_indices = @transform_1, window_bounds = array<i64: 128, 128>}, {transform_indices = @transform_2, window_bounds = array<i64: 1, 128>}, {transform_indices = @transform_3, window_bounds = array<i64: 128, 128>}]} {
    %c0_i32 = arith.constant 0 : i32
    %0 = arith.cmpi eq, %arg2, %c0_i32 : i32
    %1 = arith.extui %0 : i1 to i32
    %c0_i32_0 = arith.constant 0 : i32
    %2 = arith.cmpi ne, %1, %c0_i32_0 : i32
    scf.if %2 {
      %cst_10 = arith.constant 0.000000e+00 : f32
      %12 = vector.broadcast %cst_10 : f32 to vector<128x128xf32>
      %c0_11 = arith.constant 0 : index
      %c0_12 = arith.constant 0 : index
      %13 = vector.load %arg6[%c0_11, %c0_12] : memref<128x128xf32, #tpu.memory_space<vmem>>, vector<128x128xf32>
      tpu.vector_store %arg6[%c0_11, %c0_12], %12 {strides = array<i32>} : memref<128x128xf32, #tpu.memory_space<vmem>>, vector<128x128xf32>,
    } else {
    }
    %c0 = arith.constant 0 : index
    %c0_1 = arith.constant 0 : index
    %3 = vector.load %arg6[%c0, %c0_1] : memref<128x128xf32, #tpu.memory_space<vmem>>, vector<128x128xf32>
    %c0_2 = arith.constant 0 : index
    %c0_3 = arith.constant 0 : index
    %4 = vector.load %arg3[%c0_2, %c0_3] : memref<128x128xf32, #tpu.memory_space<vmem>>, vector<128x128xf32>
    %c0_4 = arith.constant 0 : index
    %c0_5 = arith.constant 0 : index
    %5 = vector.load %arg4[%c0_4, %c0_5] : memref<128x128xf32, #tpu.memory_space<vmem>>, vector<128x128xf32>
    %cst = arith.constant dense<0.000000e+00> : vector<128x128xf32>
    %6 = tpu.matmul %4, %5, %cst {dimension_numbers = #tpu.dot_dimension_numbers<[1], [0], [0], [1], [0, 0, 1, 1], [], []>} : vector<128x128xf32>, vector<128x128xf32>, vector<128x128xf32> -> vector<128x128xf32>
    %7 = arith.addf %3, %6 : vector<128x128xf32>
    %c0_6 = arith.constant 0 : index
    %c0_7 = arith.constant 0 : index
    %8 = vector.load %arg6[%c0_6, %c0_7] : memref<128x128xf32, #tpu.memory_space<vmem>>, vector<128x128xf32>
    tpu.vector_store %arg6[%c0_6, %c0_7], %7 {strides = array<i32>} : memref<128x128xf32, #tpu.memory_space<vmem>>, vector<128x128xf32>,
    %c0_i32_8 = arith.constant 0 : i32
    %9 = arith.cmpi eq, %arg2, %c0_i32_8 : i32
    %10 = arith.extui %9 : i1 to i32
    %c0_i32_9 = arith.constant 0 : i32
    %11 = arith.cmpi ne, %10, %c0_i32_9 : i32
    scf.if %11 {
      %c0_10 = arith.constant 0 : index
      %c0_11 = arith.constant 0 : index
      %12 = vector.load %arg6[%c0_10, %c0_11] : memref<128x128xf32, #tpu.memory_space<vmem>>, vector<128x128xf32>
      %c0_12 = arith.constant 0 : index
      %c0_13 = arith.constant 0 : index
      %13 = vector.load %arg5[%c0_12, %c0_13] : memref<1x128xf32, #tpu.memory_space<vmem>>, vector<1x128xf32>
      %14 = vector.broadcast %13 : vector<1x128xf32> to vector<128x128xf32>
      %15 = arith.addf %12, %14 : vector<128x128xf32>
      %c0_14 = arith.constant 0 : index
      %c0_15 = arith.constant 0 : index
      %16 = vector.load %arg6[%c0_14, %c0_15] : memref<128x128xf32, #tpu.memory_space<vmem>>, vector<128x128xf32>
      tpu.vector_store %arg6[%c0_14, %c0_15], %15 {strides = array<i32>} : memref<128x128xf32, #tpu.memory_space<vmem>>, vector<128x128xf32>,
    } else {
    }
    return
  }
  func.func @transform_0(%arg0: i32, %arg1: i32, %arg2: i32) -> (i32, i32) {
    %c0_i32 = arith.constant 0 : i32
    return %arg0, %arg2 : i32, i32
  }
  func.func @transform_1(%arg0: i32, %arg1: i32, %arg2: i32) -> (i32, i32) {
    %c0_i32 = arith.constant 0 : i32
    return %arg2, %arg1 : i32, i32
  }
  func.func @transform_2(%arg0: i32, %arg1: i32, %arg2: i32) -> (i32, i32) {
    %c0_i32 = arith.constant 0 : i32
    %c0_i32_0 = arith.constant 0 : i32
    return %c0_i32, %arg1 : i32, i32
  }
  func.func @transform_3(%arg0: i32, %arg1: i32, %arg2: i32) -> (i32, i32) {
    %c0_i32 = arith.constant 0 : i32
    return %arg0, %arg1 : i32, i32
  }
}

</mosaic_0001>

<bundles_post_ra>
// kernel: attention_forward.3
= control target key start
LH: loop header
LB: loop body
LE: loop exit
PB: predicated region body
PF: predicated region fallthrough
CT: control target
= control target key end

     0   :  { %8 = vsyncpa [#allocation3], 0  ;;  %s1365_s0 = inlined_call_operand.hbm [shape: f32[128,128], index: 0, kind: input, shape index: {}]   ;;  %s1366_s1 = inlined_call_operand.hbm [shape: f32[128,384], index: 1, kind: input, shape index: {}]   ;;  %s1367_s2 = inlined_call_operand.vmem [shape: f32[1,384], index: 2, kind: input, shape index: {}]   ;;  %s1368_s3 = inlined_call_operand.vmem [shape: f32[128,384], index: 3, kind: output, shape index: {}]  }
   0x1   :  { %9 = vsyncpa [#allocation5], 0 }
   0x2   :  { %11 = vsyncpa [#allocation5 + $0x1], 0  ;;  %s1123_s12 = smov 0   ;;  %s1125_s13 = smov 0  }
   0x3   :  { %s1127_s14 = smov 0   ;;  %s1129_s15 = smov 0  }
   0x4   :  { %s1131_s16 = smov 0   ;;  %s1133_s17 = smov 0  }
   0x5 LB: > { %s762_s18 = sadd.s32 4294967295, %s1096_s17   ;;  %p80_p0 = scmp.ne.s32.totalorder %s1084_s14, %s1080_s13  ;;  %s1096_s17 = sphi %s1133_s17, %s17_s17   ;;  %s1092_s16 = sphi %s1131_s16, %s1391_s16   ;;  %s1088_s15 = sphi %s1129_s15, %s1390_s15   ;;  %s1084_s14 = sphi %s1127_s14, %s1389_s14   ;;  %s1080_s13 = sphi %s1125_s13, %s1388_s13   ;;  %s1076_s12 = sphi %s1123_s12, %s1387_s12  }
   0x6   : > { %p81_p1 = scmp.eq.s32.totalorder %s1096_s17, 0  ;;  %p86_p2 = scmp.ne.s32.totalorder %s1080_s13, %s1076_s12 }
   0x7   : > { %p1156_p3 = scmp.eq.s32.totalorder %s762_s18, 0  ;;  %p138_p4 = scmp.eq.s32.totalorder %s762_s18, 2 }
   0x8   : > { %p82_p5 = por %p81_p1, %p80_p0  ;;  %p764_p6 = scmp.ge.s32.totalorder %s1096_s17, 1 }
   0x9   : > { %s1374_s19 = scalar_select %p1156_p3, 1, 0 }
   0xa   : > { %p1163_p7 = por %p1156_p3, %p86_p2  ;;  %p1167_p8 = por %p138_p4, %p80_p0 }
   0xb   : > { %p151_p9 = scmp.lt.s32.totalorder %s1096_s17, 4  ;;  %s1098_s23 = smov [#allocation2]  }
   0xc   : > { %s1375_s20 = scalar_select %p1163_p7, 1, 0 }
   0xd   : > { %s1376_s21 = scalar_select %p1167_p8, 1, 0 }
   0xe   : > { %p1172_p10 = pnand %p764_p6, %p151_p9  ;;  %s167_s24 = sshll.u32 %s1098_s23, 4  ;;  %s1176_s24 = int_to_ptr.vmem [resolvable:$true] %s167_s24 }
   0xf   : > { %p929_p12 = scmp.lt.s32.totalorder %s1096_s17, 3  ;;  %s32_s27 = sadd.s32 1, %s1092_s16 }
  0x10   : > { %s1377_s22 = scalar_select %p1172_p10, 1, 0 }
  0x11   : > { %p920_p11 = pneg %p1172_p10  ;;  %p1187_p0 = pnand %p929_p12, %p82_p5 }
  0x12   : > { %p1192_p1 = scmp.ge.s32.totalorder %s32_s27, 3  ;;  %s984_s4 = scalar_lea.hbm %s1365_s0, 2048 }
  0x13   : > { %p1183_p13 = pnand %p920_p11, %p1156_p3  ;;  %p985_p2 = scmp.ne.s32.totalorder %s1365_s0, %s984_s4 }
  0x14   : > { %s1379_s26 = scalar_select %p1187_p0, 1, 0 }
  0x15   : > { %s1380_s28 = scalar_select %p1192_p1, 1, 0 }
  0x16   : > { %p986_p4 = pneg %p1183_p13  ;;  %p991_p9 = scmp.lt.u32.totalorder %s984_s4, %s1365_s0 }
  0x18   : > { %p987_p6 = pnand %p986_p4, %p985_p2 }
  0x1a   : > { %p988_p5 = pneg %p987_p6 }
  0x1c   : > { %p993_p11 = pnand %p991_p9, %p988_p5 }
  0x1e   : > { %996 = shalt.err (!%p993_p11)
}
  0x1f   : > { %s997_s9 = scalar_lea.vmem %s1176_s24, 2048  ;;  %p1005_p3 = scmp.lt.s32.totalorder %s1176_s24, %s1176_s24 }
  0x20   : > { %p998_p12 = scmp.ne.s32.totalorder %s1176_s24, %s997_s9  ;;  %p1006_p10 = scmp.lt.s32.totalorder %s997_s9, %s997_s9 }
  0x22   : > { %p1000_p8 = pnand %p998_p12, %p986_p4  ;;  %p1007_p0 = por %p1006_p10, %p1005_p3 }
  0x24   : > { %p1001_p7 = pneg %p1000_p8 }
  0x26   : > { %p1008_p1 = pnand %p1007_p0, %p1001_p7 }
  0x28   : > { %1011 = shalt.err (!%p1008_p1)
}
  0x29   : > { %s1099_s10 = smov 128   ;;  %s1100_s11 = smov 8  }
  0x2a   : > { %923 = dma.hbm_to_vmem [thread:$0]  (!%p1183_p13), %s1365_s0, 2048, %s1176_s24, [#allocation3], %s1099_s10, %s1099_s10, %s1100_s11  }
  0x2b   : > { %s73_s23 = sadd.s32 1, %s1084_s14  ;;  %p1381_p3 = scmp.ne.s32.totalorder %s1380_s28, 0 }
  0x2c   : > { %s181_s29 = sand.u32 1, %s1084_s14   ;;  %s768_s30 = sshll.u32 %s1092_s16, 7 }
  0x2d   : > { %s1393_s27 = smov (%p1381_p3, %s32_s27), 0  ;;  %s767_s5 = sshll.u32 %s181_s29, 7 }
  0x2e   : > { %s69_s4 = ssub.s32 %s1092_s16, %s1393_s27  ;;  %s1232_s7 = scalar_lea.hbm %s1366_s1, %s768_s30 }
  0x2f   : > { %p71_p7 = scmp.eq.s32.totalorder %s69_s4, 0  ;;  %s185_s28 = scalar_lea.vmem [#allocation4], %s767_s5 }
  0x30   : > { %s194_s8 = sshll.u32 %s185_s28, 4  ;;  %s1239_s9 = scalar_lea.sflag [#allocation5], %s181_s29  ;;  %s1237_s8 = int_to_ptr.vmem [resolvable:$true] %s194_s8 }
  0x31   : > { %s1235_s24 = scalar_select %p71_p7, %s1084_s14, %s73_s23  }
  0x32   : > { %s1012_s12 = scalar_lea.hbm %s1232_s7, 2048  ;;  %p1382_p10 = scmp.ne.s32.totalorder %s1379_s26, 0 }
  0x33   : > { %p1013_p8 = scmp.ne.s32.totalorder %s1232_s7, %s1012_s12  ;;  %s1017_s4 = scalar_lea.hbm %s1366_s1, 6144 }
  0x34   : > { %p1014_p13 = pneg %p1382_p10  ;;  %p1018_p2 = scmp.lt.u32.totalorder %s1232_s7, %s1366_s1 }
  0x35   : > { %p1019_p4 = scmp.lt.u32.totalorder %s1017_s4, %s1012_s12  ;;  %p1021_p5 = scmp.lt.u32.totalorder %s1012_s12, %s1232_s7 }
  0x36   : > { %p1015_p0 = pnand %p1014_p13, %p1013_p8 }
  0x37   : > { %p1020_p6 = por %p1019_p4, %p1018_p2 }
  0x38   : > { %p1016_p1 = pneg %p1015_p0 }
  0x39   : > { %p1022_p9 = por %p1021_p5, %p1020_p6 }
  0x3b   : > { %p1023_p11 = pnand %p1022_p9, %p1016_p1 }
  0x3d   : > { %1026 = shalt.err (!%p1023_p11)
}
  0x3e   : > { %s1027_s29 = scalar_lea.vmem %s1237_s8, 2048  ;;  %s1101_s5 = smov [#allocation4]  }
  0x3f   : > { %p1028_p12 = scmp.ne.s32.totalorder %s1237_s8, %s1027_s29  ;;  %s1032_s6 = sshll.u32 %s1101_s5, 4  ;;  %s1033_s6 = int_to_ptr.vmem [resolvable:$false] %s1032_s6 }
  0x40   : > { %s1034_s28 = scalar_lea.vmem %s1033_s6, 4096  ;;  %p1035_p8 = scmp.lt.s32.totalorder %s1237_s8, %s1033_s6 }
  0x41   : > { %p1030_p3 = pnand %p1028_p12, %p1014_p13  ;;  %p1036_p0 = scmp.lt.s32.totalorder %s1034_s28, %s1027_s29 }
  0x43   : > { %p1031_p7 = pneg %p1030_p3  ;;  %p1037_p2 = por %p1036_p0, %p1035_p8 }
  0x45   : > { %p1038_p4 = pnand %p1037_p2, %p1031_p7 }
  0x47   : > { %1041 = shalt.err (!%p1038_p4)
}
  0x48   : > { %s1102_s12 = smov 384   ;;  %p1383_p13 = scmp.ne.s32.totalorder %s1377_s22, 0 }
  0x49   : > { %927 = dma.hbm_to_vmem [thread:$0]  (!%p1382_p10), %s1232_s7, 2048, %s1237_s8, %s1239_s9, %s1102_s12, %s1099_s10, %s1100_s11  }
  0x4a   : > { %212 = sbr.rel (%p1383_p13) target bundleno = 358 (0x166), region = 32  ;;  %p1384_p1 = scmp.ne.s32.totalorder (!%p1383_p13), %s1374_s19, 0 }
  0x51   : > { %1067 = dma.done.wait (%p1384_p1), [#allocation3], 2048  }
  0x52   : > { %1069 = vsyncadd (%p1384_p1), [#allocation3], 4294965248  ;;  %s218_s18 = sand.u32 1, %s1080_s13   ;;  %p1385_p6 = scmp.ne.s32.totalorder %s1375_s20, 0 }
  0x53   : > { %s1276_s30 = sshll.u32 %s218_s18, 7  ;;  %s219_s26 = scalar_lea.sflag [#allocation5], %s218_s18 }
  0x54   : > { %s1279_s4 = scalar_lea.vmem [#allocation4], %s1276_s30 }
  0x55   : > { %1071 = dma.done.wait (%p1385_p6), %s219_s26, 2048  }
  0x56   : > { %1073 = vsyncadd (%p1385_p6), %s219_s26, 4294965248  ;;  %v305_v0 = vld [vmem:[%s1279_s4] sm:$0xff]  ;;  %v306_v1 = vld [vmem:[%s1279_s4 + $0x8] sm:$0xff]  ;;  %p249_p10 = scmp.lt.s32.totalorder %s1088_s15, 2  ;;  %s1307_s11 = scalar_lea.vmem [#allocation6], %s1276_s30 }
  0x57   : > { %v307_v2 = vld [vmem:[%s1279_s4 + $0x10] sm:$0xff]  ;;  %v866_v3 = vpack.c.bf16 %v306_v1, %v305_v0  ;;  %v308_v4 = vld [vmem:[%s1279_s4 + $0x18] sm:$0xff]  ;;  %v309_v6 = vld [vmem:[%s1279_s4 + $0x20] sm:$0xff]  ;;  %p1386_p5 = scmp.ne.s32.totalorder %s1376_s21, 0 }
  0x58   : > { %v870_v5 = vpack.c.bf16 %v308_v4, %v307_v2  ;;  %v310_v7 = vld [vmem:[%s1279_s4 + $0x28] sm:$0xff]  ;;  %v289_v9 = vld [vmem:[#allocation2] sm:$0xff]  ;;  %v311_v11 = vld [vmem:[%s1279_s4 + $0x30] sm:$0xff]  ;;  %s250_s19 = scalar_select %p249_p10, %s1088_s15, 2 }
  0x59   : > { %867 = vmatprep.subr.bf16.mxu0 %v866_v3  ;;  %898 = vmatprep.subr.bf16.mxu1 %v866_v3  ;;  %v874_v8 = vpack.c.bf16 %v310_v7, %v309_v6  ;;  %v297_v10 = vld [vmem:[#allocation2 + $0x40] sm:$0xff]  ;;  %v312_v12 = vld [vmem:[%s1279_s4 + $0x38] sm:$0xff]  ;;  %v314_v15 = vld [vmem:[%s1279_s4 + $0x48] sm:$0xff]  ;;  %s775_s7 = sshll.u32 (%p1386_p5), %s1088_s15, 3 }
  0x5a   : > { %869 = vmatpush3.bf16.msra.mxu0 %v866_v3  ;;  %906 = vmatpush3.bf16.msra.mxu1 %v866_v3  ;;  %v878_v13 = vpack.c.bf16 %v312_v12, %v311_v11  ;;  %v313_v14 = vld [vmem:[%s1279_s4 + $0x40] sm:$0xff]  ;;  %v315_v17 = vld [vmem:[%s1279_s4 + $0x50] sm:$0xff]  ;;  %v316_v18 = vld [vmem:[%s1279_s4 + $0x58] sm:$0xff]  ;;  %s251_s10 = scalar_lea.vmem %s1367_s2, %s250_s19  ;;  %s567_s23 = scalar_lea.vmem (%p1386_p5), %s1368_s3, %s775_s7 }
  0x5b   : > { %871 = vmatprep.subr.bf16.mxu0 %v870_v5  ;;  %899 = vmatprep.subr.bf16.mxu1 %v870_v5  ;;  %v882_v16 = vpack.c.bf16 %v314_v15, %v313_v14  ;;  %v886_v19 = vpack.c.bf16 %v316_v18, %v315_v17  ;;  %v317_v20 = vld [vmem:[%s1279_s4 + $0x60] sm:$0xff]  ;;  %v318_v21 = vld [vmem:[%s1279_s4 + $0x68] sm:$0xff]  ;;  %v319_v23 = vld [vmem:[%s1279_s4 + $0x70] sm:$0xff] }
  0x5c   : > { %842 = vmatprep.mubr.f32.mxu0 %v289_v9  ;;  %854 = vmatprep.mubr.f32.mxu1 %v297_v10  ;;  %v890_v22 = vpack.c.bf16 %v318_v21, %v317_v20  ;;  %v320_v24 = vld [vmem:[%s1279_s4 + $0x78] sm:$0xff]  ;;  %v290_v26 = vld [vmem:[#allocation2 + $0x8] sm:$0xff]  ;;  %v291_v28 = vld [vmem:[#allocation2 + $0x10] sm:$0xff] }
  0x5d   : > { %v894_v25 = vpack.c.bf16 %v320_v24, %v319_v23  ;;  %v298_v27 = vld [vmem:[#allocation2 + $0x48] sm:$0xff]  ;;  %v299_v29 = vld [vmem:[#allocation2 + $0x50] sm:$0xff]  ;;  %v292_v30 = vld [vmem:[#allocation2 + $0x18] sm:$0xff] }
  0x5e   : > { %873 = vmatpush3.bf16.msra.mxu0 %v870_v5  ;;  %907 = vmatpush3.bf16.msra.mxu1 %v870_v5  ;;  %v300_v31 = vld [vmem:[#allocation2 + $0x58] sm:$0xff]  ;;  %v293_v32 = vld [vmem:[#allocation2 + $0x20] sm:$0xff]  ;;  %v294_v34 = vld [vmem:[#allocation2 + $0x28] sm:$0xff] }
  0x5f   : > { %875 = vmatprep.subr.bf16.mxu0 %v874_v8  ;;  %900 = vmatprep.subr.bf16.mxu1 %v874_v8  ;;  %v301_v33 = vld [vmem:[#allocation2 + $0x60] sm:$0xff]  ;;  %v302_v35 = vld [vmem:[#allocation2 + $0x68] sm:$0xff]  ;;  %v295_v36 = vld [vmem:[#allocation2 + $0x30] sm:$0xff] }
  0x60   : > { %v303_v37 = vld [vmem:[#allocation2 + $0x70] sm:$0xff]  ;;  %v296_v38 = vld [vmem:[#allocation2 + $0x38] sm:$0xff]  ;;  %v773_v41 = vld [vmem:[%s251_s10] ss:$0 sm:$0xff] }
  0x61   : > { %v304_v39 = vld [vmem:[#allocation2 + $0x78] sm:$0xff] }
  0x62   : > { %877 = vmatpush3.bf16.msra.mxu0 %v874_v8  ;;  %908 = vmatpush3.bf16.msra.mxu1 %v874_v8 }
  0x63   : > { %879 = vmatprep.subr.bf16.mxu0 %v878_v13  ;;  %901 = vmatprep.subr.bf16.mxu1 %v878_v13 }
  0x66   : > { %881 = vmatpush3.bf16.msra.mxu0 %v878_v13  ;;  %909 = vmatpush3.bf16.msra.mxu1 %v878_v13 }
  0x67   : > { %883 = vmatprep.subr.bf16.mxu0 %v882_v16  ;;  %902 = vmatprep.subr.bf16.mxu1 %v882_v16 }
  0x6a   : > { %885 = vmatpush3.bf16.msra.mxu0 %v882_v16  ;;  %910 = vmatpush3.bf16.msra.mxu1 %v882_v16 }
  0x6b   : > { %887 = vmatprep.subr.bf16.mxu0 %v886_v19  ;;  %903 = vmatprep.subr.bf16.mxu1 %v886_v19 }
  0x6e   : > { %889 = vmatpush3.bf16.msra.mxu0 %v886_v19  ;;  %911 = vmatpush3.bf16.msra.mxu1 %v886_v19 }
  0x6f   : > { %891 = vmatprep.subr.bf16.mxu0 %v890_v22  ;;  %904 = vmatprep.subr.bf16.mxu1 %v890_v22 }
  0x72   : > { %893 = vmatpush3.bf16.msra.mxu0 %v890_v22  ;;  %912 = vmatpush3.bf16.msra.mxu1 %v890_v22 }
  0x73   : > { %895 = vmatprep.subr.bf16.mxu0 %v894_v25  ;;  %905 = vmatprep.subr.bf16.mxu1 %v894_v25 }
  0x76   : > { %897 = vmatpush3.bf16.msra.mxu0 %v894_v25  ;;  %913 = vmatpush3.bf16.msra.mxu1 %v894_v25 }
  0x79   : > { %843 = vmatmul.mubr.f32.vlgmr.msra.gmra.mrb[0].mxu0 %v290_v26  ;;  %855 = vmatmul.mubr.f32.vlgmr.msra.gmra.mrb[0].mxu1 %v298_v27 }
  0x7a   : > { %845 = vmatprep.mubr.f32.mxu0 %v291_v28  ;;  %857 = vmatprep.mubr.f32.mxu1 %v299_v29 }
  0x7d   : > { %846 = vmatmul.mubr.f32.gmra.mrb[2].mxu0 %v292_v30  ;;  %858 = vmatmul.mubr.f32.gmra.mrb[2].mxu1 %v300_v31 }
  0x7e   : > { %848 = vmatprep.mubr.f32.mxu0 %v293_v32  ;;  %860 = vmatprep.mubr.f32.mxu1 %v301_v33 }
  0x81   : > { %849 = vmatmul.mubr.f32.gmra.mrb[4].mxu0 %v294_v34  ;;  %861 = vmatmul.mubr.f32.gmra.mrb[4].mxu1 %v302_v35 }
  0x82   : > { %851 = vmatprep.mubr.f32.mxu0 %v295_v36  ;;  %863 = vmatprep.mubr.f32.mxu1 %v303_v37 }
  0x85   : > { %852 = vmatmul.mubr.f32.gmra.mrb[6].mxu0 %v296_v38  ;;  %864 = vmatmul.mubr.f32.gmra.mrb[6].mxu1 %v304_v39 }
 0x14c   : > { %v844_v40 = vpop.f32.mrb[0].mxu0  ;;  %v856_v42 = vpop.f32.mrb[0].mxu1 }
 0x14d   : > { %v387_v43 = vpop.f32.mrb[1].mxu0  ;;  %v427_v44 = vpop.f32.mrb[1].mxu1  ;;  %v525_v45 = vadd.f32 %v844_v40, %v773_v41  ;;  %v533_v46 = vadd.f32 %v856_v42, %v773_v41 }
 0x14e   : > { %v524_v47 = vadd.f32 %v773_v41, %v387_v43  ;;  %v532_v48 = vadd.f32 %v773_v41, %v427_v44 }
 0x14f   : > { %541 = vst [vmem:[%s1307_s11 + $0x8] sm:$0xff] %v525_v45  ;;  %549 = vst [vmem:[%s1307_s11 + $0x48] sm:$0xff] %v533_v46 }
 0x150   : > { %v847_v49 = vpop.f32.mrb[2].mxu0  ;;  %v859_v50 = vpop.f32.mrb[2].mxu1  ;;  %540 = vst [vmem:[%s1307_s11] sm:$0xff] %v524_v47  ;;  %548 = vst [vmem:[%s1307_s11 + $0x40] sm:$0xff] %v532_v48 }
 0x151   : > { %v397_v51 = vpop.f32.mrb[3].mxu0  ;;  %v437_v52 = vpop.f32.mrb[3].mxu1  ;;  %v527_v53 = vadd.f32 %v847_v49, %v773_v41  ;;  %v535_v54 = vadd.f32 %v859_v50, %v773_v41 }
 0x152   : > { %v526_v55 = vadd.f32 %v773_v41, %v397_v51  ;;  %v534_v56 = vadd.f32 %v773_v41, %v437_v52 }
 0x153   : > { %543 = vst [vmem:[%s1307_s11 + $0x18] sm:$0xff] %v527_v53  ;;  %551 = vst [vmem:[%s1307_s11 + $0x58] sm:$0xff] %v535_v54 }
 0x154   : > { %v850_v57 = vpop.f32.mrb[4].mxu0  ;;  %v862_v58 = vpop.f32.mrb[4].mxu1  ;;  %542 = vst [vmem:[%s1307_s11 + $0x10] sm:$0xff] %v526_v55  ;;  %550 = vst [vmem:[%s1307_s11 + $0x50] sm:$0xff] %v534_v56 }
 0x155   : > { %v407_v59 = vpop.f32.mrb[5].mxu0  ;;  %v447_v60 = vpop.f32.mrb[5].mxu1  ;;  %v529_v61 = vadd.f32 %v850_v57, %v773_v41  ;;  %v537_v62 = vadd.f32 %v862_v58, %v773_v41 }
 0x156   : > { %v528_v63 = vadd.f32 %v773_v41, %v407_v59  ;;  %v536_v0 = vadd.f32 %v773_v41, %v447_v60  ;;  %562 = sbr.rel (!%p1386_p5) target bundleno = 358 (0x166), region = 52  ;;  %v627_v10 = vld [vmem:[%s1307_s11 + $0x8] sm:$0xff] (%p1386_p5) }
 0x157   : > { %545 = vst [vmem:[%s1307_s11 + $0x28] sm:$0xff] %v529_v61  ;;  %553 = vst [vmem:[%s1307_s11 + $0x68] sm:$0xff] %v537_v62  ;;  %v625_v9 = vld [vmem:[%s1307_s11] sm:$0xff] (%p1386_p5)  ;;  %v643_v18 = vld [vmem:[%s1307_s11 + $0x48] sm:$0xff] (%p1386_p5) }
 0x158   : > { %v853_v1 = vpop.f32.mrb[6].mxu0  ;;  %v865_v2 = vpop.f32.mrb[6].mxu1  ;;  %544 = vst [vmem:[%s1307_s11 + $0x20] sm:$0xff] %v528_v63  ;;  %552 = vst [vmem:[%s1307_s11 + $0x60] sm:$0xff] %v536_v0  ;;  %v641_v17 = vld [vmem:[%s1307_s11 + $0x40] sm:$0xff] (%p1386_p5) }
 0x159   : > { %v417_v3 = vpop.f32.mrb[7].mxu0  ;;  %v457_v4 = vpop.f32.mrb[7].mxu1  ;;  %v531_v5 = vadd.f32 %v853_v1, %v773_v41  ;;  %v539_v6 = vadd.f32 %v865_v2, %v773_v41  ;;  %626 = vst [vmem:[%s567_s23] sm:$0xff] (%p1386_p5), %v625_v9  ;;  %628 = vst [vmem:[%s567_s23 + $0x18] sm:$0xff] (%p1386_p5), %v627_v10 }
 0x15a   : > { %v530_v7 = vadd.f32 %v773_v41, %v417_v3  ;;  %v538_v8 = vadd.f32 %v773_v41, %v457_v4  ;;  %v631_v12 = vld [vmem:[%s1307_s11 + $0x18] sm:$0xff] (%p1386_p5)  ;;  %642 = vst [vmem:[%s567_s23 + $0xc0] sm:$0xff] (%p1386_p5), %v641_v17  ;;  %644 = vst [vmem:[%s567_s23 + $0xd8] sm:$0xff] (%p1386_p5), %v643_v18 }
 0x15b   : > { %547 = vst [vmem:[%s1307_s11 + $0x38] sm:$0xff] %v531_v5  ;;  %555 = vst [vmem:[%s1307_s11 + $0x78] sm:$0xff] %v539_v6  ;;  %v629_v11 = vld [vmem:[%s1307_s11 + $0x10] sm:$0xff] (%p1386_p5)  ;;  %v647_v20 = vld [vmem:[%s1307_s11 + $0x58] sm:$0xff] (%p1386_p5) }
 0x15c   : > { %546 = vst [vmem:[%s1307_s11 + $0x30] sm:$0xff] %v530_v7  ;;  %554 = vst [vmem:[%s1307_s11 + $0x70] sm:$0xff] %v538_v8  ;;  %v645_v19 = vld [vmem:[%s1307_s11 + $0x50] sm:$0xff] (%p1386_p5) }
 0x15d   : > { %630 = vst [vmem:[%s567_s23 + $0x30] sm:$0xff] %v629_v11  ;;  %632 = vst [vmem:[%s567_s23 + $0x48] sm:$0xff] %v631_v12 }
 0x15e   : > { %v635_v14 = vld [vmem:[%s1307_s11 + $0x28] sm:$0xff]  ;;  %646 = vst [vmem:[%s567_s23 + $0xf0] sm:$0xff] %v645_v19  ;;  %648 = vst [vmem:[%s567_s23 + $0x108] sm:$0xff] %v647_v20 }
 0x15f   : > { %v633_v13 = vld [vmem:[%s1307_s11 + $0x20] sm:$0xff]  ;;  %636 = vst [vmem:[%s567_s23 + $0x78] sm:$0xff] %v635_v14  ;;  %v651_v22 = vld [vmem:[%s1307_s11 + $0x68] sm:$0xff] }
 0x160   : > { %634 = vst [vmem:[%s567_s23 + $0x60] sm:$0xff] %v633_v13  ;;  %v649_v21 = vld [vmem:[%s1307_s11 + $0x60] sm:$0xff]  ;;  %652 = vst [vmem:[%s567_s23 + $0x138] sm:$0xff] %v651_v22 }
 0x161   : > { %650 = vst [vmem:[%s567_s23 + $0x120] sm:$0xff] %v649_v21 }
 0x162   : > { %v639_v16 = vld [vmem:[%s1307_s11 + $0x38] sm:$0xff] }
 0x163   : > { %v637_v15 = vld [vmem:[%s1307_s11 + $0x30] sm:$0xff]  ;;  %640 = vst [vmem:[%s567_s23 + $0xa8] sm:$0xff] %v639_v16  ;;  %v655_v24 = vld [vmem:[%s1307_s11 + $0x78] sm:$0xff] }
 0x164   : > { %638 = vst [vmem:[%s567_s23 + $0x90] sm:$0xff] %v637_v15  ;;  %v653_v23 = vld [vmem:[%s1307_s11 + $0x70] sm:$0xff]  ;;  %656 = vst [vmem:[%s567_s23 + $0x168] sm:$0xff] %v655_v24 }
 0x165   : > { %654 = vst [vmem:[%s567_s23 + $0x150] sm:$0xff] %v653_v23 }
 0x166 PF: > { %s17_s17 = sadd.s32 1, %s1096_s17   ;;  %s1387_s12 = smov %s1080_s13 }
 0x167   : > { %p14_p9 = scmp.ge.s32.totalorder %s17_s17, 5   ;;  %s1388_s13 = smov %s1084_s14 }
 0x168   : > { %s1389_s14 = smov %s1235_s24  ;;  %s1390_s15 = smov %s1092_s16 }
 0x169   : > { %s1391_s16 = smov %s1393_s27  ;;  %16 = sbr.rel (!%p14_p9) target bundleno = 5 (0x5), region = 127 }
 0x170   :  { %672 = vsyncpa [#allocation3], 1 }
 0x171   :  { %674 = vsyncpa [#allocation3 + $0x1], 1 }
 0x172   :  { %675 = vsyncpa [#allocation5], 1 }
 0x173   :  { %677 = vsyncpa [#allocation5 + $0x1], 1 }

// kernel: attention_forward.5
= control target key start
LH: loop header
LB: loop body
LE: loop exit
PB: predicated region body
PF: predicated region fallthrough
CT: control target
= control target key end

     0   :  { %s633_s0 = inlined_call_operand.vmem [shape: f32[128,128], index: 0, kind: input, shape index: {}]   ;;  %s634_s1 = inlined_call_operand.vmem [shape: f32[128,128], index: 1, kind: input, shape index: {}]   ;;  %s635_s2 = inlined_call_operand.vmem [shape: f32[1,128], index: 2, kind: input, shape index: {}]   ;;  %s636_s3 = inlined_call_operand.hbm [shape: f32[128,128], index: 3, kind: output, shape index: {}]  }
   0x1   :  { %v67_v0 = vld [vmem:[%s634_s1] sm:$0xff]  ;;  %v68_v1 = vld [vmem:[%s634_s1 + $0x8] sm:$0xff]  ;;  %v69_v2 = vld [vmem:[%s634_s1 + $0x10] sm:$0xff] }
   0x2   :  { %v423_v3 = vpack.c.bf16 %v68_v1, %v67_v0  ;;  %v70_v4 = vld [vmem:[%s634_s1 + $0x18] sm:$0xff]  ;;  %v71_v6 = vld [vmem:[%s634_s1 + $0x20] sm:$0xff]  ;;  %v72_v7 = vld [vmem:[%s634_s1 + $0x28] sm:$0xff] }
   0x3   :  { %v427_v5 = vpack.c.bf16 %v70_v4, %v69_v2  ;;  %v431_v8 = vpack.c.bf16 %v72_v7, %v71_v6  ;;  %v51_v9 = vld [vmem:[%s633_s0] sm:$0xff]  ;;  %v73_v11 = vld [vmem:[%s634_s1 + $0x30] sm:$0xff]  ;;  %v74_v12 = vld [vmem:[%s634_s1 + $0x38] sm:$0xff] }
   0x4   :  { %424 = vmatprep.subr.bf16.mxu0 %v423_v3  ;;  %455 = vmatprep.subr.bf16.mxu1 %v423_v3  ;;  %v59_v10 = vld [vmem:[%s633_s0 + $0x40] sm:$0xff]  ;;  %v435_v13 = vpack.c.bf16 %v74_v12, %v73_v11  ;;  %v76_v15 = vld [vmem:[%s634_s1 + $0x48] sm:$0xff] }
   0x5   :  { %426 = vmatpush3.bf16.msra.mxu0 %v423_v3  ;;  %463 = vmatpush3.bf16.msra.mxu1 %v423_v3  ;;  %v75_v14 = vld [vmem:[%s634_s1 + $0x40] sm:$0xff] }
   0x6   :  { %428 = vmatprep.subr.bf16.mxu0 %v427_v5  ;;  %456 = vmatprep.subr.bf16.mxu1 %v427_v5 }
   0x7   :  { %399 = vmatprep.mubr.f32.mxu0 %v51_v9  ;;  %411 = vmatprep.mubr.f32.mxu1 %v59_v10 }
   0x9   :  { %430 = vmatpush3.bf16.msra.mxu0 %v427_v5  ;;  %464 = vmatpush3.bf16.msra.mxu1 %v427_v5 }
   0xa   :  { %432 = vmatprep.subr.bf16.mxu0 %v431_v8  ;;  %457 = vmatprep.subr.bf16.mxu1 %v431_v8 }
   0xb   :  { %8 = vsyncpa [#allocation3], 0  ;;  %v439_v16 = vpack.c.bf16 %v76_v15, %v75_v14  ;;  %v77_v17 = vld [vmem:[%s634_s1 + $0x50] sm:$0xff]  ;;  %v78_v18 = vld [vmem:[%s634_s1 + $0x58] sm:$0xff] }
   0xc   :  { %v443_v19 = vpack.c.bf16 %v78_v18, %v77_v17  ;;  %v79_v20 = vld [vmem:[%s634_s1 + $0x60] sm:$0xff]  ;;  %v80_v21 = vld [vmem:[%s634_s1 + $0x68] sm:$0xff]  ;;  %v81_v23 = vld [vmem:[%s634_s1 + $0x70] sm:$0xff] }
   0xd   :  { %434 = vmatpush3.bf16.msra.mxu0 %v431_v8  ;;  %465 = vmatpush3.bf16.msra.mxu1 %v431_v8  ;;  %v447_v22 = vpack.c.bf16 %v80_v21, %v79_v20  ;;  %v82_v24 = vld [vmem:[%s634_s1 + $0x78] sm:$0xff]  ;;  %v52_v26 = vld [vmem:[%s633_s0 + $0x8] sm:$0xff]  ;;  %v53_v28 = vld [vmem:[%s633_s0 + $0x10] sm:$0xff] }
   0xe   :  { %436 = vmatprep.subr.bf16.mxu0 %v435_v13  ;;  %458 = vmatprep.subr.bf16.mxu1 %v435_v13  ;;  %v451_v25 = vpack.c.bf16 %v82_v24, %v81_v23  ;;  %v60_v27 = vld [vmem:[%s633_s0 + $0x48] sm:$0xff]  ;;  %v61_v29 = vld [vmem:[%s633_s0 + $0x50] sm:$0xff]  ;;  %v54_v30 = vld [vmem:[%s633_s0 + $0x18] sm:$0xff] }
   0xf   :  { %v62_v31 = vld [vmem:[%s633_s0 + $0x58] sm:$0xff]  ;;  %v55_v32 = vld [vmem:[%s633_s0 + $0x20] sm:$0xff]  ;;  %v56_v34 = vld [vmem:[%s633_s0 + $0x28] sm:$0xff] }
  0x10   :  { %v63_v33 = vld [vmem:[%s633_s0 + $0x60] sm:$0xff]  ;;  %v64_v35 = vld [vmem:[%s633_s0 + $0x68] sm:$0xff]  ;;  %v57_v36 = vld [vmem:[%s633_s0 + $0x30] sm:$0xff] }
  0x11   :  { %438 = vmatpush3.bf16.msra.mxu0 %v435_v13  ;;  %466 = vmatpush3.bf16.msra.mxu1 %v435_v13  ;;  %v65_v37 = vld [vmem:[%s633_s0 + $0x70] sm:$0xff]  ;;  %v58_v38 = vld [vmem:[%s633_s0 + $0x38] sm:$0xff]  ;;  %v334_v41 = vld [vmem:[%s635_s2] ss:$0 sm:$0xff] }
  0x12   :  { %440 = vmatprep.subr.bf16.mxu0 %v439_v16  ;;  %459 = vmatprep.subr.bf16.mxu1 %v439_v16  ;;  %v66_v39 = vld [vmem:[%s633_s0 + $0x78] sm:$0xff]  ;;  %s499_s0 = smov [#allocation2]  }
  0x13   :  { %s323_s2 = sshll.u32 %s499_s0, 4  ;;  %s324_s2 = int_to_ptr.vmem [resolvable:$true] %s323_s2 }
  0x14   :  { %s475_s23 = scalar_lea.vmem %s324_s2, 2048  ;;  %p480_p1 = scmp.lt.s32.totalorder %s324_s2, %s324_s2 }
  0x15   :  { %442 = vmatpush3.bf16.msra.mxu0 %v439_v16  ;;  %467 = vmatpush3.bf16.msra.mxu1 %v439_v16  ;;  %p476_p0 = scmp.ne.s32.totalorder %s324_s2, %s475_s23  ;;  %p481_p2 = scmp.lt.s32.totalorder %s475_s23, %s475_s23 }
  0x16   :  { %444 = vmatprep.subr.bf16.mxu0 %v443_v19  ;;  %460 = vmatprep.subr.bf16.mxu1 %v443_v19 }
  0x17   :  { %p482_p3 = por %p481_p2, %p480_p1 }
  0x19   :  { %446 = vmatpush3.bf16.msra.mxu0 %v443_v19  ;;  %468 = vmatpush3.bf16.msra.mxu1 %v443_v19  ;;  %p483_p4 = pnand %p482_p3, %p476_p0 }
  0x1a   :  { %448 = vmatprep.subr.bf16.mxu0 %v447_v22  ;;  %461 = vmatprep.subr.bf16.mxu1 %v447_v22 }
  0x1d   :  { %450 = vmatpush3.bf16.msra.mxu0 %v447_v22  ;;  %469 = vmatpush3.bf16.msra.mxu1 %v447_v22 }
  0x1e   :  { %452 = vmatprep.subr.bf16.mxu0 %v451_v25  ;;  %462 = vmatprep.subr.bf16.mxu1 %v451_v25 }
  0x21   :  { %454 = vmatpush3.bf16.msra.mxu0 %v451_v25  ;;  %470 = vmatpush3.bf16.msra.mxu1 %v451_v25 }
  0x24   :  { %400 = vmatmul.mubr.f32.vlgmr.msra.gmra.mrb[0].mxu0 %v52_v26  ;;  %412 = vmatmul.mubr.f32.vlgmr.msra.gmra.mrb[0].mxu1 %v60_v27 }
  0x25   :  { %402 = vmatprep.mubr.f32.mxu0 %v53_v28  ;;  %414 = vmatprep.mubr.f32.mxu1 %v61_v29 }
  0x28   :  { %403 = vmatmul.mubr.f32.gmra.mrb[2].mxu0 %v54_v30  ;;  %415 = vmatmul.mubr.f32.gmra.mrb[2].mxu1 %v62_v31 }
  0x29   :  { %405 = vmatprep.mubr.f32.mxu0 %v55_v32  ;;  %417 = vmatprep.mubr.f32.mxu1 %v63_v33 }
  0x2c   :  { %406 = vmatmul.mubr.f32.gmra.mrb[4].mxu0 %v56_v34  ;;  %418 = vmatmul.mubr.f32.gmra.mrb[4].mxu1 %v64_v35 }
  0x2d   :  { %408 = vmatprep.mubr.f32.mxu0 %v57_v36  ;;  %420 = vmatprep.mubr.f32.mxu1 %v65_v37 }
  0x30   :  { %409 = vmatmul.mubr.f32.gmra.mrb[6].mxu0 %v58_v38  ;;  %421 = vmatmul.mubr.f32.gmra.mrb[6].mxu1 %v66_v39 }
  0xf7   :  { %v401_v40 = vpop.f32.mrb[0].mxu0  ;;  %v413_v42 = vpop.f32.mrb[0].mxu1 }
  0xf8   :  { %v149_v43 = vpop.f32.mrb[1].mxu0  ;;  %v189_v44 = vpop.f32.mrb[1].mxu1  ;;  %v287_v45 = vadd.f32 %v401_v40, %v334_v41  ;;  %v295_v46 = vadd.f32 %v413_v42, %v334_v41 }
  0xf9   :  { %v286_v47 = vadd.f32 %v334_v41, %v149_v43  ;;  %v294_v48 = vadd.f32 %v334_v41, %v189_v44 }
  0xfa   :  { %303 = vst [vmem:[#allocation2 + $0x8] sm:$0xff] %v287_v45  ;;  %311 = vst [vmem:[#allocation2 + $0x48] sm:$0xff] %v295_v46 }
  0xfb   :  { %v404_v49 = vpop.f32.mrb[2].mxu0  ;;  %v416_v50 = vpop.f32.mrb[2].mxu1  ;;  %302 = vst [vmem:[#allocation2] sm:$0xff] %v286_v47  ;;  %310 = vst [vmem:[#allocation2 + $0x40] sm:$0xff] %v294_v48 }
  0xfc   :  { %v159_v51 = vpop.f32.mrb[3].mxu0  ;;  %v199_v52 = vpop.f32.mrb[3].mxu1  ;;  %v289_v53 = vadd.f32 %v404_v49, %v334_v41  ;;  %v297_v54 = vadd.f32 %v416_v50, %v334_v41 }
  0xfd   :  { %v288_v55 = vadd.f32 %v334_v41, %v159_v51  ;;  %v296_v56 = vadd.f32 %v334_v41, %v199_v52 }
  0xfe   :  { %305 = vst [vmem:[#allocation2 + $0x18] sm:$0xff] %v289_v53  ;;  %313 = vst [vmem:[#allocation2 + $0x58] sm:$0xff] %v297_v54 }
  0xff   :  { %v407_v57 = vpop.f32.mrb[4].mxu0  ;;  %v419_v58 = vpop.f32.mrb[4].mxu1  ;;  %304 = vst [vmem:[#allocation2 + $0x10] sm:$0xff] %v288_v55  ;;  %312 = vst [vmem:[#allocation2 + $0x50] sm:$0xff] %v296_v56 }
 0x100   :  { %v169_v59 = vpop.f32.mrb[5].mxu0  ;;  %v209_v60 = vpop.f32.mrb[5].mxu1  ;;  %v291_v61 = vadd.f32 %v407_v57, %v334_v41  ;;  %v299_v62 = vadd.f32 %v419_v58, %v334_v41 }
 0x101   :  { %v290_v63 = vadd.f32 %v334_v41, %v169_v59  ;;  %v298_v0 = vadd.f32 %v334_v41, %v209_v60 }
 0x102   :  { %307 = vst [vmem:[#allocation2 + $0x28] sm:$0xff] %v291_v61  ;;  %315 = vst [vmem:[#allocation2 + $0x68] sm:$0xff] %v299_v62 }
 0x103   :  { %v410_v1 = vpop.f32.mrb[6].mxu0  ;;  %v422_v2 = vpop.f32.mrb[6].mxu1  ;;  %306 = vst [vmem:[#allocation2 + $0x20] sm:$0xff] %v290_v63  ;;  %314 = vst [vmem:[#allocation2 + $0x60] sm:$0xff] %v298_v0 }
 0x104   :  { %v179_v3 = vpop.f32.mrb[7].mxu0  ;;  %v219_v4 = vpop.f32.mrb[7].mxu1  ;;  %v293_v5 = vadd.f32 %v410_v1, %v334_v41  ;;  %v301_v6 = vadd.f32 %v422_v2, %v334_v41 }
 0x105   :  { %v292_v7 = vadd.f32 %v334_v41, %v179_v3  ;;  %v300_v8 = vadd.f32 %v334_v41, %v219_v4 }
 0x106   :  { %309 = vst [vmem:[#allocation2 + $0x38] sm:$0xff] %v293_v5  ;;  %317 = vst [vmem:[#allocation2 + $0x78] sm:$0xff] %v301_v6 }
 0x107   :  { %308 = vst [vmem:[#allocation2 + $0x30] sm:$0xff] %v292_v7  ;;  %316 = vst [vmem:[#allocation2 + $0x70] sm:$0xff] %v300_v8 }
 0x108   :  { %486 = shalt.err (!%p483_p4)
}
 0x109   :  { %s487_s25 = scalar_lea.hbm %s636_s3, 2048 }
 0x10a   :  { %p488_p5 = scmp.ne.s32.totalorder %s636_s3, %s487_s25  ;;  %p491_p6 = scmp.lt.u32.totalorder %s487_s25, %s636_s3 }
 0x10c   :  { %p493_p7 = pnand %p491_p6, %p488_p5 }
 0x10e   :  { %496 = shalt.err (!%p493_p7)
}
 0x10f   :  { %s500_s30 = smov 128   ;;  %s501_s4 = smov 8  }
 0x110   :  { %329 = dma.vmem_to_hbm [thread:$0]  %s324_s2, 2048, %s636_s3, [#allocation3], %s500_s30, %s500_s30, %s501_s4  }
 0x111   :  { %497 = dma.done.wait [#allocation3], 2048  }
 0x112   :  { %498 = vsyncadd [#allocation3], 4294965248 }
 0x113   :  { %333 = vsyncpa [#allocation3], 1 }

// kernel: attention_forward.4
= control target key start
LH: loop header
LB: loop body
LE: loop exit
PB: predicated region body
PF: predicated region fallthrough
CT: control target
= control target key end

     0   :  { %s5275_s18 = smov 0   ;;  %s5277_s19 = smov 0   ;;  %s7186_s0 = inlined_call_operand.vmem [shape: f32[2,64,384], index: 0, kind: input, shape index: {}, may-alias: {0,1,2}]   ;;  %s7187_s1 = inlined_call_operand.vmem [shape: f32[2,64,384], index: 1, kind: input, shape index: {}, may-alias: {0,1,2}]   ;;  %s7188_s2 = inlined_call_operand.vmem [shape: f32[2,64,384], index: 2, kind: input, shape index: {}, may-alias: {0,1,2}]   ;;  %s7189_s3 = inlined_call_operand.vmem [shape: f32[2,4,64,16], index: 3, kind: input, shape index: {}]   ;;  %s7190_s4 = inlined_call_operand.vmem [shape: f32[64,16], index: 4, kind: input, shape index: {}]   ;;  %s7191_s5 = inlined_call_operand.vmem [shape: f32[2,64,128], index: 5, kind: output, shape index: {}]  }
   0x1   :  { %s5279_s20 = smov 0   ;;  %s5281_s21 = smov 0  }
   0x2   :  { %s5283_s22 = smov 0  }
   0x3 LB: > { %s34_s23 = sadd.s32 1, %s5233_s21  ;;  %p50_p1 = scmp.ne.s32.totalorder %s5225_s19, %s5221_s18  ;;  %s5237_s22 = sphi %s5283_s22, %s15_s22   ;;  %s5233_s21 = sphi %s5281_s21, %s7347_s21   ;;  %s5229_s20 = sphi %s5279_s20, %s7346_s20   ;;  %s5225_s19 = sphi %s5277_s19, %s7345_s19   ;;  %s5221_s18 = sphi %s5275_s18, %s7344_s18  }
   0x4   : > { %p36_p0 = scmp.ge.s32.totalorder %s34_s23, 2  ;;  %p51_p2 = scmp.eq.s32.totalorder %s5237_s22, 0 }
   0x5   : > { %s43_s26 = sadd.s32 1, %s5225_s19  ;;  %p4127_p5 = scmp.ge.s32.totalorder %s5237_s22, 2 }
   0x6   : > { %s7349_s23 = smov (%p36_p0, %s34_s23), 0  ;;  %p5306_p3 = por %p51_p2, %p50_p1 }
   0x7   : > { %s38_s25 = ssub.s32 %s5233_s21, %s7349_s23  ;;  %212 = sbr.rel (%p4127_p5) target bundleno = 41 (0x29), region = 20 }
   0x8   : > { %p41_p4 = scmp.eq.s32.totalorder %s38_s25, 0 }
   0xa   : > { %s5314_s27 = scalar_select %p41_p4, %s5225_s19, %s43_s26  }
   0xe   : > { %215 = sbr.rel (!%p5306_p3) target bundleno = 23 (0x17), region = 24  ;;  %s217_s28 = sand.u32 (%p5306_p3), 1, %s5225_s19  }
   0xf   : > { %s4794_s29 = smul.u32 (%p5306_p3), 192, %s5233_s21  ;;  %s4128_s30 = sshll.u32 (%p5306_p3), %s217_s28, 6 }
  0x10   : > { %s219_s9 = scalar_lea.vmem (%p5306_p3), [#allocation6], %s4128_s30 }
  0x11   : > { %s225_s8 = scalar_lea.vmem (%p5306_p3), %s7186_s0, %s4794_s29 }
  0x12   : > { %v267_v0 = vld [vmem:[%s225_s8] sm:$0xff] (%p5306_p3)  ;;  %v269_v1 = vld [vmem:[%s225_s8 + $0x18] sm:$0xff] (%p5306_p3)  ;;  %v271_v2 = vld [vmem:[%s225_s8 + $0x30] sm:$0xff] (%p5306_p3) }
  0x13   : > { %268 = vst [vmem:[%s219_s9] sm:$0xff] (%p5306_p3), %v267_v0  ;;  %270 = vst [vmem:[%s219_s9 + $0x8] sm:$0xff] (%p5306_p3), %v269_v1  ;;  %v273_v3 = vld [vmem:[%s225_s8 + $0x48] sm:$0xff] (%p5306_p3)  ;;  %v275_v4 = vld [vmem:[%s225_s8 + $0x60] sm:$0xff] (%p5306_p3) }
  0x14   : > { %272 = vst [vmem:[%s219_s9 + $0x10] sm:$0xff] (%p5306_p3), %v271_v2  ;;  %v277_v5 = vld [vmem:[%s225_s8 + $0x78] sm:$0xff] (%p5306_p3)  ;;  %274 = vst [vmem:[%s219_s9 + $0x18] sm:$0xff] (%p5306_p3), %v273_v3  ;;  %v279_v6 = vld [vmem:[%s225_s8 + $0x90] sm:$0xff] (%p5306_p3) }
  0x15   : > { %276 = vst [vmem:[%s219_s9 + $0x20] sm:$0xff] %v275_v4  ;;  %278 = vst [vmem:[%s219_s9 + $0x28] sm:$0xff] %v277_v5  ;;  %v281_v7 = vld [vmem:[%s225_s8 + $0xa8] sm:$0xff] }
  0x16   : > { %280 = vst [vmem:[%s219_s9 + $0x30] sm:$0xff] %v279_v6  ;;  %282 = vst [vmem:[%s219_s9 + $0x38] sm:$0xff] %v281_v7 }
  0x17 PF: > { %288 = sbr.rel (!%p5306_p3) target bundleno = 32 (0x20), region = 62  ;;  %s290_s10 = sand.u32 (%p5306_p3), 1, %s5225_s19  }
  0x18   : > { %s4131_s11 = smul.u32 (%p5306_p3), 192, %s5233_s21  ;;  %s4130_s12 = sshll.u32 (%p5306_p3), %s290_s10, 6 }
  0x19   : > { %s292_s16 = scalar_lea.vmem (%p5306_p3), [#allocation7], %s4130_s12 }
  0x1a   : > { %s4010_s15 = scalar_lea.vmem (%p5306_p3), %s7187_s1, %s4131_s11 }
  0x1b   : > { %v4132_v8 = vld [vmem:[%s4010_s15 + $0x8] sm:$0xff] (%p5306_p3)  ;;  %v4133_v9 = vld [vmem:[%s4010_s15 + $0x20] sm:$0xff] (%p5306_p3)  ;;  %v4134_v10 = vld [vmem:[%s4010_s15 + $0x38] sm:$0xff] (%p5306_p3) }
  0x1c   : > { %342 = vst [vmem:[%s292_s16] sm:$0xff] (%p5306_p3), %v4132_v8  ;;  %344 = vst [vmem:[%s292_s16 + $0x8] sm:$0xff] (%p5306_p3), %v4133_v9  ;;  %v4135_v11 = vld [vmem:[%s4010_s15 + $0x50] sm:$0xff] (%p5306_p3)  ;;  %v4136_v12 = vld [vmem:[%s4010_s15 + $0x68] sm:$0xff] (%p5306_p3) }
  0x1d   : > { %346 = vst [vmem:[%s292_s16 + $0x10] sm:$0xff] (%p5306_p3), %v4134_v10  ;;  %v4137_v13 = vld [vmem:[%s4010_s15 + $0x80] sm:$0xff] (%p5306_p3)  ;;  %348 = vst [vmem:[%s292_s16 + $0x18] sm:$0xff] (%p5306_p3), %v4135_v11  ;;  %v4138_v14 = vld [vmem:[%s4010_s15 + $0x98] sm:$0xff] (%p5306_p3) }
  0x1e   : > { %350 = vst [vmem:[%s292_s16 + $0x20] sm:$0xff] %v4136_v12  ;;  %352 = vst [vmem:[%s292_s16 + $0x28] sm:$0xff] %v4137_v13  ;;  %v4139_v15 = vld [vmem:[%s4010_s15 + $0xb0] sm:$0xff] }
  0x1f   : > { %354 = vst [vmem:[%s292_s16 + $0x30] sm:$0xff] %v4138_v14  ;;  %356 = vst [vmem:[%s292_s16 + $0x38] sm:$0xff] %v4139_v15 }
  0x20 PF: > { %362 = sbr.rel (!%p5306_p3) target bundleno = 41 (0x29), region = 100  ;;  %s364_s17 = sand.u32 (%p5306_p3), 1, %s5225_s19  }
  0x21   : > { %s4141_s25 = smul.u32 (%p5306_p3), 192, %s5233_s21  ;;  %s4140_s26 = sshll.u32 (%p5306_p3), %s364_s17, 6 }
  0x22   : > { %s366_s6 = scalar_lea.vmem (%p5306_p3), [#allocation8], %s4140_s26 }
  0x23   : > { %s4018_s30 = scalar_lea.vmem (%p5306_p3), %s7188_s2, %s4141_s25 }
  0x24   : > { %v4142_v16 = vld [vmem:[%s4018_s30 + $0x10] sm:$0xff] (%p5306_p3)  ;;  %v4143_v17 = vld [vmem:[%s4018_s30 + $0x28] sm:$0xff] (%p5306_p3)  ;;  %v4144_v18 = vld [vmem:[%s4018_s30 + $0x40] sm:$0xff] (%p5306_p3) }
  0x25   : > { %416 = vst [vmem:[%s366_s6] sm:$0xff] (%p5306_p3), %v4142_v16  ;;  %418 = vst [vmem:[%s366_s6 + $0x8] sm:$0xff] (%p5306_p3), %v4143_v17  ;;  %v4145_v19 = vld [vmem:[%s4018_s30 + $0x58] sm:$0xff] (%p5306_p3)  ;;  %v4146_v20 = vld [vmem:[%s4018_s30 + $0x70] sm:$0xff] (%p5306_p3) }
  0x26   : > { %420 = vst [vmem:[%s366_s6 + $0x10] sm:$0xff] (%p5306_p3), %v4144_v18  ;;  %v4147_v21 = vld [vmem:[%s4018_s30 + $0x88] sm:$0xff] (%p5306_p3)  ;;  %422 = vst [vmem:[%s366_s6 + $0x18] sm:$0xff] (%p5306_p3), %v4145_v19  ;;  %v4148_v22 = vld [vmem:[%s4018_s30 + $0xa0] sm:$0xff] (%p5306_p3) }
  0x27   : > { %424 = vst [vmem:[%s366_s6 + $0x20] sm:$0xff] %v4146_v20  ;;  %426 = vst [vmem:[%s366_s6 + $0x28] sm:$0xff] %v4147_v21  ;;  %v4149_v23 = vld [vmem:[%s4018_s30 + $0xb8] sm:$0xff] }
  0x28   : > { %428 = vst [vmem:[%s366_s6 + $0x30] sm:$0xff] %v4148_v22  ;;  %430 = vst [vmem:[%s366_s6 + $0x38] sm:$0xff] %v4149_v23 }
  0x29 PF: > { %p4150_p6 = scmp.ge.s32.totalorder %s5237_s22, 1  ;;  %p448_p7 = scmp.lt.s32.totalorder %s5237_s22, 3 }
  0x2b   : > { %p449_p8 = pnand %p4150_p6, %p448_p7 }
  0x2d   : > { %452 = sbr.rel (%p449_p8) target bundleno = 2805 (0xaf5), region = 142 }
  0x34   : > { %v987_v24 = vld [vmem:[%s7190_s4] sm:$0xff]  ;;  %v988_v25 = vld [vmem:[%s7190_s4 + $0x8] sm:$0xff]  ;;  %v989_v26 = vld [vmem:[%s7190_s4 + $0x10] sm:$0xff]  ;;  %p521_p9 = scmp.lt.s32.totalorder %s5229_s20, 1  ;;  %s5239_s30 = smov 32   ;;  %vm609_vm0 = vcmask 261120  }
  0x35   : > { %v4841_v27 = vpack.i.bf16 %v988_v25, %v987_v24  ;;  %v990_v28 = vld [vmem:[%s7190_s4 + $0x18] sm:$0xff]  ;;  %v991_v29 = vld [vmem:[%s7190_s4 + $0x20] sm:$0xff]  ;;  %v992_v30 = vld [vmem:[%s7190_s4 + $0x28] sm:$0xff]  ;;  %s455_s9 = sand.u32 1, %s5221_s18   ;;  %vm706_vm1 = vcmask 392192   ;;  %vm544_vm3 = vcmask 7168  }
  0x36   : > { %v4851_v31 = vpack.i.bf16 %v992_v30, %v991_v29  ;;  %v993_v32 = vld [vmem:[%s7190_s4 + $0x30] sm:$0xff]  ;;  %v994_v33 = vld [vmem:[%s7190_s4 + $0x38] sm:$0xff]  ;;  %s7351_s20 = smov (!%p521_p9, %s5229_s20), 1  ;;  %v4846_v34 = vpack.i.bf16 %v990_v28, %v989_v26  ;;  %s5395_s10 = sshll.u32 %s455_s9, 6  ;;  %vm5422_vm2 = vmpackc.low %vm706_vm1, %vm706_vm1  ;;  %vm1206_vm4 = vcmask 523264   ;;  %vm3950_vm5 = vcmask 785408  }
  0x37   : > { %4842 = vrot.lane.b32.xlu0 %v4841_v27, %s5239_s30  ;;  %v4856_v35 = vpack.i.bf16 %v994_v33, %v993_v32  ;;  %s4280_s6 = sshll.u32 %s7351_s20, 8  ;;  %s5398_s11 = scalar_lea.vmem [#allocation7], %s5395_s10 }
  0x38   : > { %4852 = vrot.lane.b32.xlu1 %v4851_v31, %s5239_s30  ;;  %s5374_s8 = scalar_lea.vmem %s7189_s3, %s4280_s6  ;;  %v5401_v45 = vld [vmem:[%s5398_s11] sm:$0xff]  ;;  %v5404_v46 = vld [vmem:[%s5398_s11 + $0x8] sm:$0xff]  ;;  %s5411_s18 = scalar_lea.vmem [#allocation6], %s5395_s10  ;;  %v5428_v57 = vld [vmem:[%s5398_s11 + $0x10] sm:$0xff] }
  0x39   : > { %v658_v36 = vld [vmem:[%s5374_s8] sm:$0xff]  ;;  %v659_v37 = vld [vmem:[%s5374_s8 + $0x8] sm:$0xff]  ;;  %v660_v38 = vld [vmem:[%s5374_s8 + $0x10] sm:$0xff]  ;;  %s5610_s12 = scalar_lea.vmem [#allocation8], %s5395_s10  ;;  %s5243_s13 = smov 96  }
  0x3a   : > { %v661_v39 = vld [vmem:[%s5374_s8 + $0x18] sm:$0xff]  ;;  %v662_v40 = vld [vmem:[%s5374_s8 + $0x20] sm:$0xff]  ;;  %v663_v41 = vld [vmem:[%s5374_s8 + $0x28] sm:$0xff]  ;;  %s5244_s14 = smov 64   ;;  %s4281_s15 = sshll.u32 %s7351_s20, 6 }
  0x3b   : > { %4847 = vrot.lane.b32.xlu0 %v4846_v34, %s5239_s30  ;;  %v664_v42 = vld [vmem:[%s5374_s8 + $0x30] sm:$0xff]  ;;  %v665_v43 = vld [vmem:[%s5374_s8 + $0x38] sm:$0xff]  ;;  %v642_v50 = vld [vmem:[%s5411_s18] sm:$0xff]  ;;  %s7135_s25 = scalar_lea.vmem %s7191_s5, %s4281_s15 }
  0x3c   : > { %4857 = vrot.lane.b32.xlu1 %v4856_v35, %s5239_s30  ;;  %v643_v54 = vld [vmem:[%s5411_s18 + $0x8] sm:$0xff]  ;;  %v5431_v58 = vld [vmem:[%s5398_s11 + $0x18] sm:$0xff]  ;;  %v5433_v59 = vmul.f32 0.17677669, %v642_v50  ;;  %v5446_v1 = vld [vmem:[%s5398_s11 + $0x20] sm:$0xff] }
  0x3d   : > { %v5449_v2 = vld [vmem:[%s5398_s11 + $0x28] sm:$0xff]  ;;  %v5451_v3 = vmul.f32 0.17677669, %v643_v54  ;;  %v644_v4 = vld [vmem:[%s5411_s18 + $0x10] sm:$0xff]  ;;  %v645_v7 = vld [vmem:[%s5411_s18 + $0x18] sm:$0xff] }
  0x3e   : > { %v5471_v14 = vmul.f32 0.17677669, %v644_v4  ;;  %v5478_v16 = vmul.f32 0.17677669, %v645_v7  ;;  %v646_v17 = vld [vmem:[%s5411_s18 + $0x20] sm:$0xff]  ;;  %v647_v18 = vld [vmem:[%s5411_s18 + $0x28] sm:$0xff] }
  0x3f   : > { %674 = vrot.lane.b32.xlu0 %v658_v36, %s5239_s30  ;;  %v5489_v25 = vmul.f32 0.17677669, %v646_v17  ;;  %v5492_v26 = vld [vmem:[%s5398_s11 + $0x30] sm:$0xff]  ;;  %v5495_v27 = vld [vmem:[%s5398_s11 + $0x38] sm:$0xff]  ;;  %v5500_v29 = vmul.f32 0.17677669, %v647_v18 }
  0x40   : > { %676 = vrot.lane.b32.xlu1 %v659_v37, %s5239_s30  ;;  %v648_v30 = vld [vmem:[%s5411_s18 + $0x30] sm:$0xff]  ;;  %v649_v31 = vld [vmem:[%s5411_s18 + $0x38] sm:$0xff]  ;;  %v5240_v4 = vmov -inf  }
  0x41   : > { %546 = vst.msk [vmem:[#allocation2 + $0x8] sm:$0xff] %vm544_vm3, %v5240_v4  ;;  %545 = vst.msk [vmem:[#allocation2] sm:$0xff] %vm544_vm3, %v5240_v4 }
  0x42   : > { %547 = vst.msk [vmem:[#allocation2 + $0x10] sm:$0xff] %vm544_vm3, %v5240_v4  ;;  %548 = vst.msk [vmem:[#allocation2 + $0x18] sm:$0xff] %vm544_vm3, %v5240_v4 }
  0x43   : > { %678 = vrot.lane.b32.xlu0 %v660_v38, %s5239_s30  ;;  %v5517_v38 = vmul.f32 0.17677669, %v648_v30  ;;  %549 = vst.msk [vmem:[#allocation2 + $0x20] sm:$0xff] %vm544_vm3, %v5240_v4  ;;  %550 = vst.msk [vmem:[#allocation2 + $0x28] sm:$0xff] %vm544_vm3, %v5240_v4  ;;  %v5613_v30 = vld [vmem:[%s5610_s12] sm:$0xff] }
  0x44   : > { %680 = vrot.lane.b32.xlu1 %v661_v39, %s5239_s30  ;;  %551 = vst.msk [vmem:[#allocation2 + $0x30] sm:$0xff] %vm544_vm3, %v5240_v4  ;;  %552 = vst.msk [vmem:[#allocation2 + $0x38] sm:$0xff] %vm544_vm3, %v5240_v4 }
  0x45   : > { %553 = vst.msk [vmem:[#allocation2 + $0x40] sm:$0xff] %vm544_vm3, %v5240_v4  ;;  %554 = vst.msk [vmem:[#allocation2 + $0x48] sm:$0xff] %vm544_vm3, %v5240_v4 }
  0x46   : > { %555 = vst.msk [vmem:[#allocation2 + $0x50] sm:$0xff] %vm544_vm3, %v5240_v4  ;;  %556 = vst.msk [vmem:[#allocation2 + $0x58] sm:$0xff] %vm544_vm3, %v5240_v4 }
  0x47   : > { %682 = vrot.lane.b32.xlu0 %v662_v40, %s5239_s30  ;;  %v5523_v40 = vmul.f32 0.17677669, %v649_v31  ;;  %557 = vst.msk [vmem:[#allocation2 + $0x60] sm:$0xff] %vm544_vm3, %v5240_v4  ;;  %558 = vst.msk [vmem:[#allocation2 + $0x68] sm:$0xff] %vm544_vm3, %v5240_v4  ;;  %v5616_v31 = vld [vmem:[%s5610_s12 + $0x8] sm:$0xff] }
  0x48   : > { %684 = vrot.lane.b32.xlu1 %v663_v41, %s5239_s30  ;;  %559 = vst.msk [vmem:[#allocation2 + $0x70] sm:$0xff] %vm544_vm3, %v5240_v4  ;;  %560 = vst.msk [vmem:[#allocation2 + $0x78] sm:$0xff] %vm544_vm3, %v5240_v4 }
  0x49   : > { %561 = vst.msk [vmem:[#allocation2 + $0x80] sm:$0xff] %vm544_vm3, %v5240_v4  ;;  %562 = vst.msk [vmem:[#allocation2 + $0x88] sm:$0xff] %vm544_vm3, %v5240_v4 }
  0x4a   : > { %563 = vst.msk [vmem:[#allocation2 + $0x90] sm:$0xff] %vm544_vm3, %v5240_v4  ;;  %564 = vst.msk [vmem:[#allocation2 + $0x98] sm:$0xff] %vm544_vm3, %v5240_v4 }
  0x4b   : > { %686 = vrot.lane.b32.xlu0 %v664_v42, %s5239_s30  ;;  %565 = vst.msk [vmem:[#allocation2 + $0xa0] sm:$0xff] %vm544_vm3, %v5240_v4  ;;  %566 = vst.msk [vmem:[#allocation2 + $0xa8] sm:$0xff] %vm544_vm3, %v5240_v4 }
  0x4c   : > { %688 = vrot.lane.b32.xlu1 %v665_v43, %s5239_s30  ;;  %567 = vst.msk [vmem:[#allocation2 + $0xb0] sm:$0xff] %vm544_vm3, %v5240_v4  ;;  %568 = vst.msk [vmem:[#allocation2 + $0xb8] sm:$0xff] %vm544_vm3, %v5240_v4 }
  0x4d   : > { %569 = vst.msk [vmem:[#allocation2 + $0xc0] sm:$0xff] %vm544_vm3, %v5240_v4  ;;  %570 = vst.msk [vmem:[#allocation2 + $0xc8] sm:$0xff] %vm544_vm3, %v5240_v4 }
  0x4e   : > { %571 = vst.msk [vmem:[#allocation2 + $0xd0] sm:$0xff] %vm544_vm3, %v5240_v4  ;;  %572 = vst.msk [vmem:[#allocation2 + $0xd8] sm:$0xff] %vm544_vm3, %v5240_v4 }
  0x4f   : > { %573 = vst.msk [vmem:[#allocation2 + $0xe0] sm:$0xff] %vm544_vm3, %v5240_v4  ;;  %574 = vst.msk [vmem:[#allocation2 + $0xe8] sm:$0xff] %vm544_vm3, %v5240_v4 }
  0x50   : > { %575 = vst.msk [vmem:[#allocation2 + $0xf0] sm:$0xff] %vm544_vm3, %v5240_v4  ;;  %576 = vst.msk [vmem:[#allocation2 + $0xf8] sm:$0xff] %vm544_vm3, %v5240_v4 }
  0xa9   : > { %v4843_v44 = vpop.permute.xlu0 %4842 }
  0xaa   : > { %v5406_v47 = vunpack.i.h.bf16 %v4843_v44  ;;  %v5408_v48 = vunpack.i.l.bf16 %v4843_v44  ;;  %v4853_v49 = vpop.permute.xlu1 %4852 }
  0xab   : > { %v5439_v62 = vunpack.i.h.bf16 %v4853_v49  ;;  %v5441_v63 = vunpack.i.l.bf16 %v4853_v49 }
  0xac   : > { %v1028_v51 = vsel %vm609_vm0, %v5401_v45, %v5408_v48  ;;  %v1029_v52 = vsel %vm609_vm0, %v5404_v46, %v5406_v47 }
  0xad   : > { %v4634_v55 = vpack.c.bf16 %v1029_v52, %v1028_v51  ;;  %v4848_v56 = vpop.permute.xlu0 %4847  ;;  %7226 = vst [vmem:[#allocation9_spill] sm:$0xff] %v5439_v62  ;;  %7227 = vst [vmem:[#allocation10_spill] sm:$0xff] %v5441_v63  ;;  %v1032_v10 = vsel %vm609_vm0, %v5446_v1, %v5441_v63  ;;  %v1033_v11 = vsel %vm609_vm0, %v5449_v2, %v5439_v62 }
  0xae   : > { %v5435_v60 = vunpack.i.h.bf16 %v4848_v56  ;;  %v5437_v61 = vunpack.i.l.bf16 %v4848_v56  ;;  %v4858_v0 = vpop.permute.xlu1 %4857  ;;  %v4646_v19 = vpack.c.bf16 %v1033_v11, %v1032_v10 }
  0xaf   : > { %4636 = vmatprep.subr.msk.bf16.mxu0 %vm5422_vm2, %v4634_v55  ;;  %v5483_v21 = vunpack.i.h.bf16 %v4858_v0  ;;  %v5485_v22 = vunpack.i.l.bf16 %v4858_v0 }
  0xb0   : > { %4639 = vmatpush3.bf16.xpose.msk.msra.mxu0 %vm5422_vm2, %v4634_v55  ;;  %v1030_v5 = vsel %vm609_vm0, %v5428_v57, %v5437_v61  ;;  %v1031_v6 = vsel %vm609_vm0, %v5431_v58, %v5435_v60 }
  0xb1   : > { %v4640_v8 = vpack.c.bf16 %v1031_v6, %v1030_v5  ;;  %v675_v9 = vpop.permute.xlu0 %674  ;;  %7228 = vst [vmem:[#allocation11_spill] sm:$0xff] %v5483_v21  ;;  %7229 = vst [vmem:[#allocation12_spill] sm:$0xff] %v5485_v22  ;;  %v1034_v33 = vsel %vm609_vm0, %v5492_v26, %v5485_v22  ;;  %v1035_v34 = vsel %vm609_vm0, %v5495_v27, %v5483_v21 }
  0xb2   : > { %v698_v12 = vsel %vm609_vm0, %v5433_v59, %v675_v9  ;;  %v677_v13 = vpop.permute.xlu1 %676  ;;  %v4652_v41 = vpack.c.bf16 %v1035_v34, %v1034_v33  ;;  %v5621_v33 = vld [vmem:[%s5610_s12 + $0x10] sm:$0xff]  ;;  %v5624_v34 = vld [vmem:[%s5610_s12 + $0x18] sm:$0xff] }
  0xb3   : > { %4642 = vmatprep.subr.msk.bf16.mxu0 %vm5422_vm2, %v4640_v8  ;;  %707 = vst.msk [vmem:[#allocation5] sm:$0xff] %vm706_vm1, %v698_v12  ;;  %v699_v15 = vsel %vm609_vm0, %v5451_v3, %v677_v13 }
  0xb4   : > { %708 = vst.msk [vmem:[#allocation5 + $0x8] sm:$0xff] %vm706_vm1, %v699_v15 }
  0xb5   : > { %v679_v20 = vpop.permute.xlu0 %678 }
  0xb6   : > { %v700_v23 = vsel %vm609_vm0, %v5471_v14, %v679_v20  ;;  %v681_v24 = vpop.permute.xlu1 %680 }
  0xb7   : > { %709 = vst.msk [vmem:[#allocation5 + $0x10] sm:$0xff] %vm706_vm1, %v700_v23  ;;  %v701_v28 = vsel %vm609_vm0, %v5478_v16, %v681_v24 }
  0xb8   : > { %4645 = vmatpush3.bf16.xpose.msk.msra.mxu0 %vm5422_vm2, %v4640_v8  ;;  %710 = vst.msk [vmem:[#allocation5 + $0x18] sm:$0xff] %vm706_vm1, %v701_v28  ;;  %v5241_v28 = vmov 0  }
  0xb9   : > { %4648 = vmatprep.subr.msk.bf16.mxu0 %vm5422_vm2, %v4646_v19  ;;  %v683_v32 = vpop.permute.xlu0 %682  ;;  %4861 = vset.pattern.permute.xlu0 %v5241_v28 }
  0xba   : > { %v702_v35 = vsel %vm609_vm0, %v5489_v25, %v683_v32  ;;  %v685_v36 = vpop.permute.xlu1 %684  ;;  %v1036_v37 = vld [vmem:[#allocation5] sm:$0xff]  ;;  %4867 = vset.pattern.permute.xlu1 %v5241_v28  ;;  %v4658_v32 = vpack.c.bf16 %v5616_v31, %v5613_v30 }
  0xbb   : > { %711 = vst.msk [vmem:[#allocation5 + $0x20] sm:$0xff] %vm706_vm1, %v702_v35  ;;  %v703_v39 = vsel %vm609_vm0, %v5500_v29, %v685_v36  ;;  %4426 = vmatprep.mubr.msk.f32.mxu0 %vm706_vm1, %v1036_v37  ;;  %v1037_v50 = vld [vmem:[#allocation5 + $0x8] sm:$0xff]  ;;  %v5628_v35 = vpack.c.bf16 %v5624_v34, %v5621_v33  ;;  %v5242_v36 = vmov 0.0   ;;  %v5760_v37 = vpack.i.bf16 %v5404_v46, %v5401_v45  ;;  %v5778_v45 = vld [vmem:[%s5610_s12 + $0x38] sm:$0xff] }
  0xbc   : > { %712 = vst.msk [vmem:[#allocation5 + $0x28] sm:$0xff] %vm706_vm1, %v703_v39  ;;  %4659 = vmatprep.subr.bf16.mxu1 %v4658_v32  ;;  %v5765_v39 = vld [vmem:[%s5610_s12 + $0x20] sm:$0xff] }
  0xbd   : > { %v687_v42 = vpop.permute.xlu0 %686  ;;  %4661 = vmatpush3.bf16.msra.mxu1 %v4658_v32  ;;  %577 = vst.msk [vmem:[#allocation3] sm:$0xff] %vm544_vm3, %v5242_v36  ;;  %578 = vst.msk [vmem:[#allocation3 + $0x8] sm:$0xff] %vm544_vm3, %v5242_v36 }
  0xbe   : > { %v704_v43 = vsel %vm609_vm0, %v5517_v38, %v687_v42  ;;  %v689_v44 = vpop.permute.xlu1 %688  ;;  %v1038_v51 = vld [vmem:[#allocation5 + $0x10] sm:$0xff]  ;;  %579 = vst.msk [vmem:[#allocation3 + $0x10] sm:$0xff] %vm544_vm3, %v5242_v36  ;;  %580 = vst.msk [vmem:[#allocation3 + $0x18] sm:$0xff] %vm544_vm3, %v5242_v36  ;;  %4663 = vmatprep.subr.bf16.mxu1 %v5628_v35 }
  0xbf   : > { %713 = vst.msk [vmem:[#allocation5 + $0x30] sm:$0xff] %vm706_vm1, %v704_v43  ;;  %v705_v49 = vsel %vm609_vm0, %v5523_v40, %v689_v44  ;;  %v1039_v52 = vld [vmem:[#allocation5 + $0x18] sm:$0xff]  ;;  %v5775_v43 = vld [vmem:[%s5610_s12 + $0x30] sm:$0xff]  ;;  %v5782_v44 = vld [vmem:[#allocation2 + $0x8] sm:$0xff] }
  0xc0   : > { %4651 = vmatpush3.bf16.xpose.msk.msra.mxu0 %vm5422_vm2, %v4646_v19  ;;  %714 = vst.msk [vmem:[#allocation5 + $0x38] sm:$0xff] %vm706_vm1, %v705_v49  ;;  %v4670_v46 = vpack.c.bf16 %v5778_v45, %v5775_v43  ;;  %7230 = vst [vmem:[#allocation13_spill] sm:$0xff] %v5782_v44  ;;  %v5784_v49 = vld [vmem:[#allocation2] sm:$0xff] }
  0xc1   : > { %4654 = vmatprep.subr.msk.bf16.mxu0 %vm5422_vm2, %v4652_v41  ;;  %581 = vst.msk [vmem:[#allocation3 + $0x20] sm:$0xff] %vm544_vm3, %v5242_v36  ;;  %582 = vst.msk [vmem:[#allocation3 + $0x28] sm:$0xff] %vm544_vm3, %v5242_v36  ;;  %4665 = vmatpush3.bf16.msra.mxu1 %v5628_v35 }
  0xc2   : > { %v1040_v54 = vld [vmem:[#allocation5 + $0x20] sm:$0xff]  ;;  %583 = vst.msk [vmem:[#allocation3 + $0x30] sm:$0xff] %vm544_vm3, %v5242_v36  ;;  %584 = vst.msk [vmem:[#allocation3 + $0x38] sm:$0xff] %vm544_vm3, %v5242_v36 }
  0xc3   : > { %v1041_v55 = vld [vmem:[#allocation5 + $0x28] sm:$0xff]  ;;  %585 = vst.msk [vmem:[#allocation3 + $0x40] sm:$0xff] %vm544_vm3, %v5242_v36  ;;  %586 = vst.msk [vmem:[#allocation3 + $0x48] sm:$0xff] %vm544_vm3, %v5242_v36 }
  0xc4   : > { %587 = vst.msk [vmem:[#allocation3 + $0x50] sm:$0xff] %vm544_vm3, %v5242_v36  ;;  %588 = vst.msk [vmem:[#allocation3 + $0x58] sm:$0xff] %vm544_vm3, %v5242_v36 }
  0xc5   : > { %589 = vst.msk [vmem:[#allocation3 + $0x60] sm:$0xff] %vm544_vm3, %v5242_v36  ;;  %590 = vst.msk [vmem:[#allocation3 + $0x68] sm:$0xff] %vm544_vm3, %v5242_v36 }
  0xc6   : > { %v1042_v56 = vld [vmem:[#allocation5 + $0x30] sm:$0xff]  ;;  %591 = vst.msk [vmem:[#allocation3 + $0x70] sm:$0xff] %vm544_vm3, %v5242_v36  ;;  %592 = vst.msk [vmem:[#allocation3 + $0x78] sm:$0xff] %vm544_vm3, %v5242_v36 }
  0xc7   : > { %v1043_v0 = vld [vmem:[#allocation5 + $0x38] sm:$0xff]  ;;  %593 = vst.msk [vmem:[#allocation3 + $0x80] sm:$0xff] %vm544_vm3, %v5242_v36  ;;  %594 = vst.msk [vmem:[#allocation3 + $0x88] sm:$0xff] %vm544_vm3, %v5242_v36 }
  0xc8   : > { %4657 = vmatpush3.bf16.xpose.msk.msra.mxu0 %vm5422_vm2, %v4652_v41  ;;  %595 = vst.msk [vmem:[#allocation3 + $0x90] sm:$0xff] %vm544_vm3, %v5242_v36  ;;  %596 = vst.msk [vmem:[#allocation3 + $0x98] sm:$0xff] %vm544_vm3, %v5242_v36  ;;  %v5768_v41 = vld [vmem:[%s5610_s12 + $0x28] sm:$0xff] }
  0xc9   : > { %597 = vst.msk [vmem:[#allocation3 + $0xa0] sm:$0xff] %vm544_vm3, %v5242_v36  ;;  %598 = vst.msk [vmem:[#allocation3 + $0xa8] sm:$0xff] %vm544_vm3, %v5242_v36  ;;  %v4666_v42 = vpack.c.bf16 %v5768_v41, %v5765_v39 }
  0xca   : > { %599 = vst.msk [vmem:[#allocation3 + $0xb0] sm:$0xff] %vm544_vm3, %v5242_v36  ;;  %600 = vst.msk [vmem:[#allocation3 + $0xb8] sm:$0xff] %vm544_vm3, %v5242_v36 }
  0xcb   : > { %601 = vst.msk [vmem:[#allocation3 + $0xc0] sm:$0xff] %vm544_vm3, %v5242_v36  ;;  %602 = vst.msk [vmem:[#allocation3 + $0xc8] sm:$0xff] %vm544_vm3, %v5242_v36  ;;  %4667 = vmatprep.subr.bf16.mxu1 %v4666_v42 }
  0xcc   : > { %603 = vst.msk [vmem:[#allocation3 + $0xd0] sm:$0xff] %vm544_vm3, %v5242_v36  ;;  %604 = vst.msk [vmem:[#allocation3 + $0xd8] sm:$0xff] %vm544_vm3, %v5242_v36  ;;  %4669 = vmatpush3.bf16.msra.mxu1 %v4666_v42 }
  0xcd   : > { %605 = vst.msk [vmem:[#allocation3 + $0xe0] sm:$0xff] %vm544_vm3, %v5242_v36  ;;  %606 = vst.msk [vmem:[#allocation3 + $0xe8] sm:$0xff] %vm544_vm3, %v5242_v36  ;;  %4671 = vmatprep.subr.bf16.mxu1 %v4670_v46 }
  0xce   : > { %607 = vst.msk [vmem:[#allocation3 + $0xf0] sm:$0xff] %vm544_vm3, %v5242_v36  ;;  %608 = vst.msk [vmem:[#allocation3 + $0xf8] sm:$0xff] %vm544_vm3, %v5242_v36 }
  0xcf   : > { %4427 = vmatmul.mubr.msk.f32.vlgmr.msra.gmra.mrb[0].mxu0 %vm706_vm1, %v1037_v50  ;;  %610 = vst.msk [vmem:[#allocation4] sm:$0xff] %vm609_vm0, %v5242_v36  ;;  %611 = vst.msk [vmem:[#allocation4 + $0x8] sm:$0xff] %vm609_vm0, %v5242_v36 }
  0xd0   : > { %4429 = vmatprep.mubr.msk.f32.mxu0 %vm706_vm1, %v1038_v51  ;;  %612 = vst.msk [vmem:[#allocation4 + $0x10] sm:$0xff] %vm609_vm0, %v5242_v36  ;;  %613 = vst.msk [vmem:[#allocation4 + $0x18] sm:$0xff] %vm609_vm0, %v5242_v36  ;;  %4673 = vmatpush3.bf16.msra.mxu1 %v4670_v46 }
  0xd1   : > { %614 = vst.msk [vmem:[#allocation4 + $0x20] sm:$0xff] %vm609_vm0, %v5242_v36  ;;  %615 = vst.msk [vmem:[#allocation4 + $0x28] sm:$0xff] %vm609_vm0, %v5242_v36 }
  0xd2   : > { %616 = vst.msk [vmem:[#allocation4 + $0x30] sm:$0xff] %vm609_vm0, %v5242_v36  ;;  %617 = vst.msk [vmem:[#allocation4 + $0x38] sm:$0xff] %vm609_vm0, %v5242_v36 }
  0xd3   : > { %4430 = vmatmul.mubr.msk.f32.gmra.mrb[2].mxu0 %vm706_vm1, %v1039_v52  ;;  %618 = vst.msk [vmem:[#allocation4 + $0x40] sm:$0xff] %vm609_vm0, %v5242_v36  ;;  %619 = vst.msk [vmem:[#allocation4 + $0x48] sm:$0xff] %vm609_vm0, %v5242_v36 }
  0xd4   : > { %4432 = vmatprep.mubr.msk.f32.mxu0 %vm706_vm1, %v1040_v54  ;;  %620 = vst.msk [vmem:[#allocation4 + $0x50] sm:$0xff] %vm609_vm0, %v5242_v36  ;;  %621 = vst.msk [vmem:[#allocation4 + $0x58] sm:$0xff] %vm609_vm0, %v5242_v36 }
  0xd5   : > { %622 = vst.msk [vmem:[#allocation4 + $0x60] sm:$0xff] %vm609_vm0, %v5242_v36  ;;  %623 = vst.msk [vmem:[#allocation4 + $0x68] sm:$0xff] %vm609_vm0, %v5242_v36 }
  0xd6   : > { %624 = vst.msk [vmem:[#allocation4 + $0x70] sm:$0xff] %vm609_vm0, %v5242_v36  ;;  %625 = vst.msk [vmem:[#allocation4 + $0x78] sm:$0xff] %vm609_vm0, %v5242_v36 }
  0xd7   : > { %4433 = vmatmul.mubr.msk.f32.gmra.mrb[4].mxu0 %vm706_vm1, %v1041_v55  ;;  %626 = vst.msk [vmem:[#allocation4 + $0x80] sm:$0xff] %vm609_vm0, %v5242_v36  ;;  %627 = vst.msk [vmem:[#allocation4 + $0x88] sm:$0xff] %vm609_vm0, %v5242_v36  ;;  %v4164_v55 = vld [vmem:[%s5374_s8 + $0x70] sm:$0xff] }
  0xd8   : > { %4435 = vmatprep.mubr.msk.f32.mxu0 %vm706_vm1, %v1042_v56  ;;  %628 = vst.msk [vmem:[#allocation4 + $0x90] sm:$0xff] %vm609_vm0, %v5242_v36  ;;  %629 = vst.msk [vmem:[#allocation4 + $0x98] sm:$0xff] %vm609_vm0, %v5242_v36  ;;  %v5797_v56 = vld [vmem:[#allocation2 + $0x10] sm:$0xff] }
  0xd9   : > { %630 = vst.msk [vmem:[#allocation4 + $0xa0] sm:$0xff] %vm609_vm0, %v5242_v36  ;;  %631 = vst.msk [vmem:[#allocation4 + $0xa8] sm:$0xff] %vm609_vm0, %v5242_v36 }
  0xda   : > { %632 = vst.msk [vmem:[#allocation4 + $0xb0] sm:$0xff] %vm609_vm0, %v5242_v36  ;;  %633 = vst.msk [vmem:[#allocation4 + $0xb8] sm:$0xff] %vm609_vm0, %v5242_v36 }
  0xdb   : > { %4436 = vmatmul.mubr.msk.f32.gmra.mrb[6].mxu0 %vm706_vm1, %v1043_v0  ;;  %634 = vst.msk [vmem:[#allocation4 + $0xc0] sm:$0xff] %vm609_vm0, %v5242_v36  ;;  %635 = vst.msk [vmem:[#allocation4 + $0xc8] sm:$0xff] %vm609_vm0, %v5242_v36  ;;  %v4873_v0 = vpack.i.bf16 %v5449_v2, %v5446_v1 }
  0xdc   : > { %636 = vst.msk [vmem:[#allocation4 + $0xd0] sm:$0xff] %vm609_vm0, %v5242_v36  ;;  %637 = vst.msk [vmem:[#allocation4 + $0xd8] sm:$0xff] %vm609_vm0, %v5242_v36 }
  0xdd   : > { %638 = vst.msk [vmem:[#allocation4 + $0xe0] sm:$0xff] %vm609_vm0, %v5242_v36  ;;  %639 = vst.msk [vmem:[#allocation4 + $0xe8] sm:$0xff] %vm609_vm0, %v5242_v36 }
  0xde   : > { %640 = vst.msk [vmem:[#allocation4 + $0xf0] sm:$0xff] %vm609_vm0, %v5242_v36  ;;  %641 = vst.msk [vmem:[#allocation4 + $0xf8] sm:$0xff] %vm609_vm0, %v5242_v36 }
 0x1a2   : > { %v5577_v5 = vpop.f32.mrb[0].mxu0 }
 0x1a3   : > { %v5579_v6 = vpop.f32.mrb[1].mxu0  ;;  %v1210_v7 = vsel %vm1206_vm4, %v5577_v5, -inf }
 0x1a4   : > { %1211 = vmax.xlane.f32.xlu1 %v1210_v7  ;;  %v1207_v8 = vsel %vm1206_vm4, %v5579_v6, -inf  ;;  %v4868_v7 = vpack.i.bf16 %v5431_v58, %v5428_v57 }
 0x1a5   : > { %1208 = vmax.xlane.f32.xlu0 %v1207_v8 }
 0x1a6   : > { %v5585_v9 = vpop.f32.mrb[2].mxu0 }
 0x1a7   : > { %v5587_v10 = vpop.f32.mrb[3].mxu0  ;;  %v1216_v15 = vsel %vm1206_vm4, %v5585_v9, -inf }
 0x1a8   : > { %v1213_v11 = vsel %vm1206_vm4, %v5587_v10, -inf }
 0x1a9   : > { %1214 = vmax.xlane.f32.xlu0 %v1213_v11 }
 0x1aa   : > { %v5591_v12 = vpop.f32.mrb[4].mxu0 }
 0x1ab   : > { %v5593_v13 = vpop.f32.mrb[5].mxu0  ;;  %v1222_v19 = vsel %vm1206_vm4, %v5591_v12, -inf }
 0x1ac   : > { %v1219_v17 = vsel %vm1206_vm4, %v5593_v13, -inf }
 0x1ad   : > { %1217 = vmax.xlane.f32.xlu0 %v1216_v15  ;;  %1220 = vmax.xlane.f32.xlu1 %v1219_v17  ;;  %v5811_v15 = vld [vmem:[#allocation2 + $0x18] sm:$0xff]  ;;  %v5813_v17 = vld [vmem:[#allocation2 + $0x20] sm:$0xff] }
 0x1ae   : > { %v5599_v18 = vpop.f32.mrb[6].mxu0  ;;  %7232 = vst [vmem:[#allocation15_spill] sm:$0xff] %v5813_v17 }
 0x1af   : > { %v5603_v20 = vpop.f32.mrb[7].mxu0  ;;  %v1228_v24 = vsel %vm1206_vm4, %v5599_v18, -inf }
 0x1b0   : > { %v1225_v23 = vsel %vm1206_vm4, %v5603_v20, -inf }
 0x1b1   : > { %1226 = vmax.xlane.f32.xlu1 %v1225_v23  ;;  %1223 = vmax.xlane.f32.xlu0 %v1222_v19  ;;  %v5827_v23 = vld [vmem:[#allocation2 + $0x30] sm:$0xff] }
 0x1b2   : > { %7234 = vst [vmem:[#allocation17_spill] sm:$0xff] %v5827_v23 }
 0x1b5   : > { %1229 = vmax.xlane.f32.xlu0 %v1228_v24  ;;  %v5829_v24 = vld [vmem:[#allocation2 + $0x28] sm:$0xff] }
 0x1c2   : > { %4863 = vrot.lane.b32.xlu1 %v5760_v37, %s5243_s13 }
 0x231   : > { %v1212_v50 = vpop.xlane.xlu1 %1211 }
 0x232   : > { %v5787_v51 = vmax.f32 %v5782_v44, %v1212_v50  ;;  %v1209_v52 = vpop.xlane.xlu0 %1208 }
 0x233   : > { %v5790_v54 = vmax.f32 %v5784_v49, %v1209_v52 }
 0x234   : > { %7231 = vst [vmem:[#allocation14_spill] sm:$0xff] %v5787_v51  ;;  %1586 = vst.msk [vmem:[#allocation2 + $0x8] sm:$0xff] %vm544_vm3, %v5787_v51  ;;  %1270 = vperm.xlu0 %4861, %v5787_v51  }
 0x235   : > { %1585 = vst.msk [vmem:[#allocation2] sm:$0xff] %vm544_vm3, %v5790_v54  ;;  %1265 = vperm.xlu1 %4867, %v5790_v54  }
 0x236   : > { %v1215_v8 = vpop.xlane.xlu0 %1214 }
 0x237   : > { %v5809_v11 = vmax.f32 %v5797_v56, %v1215_v8 }
 0x238   : > { %4874 = vrot.lane.b32.xlu0 %v4873_v0, %s5243_s13  ;;  %v5859_v0 = vld [vmem:[#allocation2 + $0x38] sm:$0xff] }
 0x239   : > { %1587 = vst.msk [vmem:[#allocation2 + $0x10] sm:$0xff] %vm544_vm3, %v5809_v11  ;;  %4869 = vrot.lane.b32.xlu1 %v4868_v7, %s5243_s13 }
 0x23a   : > { %v1218_v2 = vpop.xlane.xlu0 %1217  ;;  %v1221_v57 = vpop.xlane.xlu1 %1220 }
 0x23b   : > { %v5822_v58 = vmax.f32 %v5811_v15, %v1218_v2  ;;  %v5825_v19 = vmax.f32 %v5813_v17, %v1221_v57 }
 0x23c   : > { %732 = vrot.lane.b32.xlu0 %v5433_v59, %s5243_s13 }
 0x23d   : > { %7233 = vst [vmem:[#allocation16_spill] sm:$0xff] %v5825_v19  ;;  %1588 = vst.msk [vmem:[#allocation2 + $0x18] sm:$0xff] %vm544_vm3, %v5822_v58  ;;  %1280 = vperm.xlu1 %4867, %v5822_v58  }
 0x23e   : > { %1589 = vst.msk [vmem:[#allocation2 + $0x20] sm:$0xff] %vm544_vm3, %v5825_v19  ;;  %v1227_v35 = vpop.xlane.xlu1 %1226  ;;  %v1224_v36 = vpop.xlane.xlu0 %1223 }
 0x23f   : > { %v5843_v42 = vmax.f32 %v5827_v23, %v1227_v35  ;;  %v5846_v46 = vmax.f32 %v5829_v24, %v1224_v36 }
 0x240   : > { %734 = vrot.lane.b32.xlu0 %v5451_v3, %s5243_s13 }
 0x241   : > { %7235 = vst [vmem:[#allocation18_spill] sm:$0xff] %v5843_v42  ;;  %1591 = vst.msk [vmem:[#allocation2 + $0x30] sm:$0xff] %vm544_vm3, %v5843_v42  ;;  %1275 = vperm.xlu1 %4867, %v5809_v11  }
 0x242   : > { %1590 = vst.msk [vmem:[#allocation2 + $0x28] sm:$0xff] %vm544_vm3, %v5846_v46  ;;  %v4864_v7 = vpop.permute.xlu1 %4863  ;;  %v1230_v8 = vpop.xlane.xlu0 %1229 }
 0x243   : > { %v4866_v2 = vunpack.i.h.bf16 %v4864_v7  ;;  %v4865_v57 = vunpack.i.l.bf16 %v4864_v7  ;;  %v5862_v35 = vmax.f32 %v5859_v0, %v1230_v8  ;;  %v4158_v8 = vld [vmem:[%s5374_s8 + $0x40] sm:$0xff]  ;;  %v4165_v7 = vld [vmem:[%s5374_s8 + $0x78] sm:$0xff] }
 0x244   : > { %736 = vrot.lane.b32.xlu0 %v5471_v14, %s5243_s13 }
 0x245   : > { %v1626_v36 = vsel %vm609_vm0, %v4866_v2, %v5406_v47  ;;  %v1625_v50 = vsel %vm609_vm0, %v4865_v57, %v5408_v48  ;;  %1290 = vperm.xlu1 %4867, %v5846_v46   ;;  %1592 = vst.msk [vmem:[#allocation2 + $0x38] sm:$0xff] %vm544_vm3, %v5862_v35  ;;  %v4159_v2 = vld [vmem:[%s5374_s8 + $0x48] sm:$0xff]  ;;  %v4160_v57 = vld [vmem:[%s5374_s8 + $0x50] sm:$0xff] }
 0x246   : > { %v4674_v32 = vpack.c.bf16 %v1626_v36, %v1625_v50  ;;  %v5888_v50 = vpack.i.bf16 %v5495_v27, %v5492_v26  ;;  %v4161_v26 = vld [vmem:[%s5374_s8 + $0x58] sm:$0xff]  ;;  %v4162_v27 = vld [vmem:[%s5374_s8 + $0x60] sm:$0xff]  ;;  %v4163_v36 = vld [vmem:[%s5374_s8 + $0x68] sm:$0xff] }
 0x248   : > { %4676 = vmatprep.subr.msk.bf16.mxu1 %vm5422_vm2, %v4674_v32  ;;  %738 = vrot.lane.b32.xlu0 %v5478_v16, %s5243_s13 }
 0x249   : > { %1285 = vperm.xlu1 %4867, %v5825_v19  }
 0x24c   : > { %740 = vrot.lane.b32.xlu0 %v5489_v25, %s5243_s13 }
 0x24d   : > { %1295 = vperm.xlu1 %4867, %v5843_v42  }
 0x250   : > { %742 = vrot.lane.b32.xlu0 %v5500_v29, %s5243_s13 }
 0x251   : > { %1300 = vperm.xlu1 %4867, %v5862_v35  }
 0x254   : > { %744 = vrot.lane.b32.xlu0 %v5517_v38, %s5243_s13 }
 0x255   : > { %4879 = vrot.lane.b32.xlu1 %v5888_v50, %s5243_s13 }
 0x258   : > { %746 = vrot.lane.b32.xlu0 %v5523_v40, %s5243_s13 }
 0x259   : > { %764 = vrot.lane.b32.xlu1 %v4158_v8, %s5239_s30 }
 0x25d   : > { %766 = vrot.lane.b32.xlu1 %v4159_v2, %s5239_s30 }
 0x261   : > { %768 = vrot.lane.b32.xlu1 %v4160_v57, %s5239_s30 }
 0x265   : > { %770 = vrot.lane.b32.xlu1 %v4161_v26, %s5239_s30 }
 0x269   : > { %772 = vrot.lane.b32.xlu1 %v4162_v27, %s5239_s30 }
 0x26d   : > { %774 = vrot.lane.b32.xlu1 %v4163_v36, %s5239_s30 }
 0x271   : > { %776 = vrot.lane.b32.xlu1 %v4164_v55, %s5239_s30 }
 0x275   : > { %778 = vrot.lane.b32.xlu1 %v4165_v7, %s5239_s30 }
 0x2b3   : > { %v1271_v8 = vpop.permute.xlu0 %1270 }
 0x2b4   : > { %v1304_v2 = vsub.f32 %v5577_v5, %v1271_v8  ;;  %v1266_v52 = vpop.permute.xlu1 %1265 }
 0x2b5   : > { %v1303_v57 = vsub.f32 %v5579_v6, %v1266_v52 }
 0x2b6   : > { %v1313_v28 = vmul.f32 1.442695, %v1304_v2 }
 0x2b7   : > { %v1311_v26 = vmul.f32 1.442695, %v1303_v57  ;;  %v4875_v8 = vpop.permute.xlu0 %4874 }
 0x2b8   : > { %v4870_v1 = vpop.permute.xlu1 %4869 }
 0x2b9   : > { %4983 = vpow2.f32 %v1311_v26  ;;  %v4872_v4 = vunpack.i.h.bf16 %v4870_v1  ;;  %v4871_v36 = vunpack.i.l.bf16 %v4870_v1  ;;  %v4876_v1 = vunpack.i.l.bf16 %v4875_v8 }
 0x2ba   : > { %4985 = vpow2.f32 %v1313_v28 }
 0x2bb   : > { %v1628_v7 = vsel %vm609_vm0, %v4872_v4, %v5435_v60  ;;  %v1627_v5 = vsel %vm609_vm0, %v4871_v36, %v5437_v61  ;;  %v4877_v4 = vunpack.i.h.bf16 %v4875_v8  ;;  %v733_v57 = vpop.permute.xlu0 %732  ;;  %v1629_v36 = vsel %vm609_vm0, %v4876_v1, %v5441_v63 }
 0x2bc   : > { %v1281_v27 = vpop.permute.xlu1 %1280 }
 0x2bd   : > { %v1306_v42 = vsub.f32 %v5585_v9, %v1281_v27  ;;  %v1630_v27 = vsel %vm609_vm0, %v4877_v4, %v5439_v62 }
 0x2bf   : > { %v1317_v6 = vmul.f32 1.442695, %v1306_v42 }
 0x2c0   : > { %v1276_v55 = vpop.permute.xlu1 %1275 }
 0x2c1   : > { %v1305_v23 = vsub.f32 %v5587_v10, %v1276_v55  ;;  %v4680_v10 = vpack.c.bf16 %v1628_v7, %v1627_v5 }
 0x2c3   : > { %v5920_v52 = vpop.eup %4983  ;;  %v1315_v2 = vmul.f32 1.442695, %v1305_v23 }
 0x2c4   : > { %v5922_v28 = vpop.eup %4985  ;;  %4454 = vmatprep.mubr.msk.f32.mxu1 %vm1206_vm4, %v5920_v52  ;;  %v1291_v9 = vpop.permute.xlu1 %1290 }
 0x2c5   : > { %4987 = vpow2.f32 %v1315_v2  ;;  %4455 = vmatmul.mubr.msk.f32.vlgmr.msra.gmra.mrb[0].mxu1 %vm1206_vm4, %v5922_v28  ;;  %v1308_v42 = vsub.f32 %v5591_v12, %v1291_v9 }
 0x2c6   : > { %4989 = vpow2.f32 %v1317_v6  ;;  %4679 = vmatpush3.bf16.xpose.msk.msra.mxu1 %vm5422_vm2, %v4674_v32  ;;  %v4686_v32 = vpack.c.bf16 %v1630_v27, %v1629_v36  ;;  %v735_v6 = vpop.permute.xlu0 %734 }
 0x2c7   : > { %4682 = vmatprep.subr.msk.bf16.mxu1 %vm5422_vm2, %v4680_v10  ;;  %v1321_v55 = vmul.f32 1.442695, %v1308_v42 }
 0x2c8   : > { %v1286_v23 = vpop.permute.xlu1 %1285 }
 0x2c9   : > { %v1307_v26 = vsub.f32 %v5593_v13, %v1286_v23 }
 0x2ca   : > { %v737_v1 = vpop.permute.xlu0 %736 }
 0x2cb   : > { %v1319_v7 = vmul.f32 1.442695, %v1307_v26 }
 0x2cc   : > { %v1296_v5 = vpop.permute.xlu1 %1295 }
 0x2cd   : > { %4991 = vpow2.f32 %v1319_v7  ;;  %v1309_v12 = vsub.f32 %v5603_v20, %v1296_v5 }
 0x2ce   : > { %4993 = vpow2.f32 %v1321_v55  ;;  %4685 = vmatpush3.bf16.xpose.msk.msra.mxu1 %vm5422_vm2, %v4680_v10 }
 0x2cf   : > { %v5941_v8 = vpop.eup %4987  ;;  %v1323_v13 = vmul.f32 1.442695, %v1309_v12  ;;  %4688 = vmatprep.subr.msk.bf16.mxu1 %vm5422_vm2, %v4686_v32  ;;  %v739_v12 = vpop.permute.xlu0 %738 }
 0x2d0   : > { %v5945_v2 = vpop.eup %4989  ;;  %4457 = vmatprep.mubr.msk.f32.mxu1 %vm1206_vm4, %v5941_v8  ;;  %v1301_v9 = vpop.permute.xlu1 %1300 }
 0x2d1   : > { %4995 = vpow2.f32 %v1323_v13  ;;  %v1310_v20 = vsub.f32 %v5599_v18, %v1301_v9  ;;  %4458 = vmatmul.mubr.msk.f32.gmra.mrb[2].mxu1 %vm1206_vm4, %v5945_v2 }
 0x2d3   : > { %v1325_v10 = vmul.f32 1.442695, %v1310_v20 }
 0x2d4   : > { %v4880_v4 = vpop.permute.xlu1 %4879 }
 0x2d5   : > { %4997 = vpow2.f32 %v1325_v10  ;;  %v4882_v42 = vunpack.i.h.bf16 %v4880_v4  ;;  %v4881_v23 = vunpack.i.l.bf16 %v4880_v4  ;;  %v741_v10 = vpop.permute.xlu0 %740 }
 0x2d6   : > { %4691 = vmatpush3.bf16.xpose.msk.msra.mxu1 %vm5422_vm2, %v4686_v32 }
 0x2d7   : > { %v5954_v26 = vpop.eup %4991  ;;  %v1632_v27 = vsel %vm609_vm0, %v4882_v42, %v5483_v21  ;;  %v1631_v18 = vsel %vm609_vm0, %v4881_v23, %v5485_v22 }
 0x2d8   : > { %v5960_v36 = vpop.eup %4993  ;;  %4460 = vmatprep.mubr.msk.f32.mxu1 %vm1206_vm4, %v5954_v26  ;;  %v765_v55 = vpop.permute.xlu1 %764  ;;  %v4692_v7 = vpack.c.bf16 %v1632_v27, %v1631_v18 }
 0x2d9   : > { %v788_v5 = vsel %vm609_vm0, %v733_v57, %v765_v55  ;;  %4461 = vmatmul.mubr.msk.f32.gmra.mrb[4].mxu1 %vm1206_vm4, %v5960_v36  ;;  %v743_v18 = vpop.permute.xlu0 %742 }
 0x2da   : > { %797 = vst.msk [vmem:[#allocation5 + $0x40] sm:$0xff] %vm706_vm1, %v788_v5  ;;  %4694 = vmatprep.subr.msk.bf16.mxu1 %vm5422_vm2, %v4692_v7 }
 0x2db   : > { %v5970_v32 = vpop.eup %4995 }
 0x2dc   : > { %4463 = vmatprep.mubr.msk.f32.mxu1 %vm1206_vm4, %v5970_v32  ;;  %v767_v13 = vpop.permute.xlu1 %766 }
 0x2dd   : > { %v789_v9 = vsel %vm609_vm0, %v735_v6, %v767_v13  ;;  %v745_v13 = vpop.permute.xlu0 %744 }
 0x2de   : > { %798 = vst.msk [vmem:[#allocation5 + $0x48] sm:$0xff] %vm706_vm1, %v789_v9  ;;  %4697 = vmatpush3.bf16.xpose.msk.msra.mxu1 %vm5422_vm2, %v4692_v7 }
 0x2df   : > { %v5978_v57 = vpop.eup %4997 }
 0x2e0   : > { %4464 = vmatmul.mubr.msk.f32.gmra.mrb[6].mxu1 %vm1206_vm4, %v5978_v57  ;;  %v769_v20 = vpop.permute.xlu1 %768 }
 0x2e1   : > { %v790_v4 = vsel %vm609_vm0, %v737_v1, %v769_v20  ;;  %v1634_v42 = vld [vmem:[#allocation5 + $0x40] sm:$0xff] }
 0x2e2   : > { %799 = vst.msk [vmem:[#allocation5 + $0x50] sm:$0xff] %vm706_vm1, %v790_v4  ;;  %4482 = vmatprep.mubr.msk.f32.mxu1 %vm706_vm1, %v1634_v42 }
 0x2e4   : > { %v771_v6 = vpop.permute.xlu1 %770 }
 0x2e5   : > { %v791_v23 = vsel %vm609_vm0, %v739_v12, %v771_v6  ;;  %v1635_v27 = vld [vmem:[#allocation5 + $0x48] sm:$0xff] }
 0x2e6   : > { %800 = vst.msk [vmem:[#allocation5 + $0x58] sm:$0xff] %vm706_vm1, %v791_v23  ;;  %4483 = vmatmul.mubr.msk.f32.vlgmr.msra.gmra.mrb[8].mxu1 %vm706_vm1, %v1635_v27 }
 0x2e8   : > { %v773_v55 = vpop.permute.xlu1 %772 }
 0x2e9   : > { %v792_v7 = vsel %vm609_vm0, %v741_v10, %v773_v55  ;;  %v1636_v5 = vld [vmem:[#allocation5 + $0x50] sm:$0xff]  ;;  %v747_v10 = vpop.permute.xlu0 %746 }
 0x2ea   : > { %801 = vst.msk [vmem:[#allocation5 + $0x60] sm:$0xff] %vm706_vm1, %v792_v7  ;;  %4485 = vmatprep.mubr.msk.f32.mxu1 %vm706_vm1, %v1636_v5 }
 0x2ec   : > { %v775_v1 = vpop.permute.xlu1 %774 }
 0x2ed   : > { %v793_v9 = vsel %vm609_vm0, %v743_v18, %v775_v1  ;;  %v1637_v20 = vld [vmem:[#allocation5 + $0x58] sm:$0xff] }
 0x2ee   : > { %802 = vst.msk [vmem:[#allocation5 + $0x68] sm:$0xff] %vm706_vm1, %v793_v9  ;;  %4486 = vmatmul.mubr.msk.f32.gmra.mrb[10].mxu1 %vm706_vm1, %v1637_v20 }
 0x2f0   : > { %v777_v12 = vpop.permute.xlu1 %776 }
 0x2f1   : > { %v794_v4 = vsel %vm609_vm0, %v745_v13, %v777_v12  ;;  %v1638_v42 = vld [vmem:[#allocation5 + $0x60] sm:$0xff] }
 0x2f2   : > { %803 = vst.msk [vmem:[#allocation5 + $0x70] sm:$0xff] %vm706_vm1, %v794_v4  ;;  %4488 = vmatprep.mubr.msk.f32.mxu1 %vm706_vm1, %v1638_v42 }
 0x2f4   : > { %v779_v6 = vpop.permute.xlu1 %778 }
 0x2f5   : > { %v795_v23 = vsel %vm609_vm0, %v747_v10, %v779_v6  ;;  %v1639_v27 = vld [vmem:[#allocation5 + $0x68] sm:$0xff] }
 0x2f6   : > { %804 = vst.msk [vmem:[#allocation5 + $0x78] sm:$0xff] %vm706_vm1, %v795_v23  ;;  %4489 = vmatmul.mubr.msk.f32.gmra.mrb[12].mxu1 %vm706_vm1, %v1639_v27 }
 0x2f9   : > { %v1640_v18 = vld [vmem:[#allocation5 + $0x70] sm:$0xff] }
 0x2fa   : > { %4491 = vmatprep.mubr.msk.f32.mxu1 %vm706_vm1, %v1640_v18 }
 0x2fd   : > { %v1641_v55 = vld [vmem:[#allocation5 + $0x78] sm:$0xff] }
 0x2fe   : > { %4492 = vmatmul.mubr.msk.f32.gmra.mrb[14].mxu1 %vm706_vm1, %v1641_v55 }
 0x398   : > { %v6002_v7 = vpop.f32.mrb[0].mxu1 }
 0x399   : > { %7236 = vst [vmem:[#allocation19_spill] sm:$0xff] %v6002_v7  ;;  %v6004_v5 = vpop.f32.mrb[1].mxu1 }
 0x39a   : > { %7237 = vst [vmem:[#allocation20_spill] sm:$0xff] %v6004_v5 }
 0x3a4   : > { %v6006_v1 = vpop.f32.mrb[2].mxu1 }
 0x3a5   : > { %7238 = vst [vmem:[#allocation21_spill] sm:$0xff] %v6006_v1  ;;  %v6008_v13 = vpop.f32.mrb[3].mxu1  ;;  %v4883_v1 = vpack.i.bf16 %v5616_v31, %v5613_v30  ;;  %v4888_v30 = vpack.i.bf16 %v5624_v34, %v5621_v33  ;;  %v5176_v31 = vld [vmem:[%s5398_s11 + $0x18] sm:$0xff] }
 0x3a6   : > { %7239 = vst [vmem:[#allocation22_spill] sm:$0xff] %v6008_v13  ;;  %v6053_v13 = vld [vmem:[#allocation2 + $0x48] sm:$0xff] }
 0x3a7   : > { %7244 = vst [vmem:[#allocation27_spill] sm:$0xff] %v6053_v13 }
 0x3ac   : > { %v6010_v9 = vpop.f32.mrb[4].mxu1 }
 0x3ad   : > { %7240 = vst [vmem:[#allocation23_spill] sm:$0xff] %v6010_v9  ;;  %v6012_v20 = vpop.f32.mrb[5].mxu1 }
 0x3ae   : > { %7241 = vst [vmem:[#allocation24_spill] sm:$0xff] %v6012_v20 }
 0x3b3   : > { %v6014_v12 = vpop.f32.mrb[6].mxu1 }
 0x3b4   : > { %7242 = vst [vmem:[#allocation25_spill] sm:$0xff] %v6014_v12  ;;  %v6016_v4 = vpop.f32.mrb[7].mxu1 }
 0x3b5   : > { %7243 = vst [vmem:[#allocation26_spill] sm:$0xff] %v6016_v4 }
 0x3b9   : > { %v6018_v42 = vpop.f32.mrb[8].mxu1 }
 0x3ba   : > { %v6020_v10 = vpop.f32.mrb[9].mxu1  ;;  %v1807_v6 = vsel %vm1206_vm4, %v6018_v42, -inf }
 0x3bb   : > { %1808 = vmax.xlane.f32.xlu1 %v1807_v6  ;;  %v1804_v23 = vsel %vm1206_vm4, %v6020_v10, -inf }
 0x3bc   : > { %1805 = vmax.xlane.f32.xlu0 %v1804_v23 }
 0x3c1   : > { %v6026_v27 = vpop.f32.mrb[10].mxu1 }
 0x3c2   : > { %v6028_v18 = vpop.f32.mrb[11].mxu1  ;;  %v1813_v4 = vsel %vm1206_vm4, %v6026_v27, -inf }
 0x3c3   : > { %v1810_v55 = vsel %vm1206_vm4, %v6028_v18, -inf }
 0x3c4   : > { %1811 = vmax.xlane.f32.xlu0 %v1810_v55 }
 0x3c8   : > { %1814 = vmax.xlane.f32.xlu0 %v1813_v4 }
 0x3c9   : > { %v6034_v20 = vpop.f32.mrb[12].mxu1 }
 0x3ca   : > { %v6036_v7 = vpop.f32.mrb[13].mxu1  ;;  %v1819_v6 = vsel %vm1206_vm4, %v6034_v20, -inf }
 0x3cb   : > { %v1816_v23 = vsel %vm1206_vm4, %v6036_v7, -inf }
 0x3cc   : > { %1817 = vmax.xlane.f32.xlu1 %v1816_v23  ;;  %1820 = vmax.xlane.f32.xlu0 %v1819_v6  ;;  %v6055_v6 = vld [vmem:[#allocation2 + $0x40] sm:$0xff] }
 0x3d1   : > { %v6042_v12 = vpop.f32.mrb[14].mxu1 }
 0x3d2   : > { %v6044_v9 = vpop.f32.mrb[15].mxu1  ;;  %v1825_v55 = vsel %vm1206_vm4, %v6042_v12, -inf }
 0x3d3   : > { %v1822_v4 = vsel %vm1206_vm4, %v6044_v9, -inf  ;;  %1826 = vmax.xlane.f32.xlu0 %v1825_v55 }
 0x3d4   : > { %1823 = vmax.xlane.f32.xlu1 %v1822_v4  ;;  %v4898_v4 = vpack.i.bf16 %v5778_v45, %v5775_v43  ;;  %v6098_v43 = vld [vmem:[#allocation2 + $0x60] sm:$0xff]  ;;  %v6100_v45 = vld [vmem:[#allocation2 + $0x68] sm:$0xff] }
 0x3d5   : > { %7250 = vst [vmem:[#allocation33_spill] sm:$0xff] %v6098_v43  ;;  %7251 = vst [vmem:[#allocation34_spill] sm:$0xff] %v6100_v45 }
 0x3e5   : > { %4884 = vrot.lane.b32.xlu1 %v4883_v1, %s5243_s13  ;;  %v6078_v1 = vld [vmem:[#allocation2 + $0x50] sm:$0xff] }
 0x3e6   : > { %7246 = vst [vmem:[#allocation29_spill] sm:$0xff] %v6078_v1 }
 0x448   : > { %v1809_v23 = vpop.xlane.xlu1 %1808 }
 0x449   : > { %v6058_v5 = vmax.f32 %v6053_v13, %v1809_v23  ;;  %v1806_v19 = vpop.xlane.xlu0 %1805  ;;  %v6087_v23 = vld [vmem:[#allocation2 + $0x58] sm:$0xff] }
 0x44a   : > { %v6061_v17 = vmax.f32 %v6055_v6, %v1806_v19  ;;  %v4893_v19 = vpack.i.bf16 %v5768_v41, %v5765_v39  ;;  %7248 = vst [vmem:[#allocation31_spill] sm:$0xff] %v6087_v23  ;;  %v5175_v39 = vld [vmem:[%s5398_s11 + $0x10] sm:$0xff] }
 0x44b   : > { %7245 = vst [vmem:[#allocation28_spill] sm:$0xff] %v6058_v5  ;;  %2216 = vst.msk [vmem:[#allocation2 + $0x48] sm:$0xff] %vm544_vm3, %v6058_v5  ;;  %1867 = vperm.xlu1 %4867, %v6058_v5  }
 0x44c   : > { %2215 = vst.msk [vmem:[#allocation2 + $0x40] sm:$0xff] %vm544_vm3, %v6061_v17  ;;  %1862 = vperm.xlu0 %4861, %v6061_v17  }
 0x44f   : > { %4889 = vrot.lane.b32.xlu1 %v4888_v30, %s5243_s13 }
 0x450   : > { %4894 = vrot.lane.b32.xlu0 %v4893_v19, %s5243_s13 }
 0x451   : > { %v1812_v33 = vpop.xlane.xlu0 %1811 }
 0x452   : > { %v6084_v34 = vmax.f32 %v6078_v1, %v1812_v33 }
 0x453   : > { %4899 = vrot.lane.b32.xlu1 %v4898_v4, %s5243_s13 }
 0x454   : > { %7247 = vst [vmem:[#allocation30_spill] sm:$0xff] %v6084_v34  ;;  %2217 = vst.msk [vmem:[#allocation2 + $0x50] sm:$0xff] %vm544_vm3, %v6084_v34 }
 0x455   : > { %v1815_v41 = vpop.xlane.xlu0 %1814 }
 0x456   : > { %v6094_v30 = vmax.f32 %v6087_v23, %v1815_v41 }
 0x457   : > { %4904 = vrot.lane.b32.xlu1 %v5760_v37, %s5244_s14 }
 0x458   : > { %7249 = vst [vmem:[#allocation32_spill] sm:$0xff] %v6094_v30  ;;  %2218 = vst.msk [vmem:[#allocation2 + $0x58] sm:$0xff] %vm544_vm3, %v6094_v30  ;;  %1877 = vperm.xlu0 %4861, %v6094_v30   ;;  %v6130_v30 = vpack.i.bf16 %v5176_v31, %v5175_v39  ;;  %v5178_v31 = vld [vmem:[%s5398_s11 + $0x28] sm:$0xff] }
 0x459   : > { %v1818_v4 = vpop.xlane.xlu1 %1817  ;;  %v1821_v33 = vpop.xlane.xlu0 %1820 }
 0x45a   : > { %v6108_v41 = vmax.f32 %v6098_v43, %v1818_v4  ;;  %v6111_v37 = vmax.f32 %v6100_v45, %v1821_v33  ;;  %v6123_v4 = vld [vmem:[#allocation2 + $0x78] sm:$0xff]  ;;  %v6125_v33 = vld [vmem:[#allocation2 + $0x70] sm:$0xff] }
 0x45b   : > { %7254 = vst [vmem:[#allocation37_spill] sm:$0xff] %v6123_v4  ;;  %7255 = vst [vmem:[#allocation38_spill] sm:$0xff] %v6125_v33 }
 0x45c   : > { %7252 = vst [vmem:[#allocation35_spill] sm:$0xff] %v6108_v41  ;;  %7253 = vst [vmem:[#allocation36_spill] sm:$0xff] %v6111_v37  ;;  %1872 = vperm.xlu0 %4861, %v6084_v34   ;;  %1882 = vperm.xlu1 %4867, %v6108_v41  }
 0x45d   : > { %2219 = vst.msk [vmem:[#allocation2 + $0x60] sm:$0xff] %vm544_vm3, %v6108_v41  ;;  %2220 = vst.msk [vmem:[#allocation2 + $0x68] sm:$0xff] %vm544_vm3, %v6111_v37 }
 0x460   : > { %1887 = vperm.xlu0 %4861, %v6111_v37   ;;  %v1827_v55 = vpop.xlane.xlu0 %1826 }
 0x461   : > { %v1824_v23 = vpop.xlane.xlu1 %1823  ;;  %v6133_v41 = vmax.f32 %v6123_v4, %v1827_v55  ;;  %v5177_v55 = vld [vmem:[%s5398_s11 + $0x20] sm:$0xff] }
 0x462   : > { %v6136_v19 = vmax.f32 %v6125_v33, %v1824_v23  ;;  %v6151_v23 = vpack.i.bf16 %v5178_v31, %v5177_v55  ;;  %v4166_v55 = vld [vmem:[%s5374_s8 + $0x80] sm:$0xff]  ;;  %v4167_v31 = vld [vmem:[%s5374_s8 + $0x88] sm:$0xff] }
 0x463   : > { %7256 = vst [vmem:[#allocation39_spill] sm:$0xff] %v6133_v41  ;;  %2222 = vst.msk [vmem:[#allocation2 + $0x78] sm:$0xff] %vm544_vm3, %v6133_v41 }
 0x464   : > { %7257 = vst [vmem:[#allocation40_spill] sm:$0xff] %v6136_v19  ;;  %2221 = vst.msk [vmem:[#allocation2 + $0x70] sm:$0xff] %vm544_vm3, %v6136_v19  ;;  %1892 = vperm.xlu1 %4867, %v6136_v19   ;;  %4909 = vrot.lane.b32.xlu0 %v6130_v30, %s5244_s14 }
 0x465   : > { %v4885_v39 = vpop.permute.xlu1 %4884 }
 0x466   : > { %v4887_v45 = vunpack.i.h.bf16 %v4885_v39  ;;  %v4886_v4 = vunpack.i.l.bf16 %v4885_v39  ;;  %v4172_v39 = vld [vmem:[%s5374_s8 + $0xb0] sm:$0xff] }
 0x468   : > { %1897 = vperm.xlu1 %4867, %v6133_v41   ;;  %4914 = vrot.lane.b32.xlu0 %v6151_v23, %s5244_s14  ;;  %v4698_v37 = vpack.c.bf16 %v4887_v45, %v4886_v4  ;;  %v4168_v45 = vld [vmem:[%s5374_s8 + $0x90] sm:$0xff]  ;;  %v4171_v4 = vld [vmem:[%s5374_s8 + $0xa8] sm:$0xff] }
 0x46a   : > { %4699 = vmatprep.subr.bf16.mxu0 %v4698_v37 }
 0x46b   : > { %4701 = vmatpush3.bf16.msra.mxu0 %v4698_v37  ;;  %v4170_v37 = vld [vmem:[%s5374_s8 + $0xa0] sm:$0xff] }
 0x46c   : > { %4919 = vrot.lane.b32.xlu1 %v5888_v50, %s5244_s14  ;;  %814 = vrot.lane.b32.xlu0 %v5433_v59, %s5244_s14  ;;  %v4169_v50 = vld [vmem:[%s5374_s8 + $0x98] sm:$0xff] }
 0x470   : > { %846 = vrot.lane.b32.xlu1 %v4166_v55, %s5239_s30  ;;  %816 = vrot.lane.b32.xlu0 %v5451_v3, %s5244_s14  ;;  %v4173_v55 = vld [vmem:[%s5374_s8 + $0xb8] sm:$0xff] }
 0x474   : > { %848 = vrot.lane.b32.xlu1 %v4167_v31, %s5239_s30  ;;  %818 = vrot.lane.b32.xlu0 %v5471_v14, %s5244_s14 }
 0x478   : > { %850 = vrot.lane.b32.xlu1 %v4168_v45, %s5239_s30  ;;  %820 = vrot.lane.b32.xlu0 %v5478_v16, %s5244_s14 }
 0x47c   : > { %852 = vrot.lane.b32.xlu1 %v4169_v50, %s5239_s30  ;;  %822 = vrot.lane.b32.xlu0 %v5489_v25, %s5244_s14 }
 0x480   : > { %854 = vrot.lane.b32.xlu1 %v4170_v37, %s5239_s30  ;;  %824 = vrot.lane.b32.xlu0 %v5500_v29, %s5244_s14 }
 0x484   : > { %856 = vrot.lane.b32.xlu1 %v4171_v4, %s5239_s30  ;;  %826 = vrot.lane.b32.xlu0 %v5517_v38, %s5244_s14 }
 0x488   : > { %858 = vrot.lane.b32.xlu1 %v4172_v39, %s5239_s30  ;;  %828 = vrot.lane.b32.xlu0 %v5523_v40, %s5244_s14 }
 0x48c   : > { %860 = vrot.lane.b32.xlu1 %v4173_v55, %s5239_s30 }
 0x4ca   : > { %v1868_v31 = vpop.permute.xlu1 %1867 }
 0x4cb   : > { %v1863_v45 = vpop.permute.xlu0 %1862  ;;  %v1901_v50 = vsub.f32 %v6018_v42, %v1868_v31 }
 0x4cc   : > { %v1900_v37 = vsub.f32 %v6020_v10, %v1863_v45 }
 0x4cd   : > { %v1910_v5 = vmul.f32 1.442695, %v1901_v50 }
 0x4ce   : > { %v1908_v41 = vmul.f32 1.442695, %v1900_v37  ;;  %v4890_v4 = vpop.permute.xlu1 %4889 }
 0x4cf   : > { %v4892_v19 = vunpack.i.h.bf16 %v4890_v4  ;;  %v4891_v33 = vunpack.i.l.bf16 %v4890_v4  ;;  %v4895_v43 = vpop.permute.xlu0 %4894 }
 0x4d0   : > { %4999 = vpow2.f32 %v1908_v41  ;;  %v4897_v39 = vunpack.i.h.bf16 %v4895_v43  ;;  %v4896_v13 = vunpack.i.l.bf16 %v4895_v43 }
 0x4d1   : > { %v4702_v51 = vpack.c.bf16 %v4892_v19, %v4891_v33  ;;  %5001 = vpow2.f32 %v1910_v5 }
 0x4d2   : > { %v4900_v44 = vpop.permute.xlu1 %4899  ;;  %v4706_v34 = vpack.c.bf16 %v4897_v39, %v4896_v13 }
 0x4d3   : > { %v4902_v1 = vunpack.i.h.bf16 %v4900_v44  ;;  %v4901_v55 = vunpack.i.l.bf16 %v4900_v44  ;;  %4703 = vmatprep.subr.bf16.mxu0 %v4702_v51 }
 0x4d4   : > { %4705 = vmatpush3.bf16.msra.mxu0 %v4702_v51 }
 0x4d5   : > { %4707 = vmatprep.subr.bf16.mxu0 %v4706_v34  ;;  %v4710_v37 = vpack.c.bf16 %v4902_v1, %v4901_v55 }
 0x4d6   : > { %v4905_v42 = vpop.permute.xlu1 %4904 }
 0x4d7   : > { %v4907_v10 = vunpack.i.h.bf16 %v4905_v42  ;;  %v4906_v31 = vunpack.i.l.bf16 %v4905_v42  ;;  %v1878_v45 = vpop.permute.xlu0 %1877 }
 0x4d8   : > { %4709 = vmatpush3.bf16.msra.mxu0 %v4706_v34  ;;  %v1903_v13 = vsub.f32 %v6026_v27, %v1878_v45 }
 0x4d9   : > { %v2248_v41 = vsel %vm609_vm0, %v4907_v10, %v5406_v47  ;;  %v2247_v43 = vsel %vm609_vm0, %v4906_v31, %v5408_v48  ;;  %4711 = vmatprep.subr.bf16.mxu0 %v4710_v37 }
 0x4da   : > { %v6197_v44 = vpop.eup %4999  ;;  %v4714_v5 = vpack.c.bf16 %v2248_v41, %v2247_v43  ;;  %v1914_v33 = vmul.f32 1.442695, %v1903_v13 }
 0x4db   : > { %4510 = vmatprep.mubr.msk.f32.mxu0 %vm1206_vm4, %v6197_v44  ;;  %v1873_v51 = vpop.permute.xlu0 %1872  ;;  %v1883_v19 = vpop.permute.xlu1 %1882 }
 0x4dc   : > { %v1902_v1 = vsub.f32 %v6028_v18, %v1873_v51  ;;  %v1904_v34 = vsub.f32 %v6036_v7, %v1883_v19  ;;  %4713 = vmatpush3.bf16.msra.mxu0 %v4710_v37  ;;  %v6205_v50 = vpop.eup %5001 }
 0x4dd   : > { %4716 = vmatprep.subr.msk.bf16.mxu0 %vm5422_vm2, %v4714_v5 }
 0x4de   : > { %v1912_v27 = vmul.f32 1.442695, %v1902_v1  ;;  %v1916_v4 = vmul.f32 1.442695, %v1904_v34 }
 0x4df   : > { %v1888_v39 = vpop.permute.xlu0 %1887  ;;  %4511 = vmatmul.mubr.msk.f32.vlgmr.msra.gmra.mrb[8].mxu0 %vm1206_vm4, %v6205_v50 }
 0x4e0   : > { %5003 = vpow2.f32 %v1912_v27  ;;  %v1905_v55 = vsub.f32 %v6034_v20, %v1888_v39 }
 0x4e1   : > { %5005 = vpow2.f32 %v1914_v33 }
 0x4e2   : > { %5007 = vpow2.f32 %v1916_v4  ;;  %v1918_v18 = vmul.f32 1.442695, %v1905_v55 }
 0x4e3   : > { %v4910_v7 = vpop.permute.xlu0 %4909  ;;  %v1893_v42 = vpop.permute.xlu1 %1892 }
 0x4e4   : > { %5009 = vpow2.f32 %v1918_v18  ;;  %v4912_v10 = vunpack.i.h.bf16 %v4910_v7  ;;  %v4911_v31 = vunpack.i.l.bf16 %v4910_v7  ;;  %v1906_v45 = vsub.f32 %v6044_v9, %v1893_v42 }
 0x4e5   : > { %4719 = vmatpush3.bf16.xpose.msk.msra.mxu0 %vm5422_vm2, %v4714_v5 }
 0x4e6   : > { %v2250_v37 = vsel %vm609_vm0, %v4912_v10, %v5435_v60  ;;  %v2249_v41 = vsel %vm609_vm0, %v4911_v31, %v5437_v61  ;;  %v1920_v20 = vmul.f32 1.442695, %v1906_v45 }
 0x4e7   : > { %v4915_v43 = vpop.permute.xlu0 %4914  ;;  %v1898_v13 = vpop.permute.xlu1 %1897  ;;  %v4720_v51 = vpack.c.bf16 %v2250_v37, %v2249_v41 }
 0x4e8   : > { %5011 = vpow2.f32 %v1920_v20  ;;  %v4917_v19 = vunpack.i.h.bf16 %v4915_v43  ;;  %v4916_v1 = vunpack.i.l.bf16 %v4915_v43  ;;  %v1907_v34 = vsub.f32 %v6042_v12, %v1898_v13 }
 0x4e9   : > { %4722 = vmatprep.subr.msk.bf16.mxu0 %vm5422_vm2, %v4720_v51 }
 0x4ea   : > { %v6220_v9 = vpop.eup %5003  ;;  %v2252_v5 = vsel %vm609_vm0, %v4917_v19, %v5439_v62  ;;  %v2251_v33 = vsel %vm609_vm0, %v4916_v1, %v5441_v63  ;;  %v1922_v27 = vmul.f32 1.442695, %v1907_v34 }
 0x4eb   : > { %v6226_v4 = vpop.eup %5005  ;;  %v4920_v39 = vpop.permute.xlu1 %4919  ;;  %4513 = vmatprep.mubr.msk.f32.mxu0 %vm1206_vm4, %v6220_v9  ;;  %v4726_v55 = vpack.c.bf16 %v2252_v5, %v2251_v33 }
 0x4ec   : > { %v815_v12 = vpop.permute.xlu0 %814  ;;  %v6230_v18 = vpop.eup %5007  ;;  %5013 = vpow2.f32 %v1922_v27  ;;  %4514 = vmatmul.mubr.msk.f32.gmra.mrb[10].mxu0 %vm1206_vm4, %v6226_v4  ;;  %v4922_v7 = vunpack.i.h.bf16 %v4920_v39  ;;  %v4921_v42 = vunpack.i.l.bf16 %v4920_v39 }
 0x4ed   : > { %4516 = vmatprep.mubr.msk.f32.mxu0 %vm1206_vm4, %v6230_v18  ;;  %4725 = vmatpush3.bf16.xpose.msk.msra.mxu0 %vm5422_vm2, %v4720_v51 }
 0x4ee   : > { %v6238_v10 = vpop.eup %5009  ;;  %4728 = vmatprep.subr.msk.bf16.mxu0 %vm5422_vm2, %v4726_v55  ;;  %v2254_v41 = vsel %vm609_vm0, %v4922_v7, %v5483_v21  ;;  %v2253_v20 = vsel %vm609_vm0, %v4921_v42, %v5485_v22  ;;  %v6354_v21 = vld [vmem:[#allocation2 + $0x90] sm:$0xff] }
 0x4ef   : > { %v847_v31 = vpop.permute.xlu1 %846  ;;  %v4732_v19 = vpack.c.bf16 %v2254_v41, %v2253_v20  ;;  %7270 = vst [vmem:[#allocation53_spill] sm:$0xff] %v6354_v21 }
 0x4f0   : > { %v817_v45 = vpop.permute.xlu0 %816  ;;  %4517 = vmatmul.mubr.msk.f32.gmra.mrb[12].mxu0 %vm1206_vm4, %v6238_v10  ;;  %v870_v37 = vsel %vm609_vm0, %v815_v12, %v847_v31 }
 0x4f1   : > { %879 = vst.msk [vmem:[#allocation5 + $0x80] sm:$0xff] %vm706_vm1, %v870_v37 }
 0x4f2   : > { %v6250_v43 = vpop.eup %5011 }
 0x4f3   : > { %4519 = vmatprep.mubr.msk.f32.mxu0 %vm1206_vm4, %v6250_v43  ;;  %v849_v13 = vpop.permute.xlu1 %848 }
 0x4f4   : > { %v819_v51 = vpop.permute.xlu0 %818  ;;  %v871_v1 = vsel %vm609_vm0, %v817_v45, %v849_v13 }
 0x4f5   : > { %4731 = vmatpush3.bf16.xpose.msk.msra.mxu0 %vm5422_vm2, %v4726_v55  ;;  %880 = vst.msk [vmem:[#allocation5 + $0x88] sm:$0xff] %vm706_vm1, %v871_v1 }
 0x4f6   : > { %v6258_v34 = vpop.eup %5013  ;;  %4734 = vmatprep.subr.msk.bf16.mxu0 %vm5422_vm2, %v4732_v19 }
 0x4f7   : > { %4520 = vmatmul.mubr.msk.f32.gmra.mrb[14].mxu0 %vm1206_vm4, %v6258_v34  ;;  %v851_v5 = vpop.permute.xlu1 %850 }
 0x4f8   : > { %v821_v33 = vpop.permute.xlu0 %820  ;;  %v872_v27 = vsel %vm609_vm0, %v819_v51, %v851_v5  ;;  %v2256_v39 = vld [vmem:[#allocation5 + $0x80] sm:$0xff] }
 0x4f9   : > { %881 = vst.msk [vmem:[#allocation5 + $0x90] sm:$0xff] %vm706_vm1, %v872_v27  ;;  %4538 = vmatprep.mubr.msk.f32.mxu0 %vm706_vm1, %v2256_v39 }
 0x4fb   : > { %v853_v55 = vpop.permute.xlu1 %852 }
 0x4fc   : > { %v823_v12 = vpop.permute.xlu0 %822  ;;  %v873_v7 = vsel %vm609_vm0, %v821_v33, %v853_v55  ;;  %v2257_v37 = vld [vmem:[#allocation5 + $0x88] sm:$0xff] }
 0x4fd   : > { %4737 = vmatpush3.bf16.xpose.msk.msra.mxu0 %vm5422_vm2, %v4732_v19  ;;  %882 = vst.msk [vmem:[#allocation5 + $0x98] sm:$0xff] %vm706_vm1, %v873_v7 }
 0x4ff   : > { %v855_v42 = vpop.permute.xlu1 %854 }
 0x500   : > { %v825_v31 = vpop.permute.xlu0 %824  ;;  %v874_v45 = vsel %vm609_vm0, %v823_v12, %v855_v42  ;;  %v2258_v41 = vld [vmem:[#allocation5 + $0x90] sm:$0xff] }
 0x501   : > { %883 = vst.msk [vmem:[#allocation5 + $0xa0] sm:$0xff] %vm706_vm1, %v874_v45 }
 0x503   : > { %v857_v20 = vpop.permute.xlu1 %856 }
 0x504   : > { %v827_v13 = vpop.permute.xlu0 %826  ;;  %4539 = vmatmul.mubr.msk.f32.vlgmr.msra.gmra.mrb[16].mxu0 %vm706_vm1, %v2257_v37  ;;  %v875_v51 = vsel %vm609_vm0, %v825_v31, %v857_v20  ;;  %v2259_v19 = vld [vmem:[#allocation5 + $0x98] sm:$0xff] }
 0x505   : > { %884 = vst.msk [vmem:[#allocation5 + $0xa8] sm:$0xff] %vm706_vm1, %v875_v51  ;;  %4541 = vmatprep.mubr.msk.f32.mxu0 %vm706_vm1, %v2258_v41 }
 0x507   : > { %v859_v1 = vpop.permute.xlu1 %858 }
 0x508   : > { %4542 = vmatmul.mubr.msk.f32.gmra.mrb[18].mxu0 %vm706_vm1, %v2259_v19  ;;  %v876_v5 = vsel %vm609_vm0, %v827_v13, %v859_v1  ;;  %v2260_v33 = vld [vmem:[#allocation5 + $0xa0] sm:$0xff]  ;;  %v829_v27 = vpop.permute.xlu0 %828 }
 0x509   : > { %885 = vst.msk [vmem:[#allocation5 + $0xb0] sm:$0xff] %vm706_vm1, %v876_v5  ;;  %4544 = vmatprep.mubr.msk.f32.mxu0 %vm706_vm1, %v2260_v33 }
 0x50b   : > { %v861_v39 = vpop.permute.xlu1 %860 }
 0x50c   : > { %v877_v55 = vsel %vm609_vm0, %v829_v27, %v861_v39  ;;  %v2261_v12 = vld [vmem:[#allocation5 + $0xa8] sm:$0xff] }
 0x50d   : > { %886 = vst.msk [vmem:[#allocation5 + $0xb8] sm:$0xff] %vm706_vm1, %v877_v55  ;;  %4545 = vmatmul.mubr.msk.f32.gmra.mrb[20].mxu0 %vm706_vm1, %v2261_v12 }
 0x510   : > { %v2262_v7 = vld [vmem:[#allocation5 + $0xb0] sm:$0xff] }
 0x511   : > { %4547 = vmatprep.mubr.msk.f32.mxu0 %vm706_vm1, %v2262_v7 }
 0x514   : > { %v2263_v42 = vld [vmem:[#allocation5 + $0xb8] sm:$0xff] }
 0x515   : > { %4548 = vmatmul.mubr.msk.f32.gmra.mrb[22].mxu0 %vm706_vm1, %v2263_v42 }
 0x5b2   : > { %v6286_v31 = vpop.f32.mrb[8].mxu0 }
 0x5b3   : > { %7258 = vst [vmem:[#allocation41_spill] sm:$0xff] %v6286_v31  ;;  %v6288_v45 = vpop.f32.mrb[9].mxu0 }
 0x5b4   : > { %7259 = vst [vmem:[#allocation42_spill] sm:$0xff] %v6288_v45 }
 0x5bf   : > { %v6290_v37 = vpop.f32.mrb[10].mxu0 }
 0x5c0   : > { %7260 = vst [vmem:[#allocation43_spill] sm:$0xff] %v6290_v37  ;;  %v6292_v41 = vpop.f32.mrb[11].mxu0 }
 0x5c1   : > { %7261 = vst [vmem:[#allocation44_spill] sm:$0xff] %v6292_v41 }
 0x5c3   : > { %v6294_v20 = vpop.f32.mrb[12].mxu0 }
 0x5c4   : > { %7262 = vst [vmem:[#allocation45_spill] sm:$0xff] %v6294_v20  ;;  %v6296_v13 = vpop.f32.mrb[13].mxu0  ;;  %v5180_v20 = vld [vmem:[%s5610_s12 + $0x8] sm:$0xff] }
 0x5c5   : > { %7263 = vst [vmem:[#allocation46_spill] sm:$0xff] %v6296_v13 }
 0x5ca   : > { %v6298_v51 = vpop.f32.mrb[14].mxu0 }
 0x5cb   : > { %7264 = vst [vmem:[#allocation47_spill] sm:$0xff] %v6298_v51  ;;  %v6300_v19 = vpop.f32.mrb[15].mxu0  ;;  %v5179_v51 = vld [vmem:[%s5610_s12] sm:$0xff] }
 0x5cc   : > { %7265 = vst [vmem:[#allocation48_spill] sm:$0xff] %v6300_v19  ;;  %v4923_v37 = vpack.i.bf16 %v5180_v20, %v5179_v51  ;;  %v5182_v20 = vld [vmem:[%s5610_s12 + $0x18] sm:$0xff] }
 0x5d7   : > { %v6302_v1 = vpop.f32.mrb[16].mxu0 }
 0x5d8   : > { %v6304_v5 = vpop.f32.mrb[17].mxu0  ;;  %v2429_v33 = vsel %vm1206_vm4, %v6302_v1, -inf }
 0x5d9   : > { %2430 = vmax.xlane.f32.xlu1 %v2429_v33  ;;  %v2426_v27 = vsel %vm1206_vm4, %v6304_v5, -inf }
 0x5da   : > { %2427 = vmax.xlane.f32.xlu0 %v2426_v27 }
 0x5db   : > { %v6310_v39 = vpop.f32.mrb[18].mxu0 }
 0x5dc   : > { %v6312_v55 = vpop.f32.mrb[19].mxu0  ;;  %v2435_v7 = vsel %vm1206_vm4, %v6310_v39, -inf }
 0x5dd   : > { %v2432_v12 = vsel %vm1206_vm4, %v6312_v55, -inf }
 0x5de   : > { %2433 = vmax.xlane.f32.xlu0 %v2432_v12 }
 0x5e0   : > { %v6318_v42 = vpop.f32.mrb[20].mxu0 }
 0x5e1   : > { %v6320_v33 = vpop.f32.mrb[21].mxu0  ;;  %v2441_v19 = vsel %vm1206_vm4, %v6318_v42, -inf }
 0x5e2   : > { %2436 = vmax.xlane.f32.xlu0 %v2435_v7  ;;  %v2438_v27 = vsel %vm1206_vm4, %v6320_v33, -inf }
 0x5e3   : > { %2439 = vmax.xlane.f32.xlu1 %v2438_v27  ;;  %v6339_v27 = vld [vmem:[#allocation2 + $0x80] sm:$0xff] }
 0x5e4   : > { %7267 = vst [vmem:[#allocation50_spill] sm:$0xff] %v6339_v27 }
 0x5e6   : > { %2442 = vmax.xlane.f32.xlu0 %v2441_v19  ;;  %v6337_v19 = vld [vmem:[#allocation2 + $0x88] sm:$0xff] }
 0x5e7   : > { %7266 = vst [vmem:[#allocation49_spill] sm:$0xff] %v6337_v19 }
 0x5e8   : > { %v6326_v13 = vpop.f32.mrb[22].mxu0 }
 0x5e9   : > { %v2447_v12 = vsel %vm1206_vm4, %v6326_v13, -inf  ;;  %v6330_v31 = vpop.f32.mrb[23].mxu0 }
 0x5ea   : > { %2448 = vmax.xlane.f32.xlu0 %v2447_v12  ;;  %v2444_v7 = vsel %vm1206_vm4, %v6330_v31, -inf }
 0x5eb   : > { %2445 = vmax.xlane.f32.xlu1 %v2444_v7  ;;  %v5184_v7 = vld [vmem:[%s5610_s12 + $0x28] sm:$0xff] }
 0x5fc   : > { %4924 = vrot.lane.b32.xlu1 %v4923_v37, %s5244_s14  ;;  %v5181_v37 = vld [vmem:[%s5610_s12 + $0x10] sm:$0xff] }
 0x5fd   : > { %v4928_v51 = vpack.i.bf16 %v5182_v20, %v5181_v37  ;;  %v5185_v37 = vld [vmem:[%s5610_s12 + $0x30] sm:$0xff]  ;;  %v5186_v20 = vld [vmem:[%s5610_s12 + $0x38] sm:$0xff] }
 0x5fe   : > { %v4938_v62 = vpack.i.bf16 %v5186_v20, %v5185_v37  ;;  %v5187_v37 = vld [vmem:[%s5398_s11] sm:$0xff]  ;;  %v5188_v20 = vld [vmem:[%s5398_s11 + $0x8] sm:$0xff] }
 0x666   : > { %v2431_v41 = vpop.xlane.xlu1 %2430 }
 0x667   : > { %v6342_v12 = vmax.f32 %v6337_v19, %v2431_v41  ;;  %v2428_v45 = vpop.xlane.xlu0 %2427  ;;  %v6369_v41 = vld [vmem:[#allocation2 + $0x98] sm:$0xff] }
 0x668   : > { %v6345_v22 = vmax.f32 %v6339_v27, %v2428_v45  ;;  %v5183_v45 = vld [vmem:[%s5610_s12 + $0x20] sm:$0xff]  ;;  %7271 = vst [vmem:[#allocation54_spill] sm:$0xff] %v6369_v41  ;;  %v6384_v27 = vld [vmem:[#allocation2 + $0xa8] sm:$0xff] }
 0x669   : > { %7268 = vst [vmem:[#allocation51_spill] sm:$0xff] %v6342_v12  ;;  %2830 = vst.msk [vmem:[#allocation2 + $0x88] sm:$0xff] %vm544_vm3, %v6342_v12  ;;  %2489 = vperm.xlu1 %4867, %v6342_v12   ;;  %v4933_v19 = vpack.i.bf16 %v5184_v7, %v5183_v45  ;;  %v6376_v7 = vld [vmem:[#allocation2 + $0xa0] sm:$0xff] }
 0x66a   : > { %7269 = vst [vmem:[#allocation52_spill] sm:$0xff] %v6345_v22  ;;  %2829 = vst.msk [vmem:[#allocation2 + $0x80] sm:$0xff] %vm544_vm3, %v6345_v22  ;;  %2484 = vperm.xlu0 %4861, %v6345_v22   ;;  %v4943_v22 = vpack.i.bf16 %v5188_v20, %v5187_v37  ;;  %v5190_v20 = vld [vmem:[%s5398_s11 + $0x38] sm:$0xff] }
 0x66b   : > { %v2434_v63 = vpop.xlane.xlu0 %2433  ;;  %7272 = vst [vmem:[#allocation55_spill] sm:$0xff] %v6376_v7 }
 0x66c   : > { %v6364_v12 = vmax.f32 %v6354_v21, %v2434_v63 }
 0x66d   : > { %4929 = vrot.lane.b32.xlu1 %v4928_v51, %s5244_s14 }
 0x66e   : > { %2831 = vst.msk [vmem:[#allocation2 + $0x90] sm:$0xff] %vm544_vm3, %v6364_v12  ;;  %4934 = vrot.lane.b32.xlu0 %v4933_v19, %s5244_s14 }
 0x66f   : > { %v2437_v45 = vpop.xlane.xlu0 %2436 }
 0x670   : > { %v6379_v63 = vmax.f32 %v6369_v41, %v2437_v45  ;;  %v2440_v51 = vpop.xlane.xlu1 %2439  ;;  %v6405_v41 = vld [vmem:[#allocation2 + $0xb8] sm:$0xff] }
 0x671   : > { %4939 = vrot.lane.b32.xlu1 %v4938_v62, %s5244_s14  ;;  %v6387_v21 = vmax.f32 %v6376_v7, %v2440_v51  ;;  %v5189_v51 = vld [vmem:[%s5398_s11 + $0x30] sm:$0xff] }
 0x672   : > { %2832 = vst.msk [vmem:[#allocation2 + $0x98] sm:$0xff] %vm544_vm3, %v6379_v63  ;;  %4949 = vrot.lane.b32.xlu0 %v6130_v30, %s5239_s30  ;;  %v4958_v19 = vpack.i.bf16 %v5190_v20, %v5189_v51  ;;  %v6412_v62 = vld [vmem:[#allocation2 + $0xb0] sm:$0xff]  ;;  %v4174_v30 = vld [vmem:[%s5374_s8 + $0xc0] sm:$0xff] }
 0x673   : > { %v2443_v45 = vpop.xlane.xlu0 %2442  ;;  %2833 = vst.msk [vmem:[#allocation2 + $0xa0] sm:$0xff] %vm544_vm3, %v6387_v21 }
 0x674   : > { %v6400_v37 = vmax.f32 %v6384_v27, %v2443_v45 }
 0x675   : > { %4944 = vrot.lane.b32.xlu1 %v4943_v22, %s5239_s30 }
 0x676   : > { %2499 = vperm.xlu0 %4861, %v6379_v63   ;;  %2834 = vst.msk [vmem:[#allocation2 + $0xa8] sm:$0xff] %vm544_vm3, %v6400_v37 }
 0x677   : > { %v2449_v7 = vpop.xlane.xlu0 %2448 }
 0x678   : > { %v6415_v45 = vmax.f32 %v6405_v41, %v2449_v7  ;;  %v2446_v22 = vpop.xlane.xlu1 %2445 }
 0x679   : > { %4959 = vrot.lane.b32.xlu1 %v4958_v19, %s5239_s30  ;;  %v6419_v51 = vmax.f32 %v6412_v62, %v2446_v22 }
 0x67a   : > { %2494 = vperm.xlu0 %4861, %v6364_v12   ;;  %2836 = vst.msk [vmem:[#allocation2 + $0xb8] sm:$0xff] %vm544_vm3, %v6415_v45 }
 0x67b   : > { %2835 = vst.msk [vmem:[#allocation2 + $0xb0] sm:$0xff] %vm544_vm3, %v6419_v51 }
 0x67c   : > { %v4925_v7 = vpop.permute.xlu1 %4924 }
 0x67d   : > { %2504 = vperm.xlu1 %4867, %v6387_v21   ;;  %v4927_v19 = vunpack.i.h.bf16 %v4925_v7  ;;  %v4926_v22 = vunpack.i.l.bf16 %v4925_v7  ;;  %v4175_v7 = vld [vmem:[%s5374_s8 + $0xc8] sm:$0xff] }
 0x67e   : > { %2509 = vperm.xlu0 %4861, %v6400_v37  }
 0x67f   : > { %v4738_v20 = vpack.c.bf16 %v4927_v19, %v4926_v22  ;;  %v1355_v19 = vsel %vm1206_vm4, %v5954_v26, 0.0  ;;  %v1947_v26 = vsel %vm1206_vm4, %v6220_v9, 0.0  ;;  %v1956_v9 = vsel %vm1206_vm4, %v6238_v10, 0.0 }
 0x681   : > { %2519 = vperm.xlu1 %4867, %v6415_v45   ;;  %4739 = vmatprep.subr.bf16.mxu1 %v4738_v20 }
 0x682   : > { %4954 = vrot.lane.b32.xlu0 %v6151_v23, %s5239_s30  ;;  %4741 = vmatpush3.bf16.msra.mxu1 %v4738_v20  ;;  %v4176_v23 = vld [vmem:[%s5374_s8 + $0xd0] sm:$0xff]  ;;  %v1346_v20 = vsel %vm1206_vm4, %v5922_v28, 0.0  ;;  %v1941_v28 = vsel %vm1206_vm4, %v6197_v44, 0.0  ;;  %v7273_v44 = vsub.f32 %v5784_v49, %v5790_v54 }
 0x685   : > { %2514 = vperm.xlu1 %4867, %v6419_v51  }
 0x686   : > { %896 = vrot.lane.b32.xlu0 %v5433_v59, %s5239_s30  ;;  %v4177_v59 = vld [vmem:[%s5374_s8 + $0xd8] sm:$0xff] }
 0x689   : > { %928 = vrot.lane.b32.xlu1 %v4174_v30, %s5239_s30  ;;  %v4180_v30 = vld [vmem:[%s5374_s8 + $0xf0] sm:$0xff] }
 0x68a   : > { %898 = vrot.lane.b32.xlu0 %v5451_v3, %s5239_s30  ;;  %v4178_v3 = vld [vmem:[%s5374_s8 + $0xe0] sm:$0xff] }
 0x68d   : > { %930 = vrot.lane.b32.xlu1 %v4175_v7, %s5239_s30 }
 0x68e   : > { %900 = vrot.lane.b32.xlu0 %v5471_v14, %s5239_s30  ;;  %v4179_v14 = vld [vmem:[%s5374_s8 + $0xe8] sm:$0xff] }
 0x691   : > { %932 = vrot.lane.b32.xlu1 %v4176_v23, %s5239_s30 }
 0x692   : > { %902 = vrot.lane.b32.xlu0 %v5478_v16, %s5239_s30  ;;  %v4181_v16 = vld [vmem:[%s5374_s8 + $0xf8] sm:$0xff] }
 0x695   : > { %934 = vrot.lane.b32.xlu1 %v4177_v59, %s5239_s30 }
 0x696   : > { %904 = vrot.lane.b32.xlu0 %v5489_v25, %s5239_s30  ;;  %v1343_v25 = vsel %vm1206_vm4, %v5920_v52, 0.0  ;;  %v1364_v52 = vsel %vm1206_vm4, %v5978_v57, 0.0  ;;  %v1959_v57 = vsel %vm1206_vm4, %v6250_v43, 0.0  ;;  %v7275_v43 = vsub.f32 %v5811_v15, %v5822_v58 }
 0x698   : > { %v1253_v7 = vmul.f32 1.442695, %v7275_v43 }
 0x699   : > { %936 = vrot.lane.b32.xlu1 %v4178_v3, %s5239_s30 }
 0x69a   : > { %906 = vrot.lane.b32.xlu0 %v5500_v29, %s5239_s30  ;;  %v1349_v29 = vsel %vm1206_vm4, %v5941_v8, 0.0  ;;  %v1361_v8 = vsel %vm1206_vm4, %v5970_v32, 0.0  ;;  %v1950_v32 = vsel %vm1206_vm4, %v6226_v4, 0.0  ;;  %v1962_v4 = vsel %vm1206_vm4, %v6258_v34, 0.0 }
 0x69d   : > { %938 = vrot.lane.b32.xlu1 %v4179_v14, %s5239_s30 }
 0x69e   : > { %908 = vrot.lane.b32.xlu0 %v5517_v38, %s5239_s30  ;;  %v1352_v38 = vsel %vm1206_vm4, %v5945_v2, 0.0  ;;  %v1944_v2 = vsel %vm1206_vm4, %v6205_v50, 0.0  ;;  %v1247_v50 = vmul.f32 1.442695, %v7273_v44  ;;  %v7279_v44 = vld [vmem:[#allocation29_spill] sm:$0xff] }
 0x6a0   : > { %5015 = vpow2.f32 %v1247_v50  ;;  %v7280_v50 = vld [vmem:[#allocation30_spill] sm:$0xff] }
 0x6a1   : > { %940 = vrot.lane.b32.xlu1 %v4180_v30, %s5239_s30 }
 0x6a2   : > { %910 = vrot.lane.b32.xlu0 %v5523_v40, %s5239_s30  ;;  %v1358_v40 = vsel %vm1206_vm4, %v5960_v36, 0.0  ;;  %v1953_v36 = vsel %vm1206_vm4, %v6230_v18, 0.0  ;;  %v7274_v18 = vsub.f32 %v5797_v56, %v5809_v11  ;;  %v7276_v56 = vsub.f32 %v5829_v24, %v5846_v46 }
 0x6a4   : > { %v1251_v22 = vmul.f32 1.442695, %v7274_v18  ;;  %v1257_v11 = vmul.f32 1.442695, %v7276_v56 }
 0x6a5   : > { %942 = vrot.lane.b32.xlu1 %v4181_v16, %s5239_s30 }
 0x6a6   : > { %5017 = vpow2.f32 %v1251_v22 }
 0x6a7   : > { %5019 = vpow2.f32 %v1253_v7 }
 0x6aa   : > { %v6514_v14 = vpop.eup %5015 }
 0x6c1   : > { %1344 = vadd.xlane.f32.xlu0 %v1343_v25 }
 0x6c5   : > { %1350 = vadd.xlane.f32.xlu0 %v1349_v29 }
 0x6c9   : > { %1353 = vadd.xlane.f32.xlu0 %v1352_v38  ;;  %1347 = vadd.xlane.f32.xlu1 %v1346_v20  ;;  %v6520_v38 = vpop.eup %5017 }
 0x6cd   : > { %1359 = vadd.xlane.f32.xlu0 %v1358_v40  ;;  %1356 = vadd.xlane.f32.xlu1 %v1355_v19 }
 0x6d1   : > { %1365 = vadd.xlane.f32.xlu0 %v1364_v52  ;;  %1362 = vadd.xlane.f32.xlu1 %v1361_v8  ;;  %v7278_v52 = vsub.f32 %v6055_v6, %v6061_v17 }
 0x6d3   : > { %v1844_v8 = vmul.f32 1.442695, %v7278_v52 }
 0x6d5   : > { %1942 = vadd.xlane.f32.xlu0 %v1941_v28  ;;  %1945 = vadd.xlane.f32.xlu1 %v1944_v2 }
 0x6d9   : > { %1948 = vadd.xlane.f32.xlu0 %v1947_v26  ;;  %1954 = vadd.xlane.f32.xlu1 %v1953_v36 }
 0x6dd   : > { %1951 = vadd.xlane.f32.xlu0 %v1950_v32  ;;  %1960 = vadd.xlane.f32.xlu1 %v1959_v57 }
 0x6e1   : > { %1957 = vadd.xlane.f32.xlu0 %v1956_v9  ;;  %v7281_v9 = vsub.f32 %v7279_v44, %v7280_v50 }
 0x6e3   : > { %v1848_v17 = vmul.f32 1.442695, %v7281_v9 }
 0x6e5   : > { %1963 = vadd.xlane.f32.xlu0 %v1962_v4 }
 0x6e8   : > { %v2490_v49 = vpop.permute.xlu1 %2489 }
 0x6e9   : > { %v2523_v54 = vsub.f32 %v6302_v1, %v2490_v49  ;;  %v2485_v23 = vpop.permute.xlu0 %2484 }
 0x6ea   : > { %v2522_v10 = vsub.f32 %v6304_v5, %v2485_v23  ;;  %v7277_v5 = vsub.f32 %v5859_v0, %v5862_v35  ;;  %v6526_v35 = vpop.eup %5019 }
 0x6eb   : > { %v2532_v59 = vmul.f32 1.442695, %v2523_v54 }
 0x6ec   : > { %v2530_v3 = vmul.f32 1.442695, %v2522_v10  ;;  %v4930_v34 = vpop.permute.xlu1 %4929  ;;  %v1261_v24 = vmul.f32 1.442695, %v7277_v5 }
 0x6ed   : > { %5021 = vpow2.f32 %v2532_v59  ;;  %v4932_v30 = vunpack.i.h.bf16 %v4930_v34  ;;  %v4931_v15 = vunpack.i.l.bf16 %v4930_v34  ;;  %v4935_v58 = vpop.permute.xlu0 %4934 }
 0x6ee   : > { %5023 = vpow2.f32 %v2530_v3  ;;  %v4937_v16 = vunpack.i.h.bf16 %v4935_v58  ;;  %v4936_v1 = vunpack.i.l.bf16 %v4935_v58  ;;  %1394 = vperm.xlu1 %4867, %v6514_v14  }
 0x6ef   : > { %5025 = vpow2.f32 %v1257_v11  ;;  %v4742_v46 = vpack.c.bf16 %v4932_v30, %v4931_v15 }
 0x6f0   : > { %v4940_v25 = vpop.permute.xlu1 %4939  ;;  %v4746_v29 = vpack.c.bf16 %v4937_v16, %v4936_v1  ;;  %5027 = vpow2.f32 %v1261_v24 }
 0x6f1   : > { %v4942_v20 = vunpack.i.h.bf16 %v4940_v25  ;;  %v4941_v40 = vunpack.i.l.bf16 %v4940_v25  ;;  %v4950_v19 = vpop.permute.xlu0 %4949  ;;  %4743 = vmatprep.subr.bf16.mxu1 %v4742_v46  ;;  %5029 = vpow2.f32 %v1844_v8  ;;  %v7283_v8 = vld [vmem:[#allocation10_spill] sm:$0xff] }
 0x6f2   : > { %1404 = vperm.xlu1 %4867, %v6520_v38   ;;  %4745 = vmatpush3.bf16.msra.mxu1 %v4742_v46  ;;  %v4951_v23 = vunpack.i.l.bf16 %v4950_v19 }
 0x6f3   : > { %4747 = vmatprep.subr.bf16.mxu1 %v4746_v29  ;;  %v4750_v36 = vpack.c.bf16 %v4942_v20, %v4941_v40 }
 0x6f4   : > { %v4945_v0 = vpop.permute.xlu1 %4944  ;;  %v2863_v30 = vsel %vm609_vm0, %v4951_v23, %v5437_v61 }
 0x6f5   : > { %v4947_v28 = vunpack.i.h.bf16 %v4945_v0  ;;  %v4946_v2 = vunpack.i.l.bf16 %v4945_v0  ;;  %v2500_v26 = vpop.permute.xlu0 %2499 }
 0x6f6   : > { %v2525_v32 = vsub.f32 %v6310_v39, %v2500_v26  ;;  %1409 = vperm.xlu1 %4867, %v6526_v35   ;;  %4749 = vmatpush3.bf16.msra.mxu1 %v4746_v29 }
 0x6f7   : > { %v5022_v57 = vpop.eup %5021  ;;  %v2862_v6 = vsel %vm609_vm0, %v4947_v28, %v5406_v47  ;;  %v2861_v18 = vsel %vm609_vm0, %v4946_v2, %v5408_v48  ;;  %4751 = vmatprep.subr.bf16.mxu1 %v4750_v36  ;;  %v4952_v48 = vunpack.i.h.bf16 %v4950_v19  ;;  %v7282_v19 = vld [vmem:[#allocation9_spill] sm:$0xff] }
 0x6f8   : > { %v6537_v22 = vpop.eup %5023  ;;  %v2536_v4 = vmul.f32 1.442695, %v2525_v32  ;;  %v6539_v39 = vpop.permute.xlu1 %4959  ;;  %v2566_v43 = vsel %vm1206_vm4, %v5022_v57, 0.0  ;;  %v4754_v7 = vpack.c.bf16 %v2862_v6, %v2861_v18 }
 0x6f9   : > { %v6542_v49 = vpop.eup %5025  ;;  %4566 = vmatprep.mubr.msk.f32.mxu1 %vm1206_vm4, %v6537_v22  ;;  %v2495_v54 = vpop.permute.xlu0 %2494  ;;  %2567 = vadd.xlane.f32.xlu0 %v2566_v43  ;;  %v2864_v34 = vsel %vm609_vm0, %v4952_v48, %v5435_v60  ;;  %v4962_v44 = vunpack.i.h.bf16 %v6539_v39  ;;  %v4961_v50 = vunpack.i.l.bf16 %v6539_v39  ;;  %v7284_v39 = vld [vmem:[#allocation11_spill] sm:$0xff] }
 0x6fa   : > { %5031 = vpow2.f32 %v2536_v4  ;;  %v2524_v47 = vsub.f32 %v6312_v55, %v2495_v54  ;;  %1419 = vperm.xlu1 %4867, %v6542_v49   ;;  %4753 = vmatpush3.bf16.msra.mxu1 %v4750_v36  ;;  %v6550_v11 = vpop.eup %5027 }
 0x6fb   : > { %5033 = vpow2.f32 %v1848_v17  ;;  %4756 = vmatprep.subr.msk.bf16.mxu1 %vm5422_vm2, %v4754_v7  ;;  %v6560_v1 = vpop.eup %5029  ;;  %v2868_v43 = vsel %vm609_vm0, %v4962_v44, %v7284_v39  ;;  %v7289_v44 = vld [vmem:[#allocation15_spill] sm:$0xff] }
 0x6fc   : > { %v2534_v10 = vmul.f32 1.442695, %v2524_v47  ;;  %v2505_v56 = vpop.permute.xlu1 %2504 }
 0x6fd   : > { %v2526_v59 = vsub.f32 %v6320_v33, %v2505_v56  ;;  %v2510_v3 = vpop.permute.xlu0 %2509  ;;  %4567 = vmatmul.mubr.msk.f32.vlgmr.msra.gmra.mrb[16].mxu1 %vm1206_vm4, %v5022_v57 }
 0x6fe   : > { %5035 = vpow2.f32 %v2534_v10  ;;  %v2527_v55 = vsub.f32 %v6318_v42, %v2510_v3  ;;  %1429 = vperm.xlu1 %4867, %v6550_v11   ;;  %v4760_v42 = vpack.c.bf16 %v2864_v34, %v2863_v30 }
 0x6ff   : > { %v2538_v15 = vmul.f32 1.442695, %v2526_v59 }
 0x700   : > { %v2540_v58 = vmul.f32 1.442695, %v2527_v55  ;;  %v2520_v16 = vpop.permute.xlu1 %2519 }
 0x701   : > { %5037 = vpow2.f32 %v2538_v15  ;;  %v4955_v33 = vpop.permute.xlu0 %4954  ;;  %v2529_v5 = vsub.f32 %v6326_v13, %v2520_v16 }
 0x702   : > { %5039 = vpow2.f32 %v2540_v58  ;;  %1992 = vperm.xlu1 %4867, %v6560_v1   ;;  %v4957_v24 = vunpack.i.h.bf16 %v4955_v33  ;;  %v4956_v46 = vunpack.i.l.bf16 %v4955_v33 }
 0x703   : > { %4759 = vmatpush3.bf16.xpose.msk.msra.mxu1 %vm5422_vm2, %v4754_v7  ;;  %v2544_v40 = vmul.f32 1.442695, %v2529_v5  ;;  %v7285_v7 = vld [vmem:[#allocation12_spill] sm:$0xff] }
 0x704   : > { %v5032_v60 = vpop.eup %5031  ;;  %v2515_v61 = vpop.permute.xlu1 %2514  ;;  %4762 = vmatprep.subr.msk.bf16.mxu1 %vm5422_vm2, %v4760_v42  ;;  %v2866_v52 = vsel %vm609_vm0, %v4957_v24, %v7282_v19  ;;  %v2865_v0 = vsel %vm609_vm0, %v4956_v46, %v7283_v8  ;;  %v2867_v54 = vsel %vm609_vm0, %v4961_v50, %v7285_v7  ;;  %v7290_v50 = vld [vmem:[#allocation16_spill] sm:$0xff] }
 0x705   : > { %v6568_v25 = vpop.eup %5033  ;;  %v2528_v29 = vsub.f32 %v6330_v31, %v2515_v61  ;;  %v2572_v20 = vsel %vm1206_vm4, %v5032_v60, 0.0  ;;  %v897_v13 = vpop.permute.xlu0 %896  ;;  %v4766_v32 = vpack.c.bf16 %v2866_v52, %v2865_v0  ;;  %v4772_v10 = vpack.c.bf16 %v2868_v43, %v2867_v54 }
 0x706   : > { %2002 = vperm.xlu1 %4867, %v6568_v25   ;;  %2573 = vadd.xlane.f32.xlu0 %v2572_v20  ;;  %v2563_v52 = vsel %vm1206_vm4, %v6537_v22, 0.0 }
 0x707   : > { %v2542_v28 = vmul.f32 1.442695, %v2528_v29 }
 0x708   : > { %v6577_v2 = vpop.eup %5035  ;;  %v929_v26 = vpop.permute.xlu1 %928 }
 0x709   : > { %5041 = vpow2.f32 %v2542_v28  ;;  %v952_v31 = vsel %vm609_vm0, %v897_v13, %v929_v26  ;;  %4569 = vmatprep.mubr.msk.f32.mxu1 %vm1206_vm4, %v6577_v2  ;;  %v899_v36 = vpop.permute.xlu0 %898  ;;  %v2569_v0 = vsel %vm1206_vm4, %v6577_v2, 0.0  ;;  %v7292_v2 = vld [vmem:[#allocation17_spill] sm:$0xff] }
 0x70a   : > { %5043 = vpow2.f32 %v2544_v40  ;;  %961 = vst.msk [vmem:[#allocation5 + $0xc0] sm:$0xff] %vm706_vm1, %v952_v31  ;;  %4570 = vmatmul.mubr.msk.f32.gmra.mrb[18].mxu1 %vm1206_vm4, %v5032_v60  ;;  %v7286_v31 = vld [vmem:[#allocation13_spill] sm:$0xff] }
 0x70b   : > { %v6584_v57 = vpop.eup %5037  ;;  %4765 = vmatpush3.bf16.xpose.msk.msra.mxu1 %vm5422_vm2, %v4760_v42 }
 0x70c   : > { %v5040_v9 = vpop.eup %5039  ;;  %v931_v17 = vpop.permute.xlu1 %930  ;;  %4572 = vmatprep.mubr.msk.f32.mxu1 %vm1206_vm4, %v6584_v57  ;;  %4768 = vmatprep.subr.msk.bf16.mxu1 %vm5422_vm2, %v4766_v32  ;;  %v2575_v26 = vsel %vm1206_vm4, %v6584_v57, 0.0  ;;  %v1329_v57 = vld [vmem:[#allocation3 + $0x10] sm:$0xff] }
 0x70d   : > { %v953_v6 = vsel %vm609_vm0, %v899_v36, %v931_v17  ;;  %v2578_v18 = vsel %vm1206_vm4, %v5040_v9, 0.0  ;;  %v901_v4 = vpop.permute.xlu0 %900  ;;  %v7287_v36 = vld [vmem:[#allocation14_spill] sm:$0xff] }
 0x70e   : > { %962 = vst.msk [vmem:[#allocation5 + $0xc8] sm:$0xff] %vm706_vm1, %v953_v6  ;;  %2579 = vadd.xlane.f32.xlu0 %v2578_v18  ;;  %4573 = vmatmul.mubr.msk.f32.gmra.mrb[20].mxu1 %vm1206_vm4, %v5040_v9  ;;  %v7288_v22 = vsub.f32 %v7286_v31, %v7287_v36  ;;  %v7291_v9 = vsub.f32 %v7289_v44, %v7290_v50  ;;  %v1327_v6 = vld [vmem:[#allocation3] sm:$0xff]  ;;  %v7293_v18 = vld [vmem:[#allocation18_spill] sm:$0xff]  ;;  %v1334_v44 = vld [vmem:[#allocation3 + $0x38] sm:$0xff] }
 0x70f   : > { %v1335_v43 = vmul.f32 %v6514_v14, %v1327_v6  ;;  %v7298_v14 = vld [vmem:[#allocation33_spill] sm:$0xff]  ;;  %v1333_v50 = vld [vmem:[#allocation3 + $0x30] sm:$0xff]  ;;  %v7307_v6 = vld [vmem:[#allocation34_spill] sm:$0xff] }
 0x710   : > { %v933_v47 = vpop.permute.xlu1 %932  ;;  %v1255_v17 = vmul.f32 1.442695, %v7291_v9 }
 0x711   : > { %v954_v48 = vsel %vm609_vm0, %v901_v4, %v933_v47  ;;  %v903_v23 = vpop.permute.xlu0 %902  ;;  %v2870_v59 = vld [vmem:[#allocation5 + $0xc0] sm:$0xff]  ;;  %v7294_v4 = vsub.f32 %v7292_v2, %v7293_v18  ;;  %v7295_v47 = vld [vmem:[#allocation27_spill] sm:$0xff]  ;;  %v7308_v2 = vld [vmem:[#allocation36_spill] sm:$0xff] }
 0x712   : > { %963 = vst.msk [vmem:[#allocation5 + $0xd0] sm:$0xff] %vm706_vm1, %v954_v48  ;;  %v7296_v48 = vld [vmem:[#allocation28_spill] sm:$0xff]  ;;  %v7309_v18 = vsub.f32 %v7307_v6, %v7308_v2 }
 0x713   : > { %v6604_v56 = vpop.eup %5041  ;;  %4771 = vmatpush3.bf16.xpose.msk.msra.mxu1 %vm5422_vm2, %v4766_v32  ;;  %v1249_v32 = vmul.f32 1.442695, %v7288_v22  ;;  %v1259_v39 = vmul.f32 1.442695, %v7294_v4 }
 0x714   : > { %v6608_v3 = vpop.eup %5043  ;;  %v935_v55 = vpop.permute.xlu1 %934  ;;  %4575 = vmatprep.mubr.msk.f32.mxu1 %vm1206_vm4, %v6604_v56  ;;  %4774 = vmatprep.subr.msk.bf16.mxu1 %vm5422_vm2, %v4772_v10  ;;  %v1854_v4 = vmul.f32 1.442695, %v7309_v18  ;;  %v1386_v18 = vld [vmem:[#allocation4 + $0x10] sm:$0xff] }
 0x715   : > { %v955_v34 = vsel %vm609_vm0, %v903_v23, %v935_v55  ;;  %4576 = vmatmul.mubr.msk.f32.gmra.mrb[22].mxu1 %vm1206_vm4, %v6608_v3  ;;  %v905_v30 = vpop.permute.xlu0 %904  ;;  %v2871_v60 = vld [vmem:[#allocation5 + $0xc8] sm:$0xff]  ;;  %5045 = vpow2.f32 %v1249_v32  ;;  %v7297_v23 = vsub.f32 %v7295_v47, %v7296_v48 }
 0x716   : > { %964 = vst.msk [vmem:[#allocation5 + $0xd8] sm:$0xff] %vm706_vm1, %v955_v34  ;;  %4594 = vmatprep.mubr.msk.f32.mxu1 %vm706_vm1, %v2870_v59  ;;  %5047 = vpow2.f32 %v1255_v17  ;;  %v1337_v59 = vmul.f32 %v6520_v38, %v1329_v57  ;;  %v1926_v47 = vld [vmem:[#allocation3 + $0x48] sm:$0xff] }
 0x717   : > { %5049 = vpow2.f32 %v1259_v39 }
 0x718   : > { %v937_v15 = vpop.permute.xlu1 %936 }
 0x719   : > { %v956_v58 = vsel %vm609_vm0, %v905_v30, %v937_v15  ;;  %v907_v16 = vpop.permute.xlu0 %906  ;;  %v2872_v61 = vld [vmem:[#allocation5 + $0xd0] sm:$0xff]  ;;  %v1330_v30 = vld [vmem:[#allocation3 + $0x18] sm:$0xff]  ;;  %v1328_v15 = vld [vmem:[#allocation3 + $0x8] sm:$0xff] }
 0x71a   : > { %965 = vst.msk [vmem:[#allocation5 + $0xe0] sm:$0xff] %vm706_vm1, %v956_v58 }
 0x71b   : > { %4777 = vmatpush3.bf16.xpose.msk.msra.mxu1 %vm5422_vm2, %v4772_v10  ;;  %v1846_v10 = vmul.f32 1.442695, %v7297_v23 }
 0x71c   : > { %v939_v33 = vpop.permute.xlu1 %938 }
 0x71d   : > { %v957_v5 = vsel %vm609_vm0, %v907_v16, %v939_v33  ;;  %v909_v42 = vpop.permute.xlu0 %908  ;;  %v2873_v40 = vld [vmem:[#allocation5 + $0xd8] sm:$0xff]  ;;  %5051 = vpow2.f32 %v1846_v10  ;;  %v7299_v16 = vld [vmem:[#allocation35_spill] sm:$0xff]  ;;  %v7310_v10 = vld [vmem:[#allocation37_spill] sm:$0xff] }
 0x71e   : > { %966 = vst.msk [vmem:[#allocation5 + $0xe8] sm:$0xff] %vm706_vm1, %v957_v5  ;;  %v7300_v33 = vsub.f32 %v7298_v14, %v7299_v16 }
 0x71f   : > { %v6657_v55 = vpop.eup %5045 }
 0x720   : > { %v941_v24 = vpop.permute.xlu1 %940  ;;  %v1852_v5 = vmul.f32 1.442695, %v7300_v33  ;;  %v1927_v33 = vld [vmem:[#allocation3 + $0x50] sm:$0xff] }
 0x721   : > { %v958_v46 = vsel %vm609_vm0, %v909_v42, %v941_v24  ;;  %v911_v29 = vpop.permute.xlu0 %910  ;;  %v2874_v20 = vld [vmem:[#allocation5 + $0xe0] sm:$0xff]  ;;  %v1338_v42 = vmul.f32 %v6526_v35, %v1330_v30  ;;  %v1336_v24 = vmul.f32 %v6657_v55, %v1328_v15 }
 0x722   : > { %967 = vst.msk [vmem:[#allocation5 + $0xf0] sm:$0xff] %vm706_vm1, %v958_v46  ;;  %4595 = vmatmul.mubr.msk.f32.vlgmr.msra.gmra.mrb[24].mxu1 %vm706_vm1, %v2871_v60  ;;  %v6665_v46 = vpop.eup %5047  ;;  %5053 = vpow2.f32 %v1852_v5  ;;  %v1929_v5 = vld [vmem:[#allocation3 + $0x60] sm:$0xff] }
 0x723   : > { %4597 = vmatprep.mubr.msk.f32.mxu1 %vm706_vm1, %v2872_v61  ;;  %v1332_v61 = vld [vmem:[#allocation3 + $0x28] sm:$0xff]  ;;  %v6677_v36 = vpop.eup %5049 }
 0x724   : > { %v943_v53 = vpop.permute.xlu1 %942  ;;  %v1340_v35 = vmul.f32 %v6542_v49, %v1332_v61  ;;  %v1342_v49 = vmul.f32 %v6550_v11, %v1334_v44  ;;  %v1341_v39 = vmul.f32 %v6677_v36, %v1333_v50 }
 0x725   : > { %v959_v13 = vsel %vm609_vm0, %v911_v29, %v943_v53  ;;  %v2875_v19 = vld [vmem:[#allocation5 + $0xe8] sm:$0xff]  ;;  %v1331_v29 = vld [vmem:[#allocation3 + $0x20] sm:$0xff]  ;;  %v7301_v53 = vld [vmem:[#allocation31_spill] sm:$0xff] }
 0x726   : > { %968 = vst.msk [vmem:[#allocation5 + $0xf8] sm:$0xff] %vm706_vm1, %v959_v13  ;;  %4598 = vmatmul.mubr.msk.f32.gmra.mrb[26].mxu1 %vm706_vm1, %v2873_v40  ;;  %v1339_v31 = vmul.f32 %v6665_v46, %v1331_v29 }
 0x727   : > { %4600 = vmatprep.mubr.msk.f32.mxu1 %vm706_vm1, %v2874_v20  ;;  %v7302_v20 = vld [vmem:[#allocation32_spill] sm:$0xff] }
 0x728   : > { %v7303_v13 = vsub.f32 %v7301_v53, %v7302_v20  ;;  %v1928_v20 = vld [vmem:[#allocation3 + $0x58] sm:$0xff] }
 0x729   : > { %v2876_v8 = vld [vmem:[#allocation5 + $0xf0] sm:$0xff] }
 0x72a   : > { %2564 = vadd.xlane.f32.xlu1 %v2563_v52  ;;  %4601 = vmatmul.mubr.msk.f32.gmra.mrb[28].mxu1 %vm706_vm1, %v2875_v19  ;;  %v1850_v40 = vmul.f32 1.442695, %v7303_v13  ;;  %v1931_v13 = vld [vmem:[#allocation3 + $0x70] sm:$0xff] }
 0x72b   : > { %4603 = vmatprep.mubr.msk.f32.mxu1 %vm706_vm1, %v2876_v8  ;;  %v7304_v8 = vld [vmem:[#allocation38_spill] sm:$0xff] }
 0x72c   : > { %5055 = vpow2.f32 %v1850_v40 }
 0x72d   : > { %v2877_v28 = vld [vmem:[#allocation5 + $0xf8] sm:$0xff] }
 0x72e   : > { %2570 = vadd.xlane.f32.xlu1 %v2569_v0  ;;  %4604 = vmatmul.mubr.msk.f32.gmra.mrb[30].mxu1 %vm706_vm1, %v2877_v28  ;;  %v7305_v0 = vld [vmem:[#allocation40_spill] sm:$0xff] }
 0x72f   : > { %v7306_v28 = vsub.f32 %v7304_v8, %v7305_v0 }
 0x732   : > { %2576 = vadd.xlane.f32.xlu1 %v2575_v26  ;;  %v1856_v26 = vmul.f32 1.442695, %v7306_v28 }
 0x734   : > { %5057 = vpow2.f32 %v1856_v26  ;;  %v1930_v26 = vld [vmem:[#allocation3 + $0x68] sm:$0xff] }
 0x735   : > { %5059 = vpow2.f32 %v1854_v4  ;;  %v7313_v4 = vld [vmem:[#allocation20_spill] sm:$0xff] }
 0x74e   : > { %v1345_v7 = vpop.xlane.xlu0 %1344 }
 0x74f   : > { %v1367_v54 = vadd.f32 %v1345_v7, %v1335_v43  ;;  %v6686_v43 = vpop.eup %5051 }
 0x750   : > { %v1934_v15 = vmul.f32 %v6686_v43, %v1926_v47 }
 0x751   : > { %1376 = vst.msk [vmem:[#allocation3] sm:$0xff] %vm544_vm3, %v1367_v54  ;;  %v1925_v54 = vld [vmem:[#allocation3 + $0x40] sm:$0xff] }
 0x752   : > { %v1351_v34 = vpop.xlane.xlu0 %1350  ;;  %v1933_v11 = vmul.f32 %v6560_v1, %v1925_v54 }
 0x753   : > { %v1369_v58 = vadd.f32 %v1351_v34, %v1337_v59  ;;  %v7311_v59 = vld [vmem:[#allocation39_spill] sm:$0xff] }
 0x754   : > { %v7312_v34 = vsub.f32 %v7310_v10, %v7311_v59 }
 0x755   : > { %1378 = vst.msk [vmem:[#allocation3 + $0x10] sm:$0xff] %vm544_vm3, %v1369_v58  ;;  %v6695_v58 = vpop.eup %5053 }
 0x756   : > { %v1354_v38 = vpop.xlane.xlu0 %1353  ;;  %v1348_v60 = vpop.xlane.xlu1 %1347  ;;  %v1858_v30 = vmul.f32 1.442695, %v7312_v34  ;;  %v1937_v1 = vmul.f32 %v6695_v58, %v1929_v5  ;;  %v1387_v34 = vld [vmem:[#allocation4 + $0x18] sm:$0xff] }
 0x757   : > { %v1370_v19 = vadd.f32 %v1354_v38, %v1338_v42  ;;  %v1368_v52 = vadd.f32 %v1348_v60, %v1336_v24  ;;  %v6697_v38 = vpop.eup %5055  ;;  %v1935_v60 = vmul.f32 %v6568_v25, %v1927_v33  ;;  %v7318_v33 = vld [vmem:[#allocation21_spill] sm:$0xff] }
 0x758   : > { %5061 = vpow2.f32 %v1858_v30  ;;  %v6703_v61 = vpop.eup %5057  ;;  %v7317_v30 = vld [vmem:[#allocation22_spill] sm:$0xff] }
 0x759   : > { %1379 = vst.msk [vmem:[#allocation3 + $0x18] sm:$0xff] %vm544_vm3, %v1370_v19  ;;  %1377 = vst.msk [vmem:[#allocation3 + $0x8] sm:$0xff] %vm544_vm3, %v1368_v52  ;;  %v1936_v52 = vmul.f32 %v6697_v38, %v1928_v20  ;;  %v1939_v8 = vmul.f32 %v6703_v61, %v1931_v13  ;;  %v6709_v0 = vpop.eup %5059  ;;  %v1982_v13 = vld [vmem:[#allocation4 + $0x40] sm:$0xff] }
 0x75a   : > { %v1360_v22 = vpop.xlane.xlu0 %1359  ;;  %v1357_v32 = vpop.xlane.xlu1 %1356 }
 0x75b   : > { %v1372_v9 = vadd.f32 %v1360_v22, %v1340_v35  ;;  %v1371_v17 = vadd.f32 %v1357_v32, %v1339_v31  ;;  %v1384_v22 = vld [vmem:[#allocation4] sm:$0xff]  ;;  %v1938_v32 = vmul.f32 %v6709_v0, %v1930_v26 }
 0x75d   : > { %1381 = vst.msk [vmem:[#allocation3 + $0x28] sm:$0xff] %vm544_vm3, %v1372_v9  ;;  %1380 = vst.msk [vmem:[#allocation3 + $0x20] sm:$0xff] %vm544_vm3, %v1371_v17  ;;  %v1932_v17 = vld [vmem:[#allocation3 + $0x78] sm:$0xff] }
 0x75e   : > { %v1366_v7 = vpop.xlane.xlu0 %1365  ;;  %v1363_v57 = vpop.xlane.xlu1 %1362 }
 0x75f   : > { %v1374_v48 = vadd.f32 %v1366_v7, %v1342_v49  ;;  %v1373_v23 = vadd.f32 %v1363_v57, %v1341_v39 }
 0x761   : > { %1383 = vst.msk [vmem:[#allocation3 + $0x38] sm:$0xff] %vm544_vm3, %v1374_v48  ;;  %1382 = vst.msk [vmem:[#allocation3 + $0x30] sm:$0xff] %vm544_vm3, %v1373_v23  ;;  %v7314_v48 = vld [vmem:[#allocation49_spill] sm:$0xff]  ;;  %v7315_v23 = vld [vmem:[#allocation51_spill] sm:$0xff] }
 0x762   : > { %v1943_v14 = vpop.xlane.xlu0 %1942  ;;  %v1946_v16 = vpop.xlane.xlu1 %1945  ;;  %v7316_v10 = vsub.f32 %v7314_v48, %v7315_v23 }
 0x763   : > { %v1965_v42 = vadd.f32 %v1943_v14, %v1933_v11  ;;  %v1966_v24 = vadd.f32 %v1946_v16, %v1934_v15  ;;  %v6714_v44 = vpop.eup %5061  ;;  %v1389_v16 = vld [vmem:[#allocation4 + $0x28] sm:$0xff] }
 0x764   : > { %v1940_v39 = vmul.f32 %v6714_v44, %v1932_v17  ;;  %v2468_v59 = vmul.f32 1.442695, %v7316_v10 }
 0x765   : > { %1973 = vst.msk [vmem:[#allocation3 + $0x40] sm:$0xff] %vm544_vm3, %v1965_v42  ;;  %1974 = vst.msk [vmem:[#allocation3 + $0x48] sm:$0xff] %vm544_vm3, %v1966_v24 }
 0x766   : > { %v1949_v29 = vpop.xlane.xlu0 %1948  ;;  %v1955_v53 = vpop.xlane.xlu1 %1954  ;;  %5063 = vpow2.f32 %v2468_v59 }
 0x767   : > { %v1967_v40 = vadd.f32 %v1949_v29, %v1935_v60  ;;  %v1969_v19 = vadd.f32 %v1955_v53, %v1937_v1  ;;  %v1391_v60 = vld [vmem:[#allocation4 + $0x38] sm:$0xff]  ;;  %v7319_v1 = vld [vmem:[#allocation23_spill] sm:$0xff] }
 0x769   : > { %1975 = vst.msk [vmem:[#allocation3 + $0x50] sm:$0xff] %vm544_vm3, %v1967_v40  ;;  %1977 = vst.msk [vmem:[#allocation3 + $0x60] sm:$0xff] %vm544_vm3, %v1969_v19  ;;  %v7320_v40 = vld [vmem:[#allocation54_spill] sm:$0xff] }
 0x76a   : > { %v1952_v25 = vpop.xlane.xlu0 %1951  ;;  %v1961_v28 = vpop.xlane.xlu1 %1960  ;;  %v7321_v19 = vsub.f32 %v7320_v40, %v6379_v63 }
 0x76b   : > { %v1968_v35 = vadd.f32 %v1952_v25, %v1936_v52  ;;  %v1971_v31 = vadd.f32 %v1961_v28, %v1939_v8  ;;  %v7322_v8 = vld [vmem:[#allocation25_spill] sm:$0xff] }
 0x76c   : > { %v2472_v52 = vmul.f32 1.442695, %v7321_v19 }
 0x76d   : > { %1976 = vst.msk [vmem:[#allocation3 + $0x58] sm:$0xff] %vm544_vm3, %v1968_v35  ;;  %1979 = vst.msk [vmem:[#allocation3 + $0x70] sm:$0xff] %vm544_vm3, %v1971_v31  ;;  %v2548_v35 = vld [vmem:[#allocation3 + $0x88] sm:$0xff] }
 0x76e   : > { %v1958_v50 = vpop.xlane.xlu0 %1957  ;;  %v1395_v9 = vpop.permute.xlu1 %1394  ;;  %5065 = vpow2.f32 %v2472_v52 }
 0x76f   : > { %v1970_v6 = vadd.f32 %v1958_v50, %v1938_v32  ;;  %v1432_v2 = vmul.f32 %v1395_v9, %v1384_v22  ;;  %v1984_v22 = vld [vmem:[#allocation4 + $0x50] sm:$0xff]  ;;  %v7323_v32 = vld [vmem:[#allocation42_spill] sm:$0xff] }
 0x770   : > { %v6734_v28 = vpop.eup %5063 }
 0x771   : > { %1978 = vst.msk [vmem:[#allocation3 + $0x68] sm:$0xff] %vm544_vm3, %v1970_v6  ;;  %v1569_v49 = vadd.f32 %v7313_v4, %v1432_v2  ;;  %v2556_v9 = vmul.f32 %v6734_v28, %v2548_v35 }
 0x772   : > { %v1964_v7 = vpop.xlane.xlu0 %1963  ;;  %v1405_v57 = vpop.permute.xlu1 %1404 }
 0x773   : > { %1577 = vst.msk [vmem:[#allocation4] sm:$0xff] %vm609_vm0, %v1569_v49  ;;  %v1972_v54 = vadd.f32 %v1964_v7, %v1940_v39  ;;  %v1434_v47 = vmul.f32 %v1405_v57, %v1386_v18  ;;  %v7324_v18 = vsub.f32 %v6384_v27, %v6400_v37  ;;  %v7325_v49 = vld [vmem:[#allocation44_spill] sm:$0xff]  ;;  %v2552_v27 = vld [vmem:[#allocation3 + $0xa8] sm:$0xff] }
 0x774   : > { %v2550_v57 = vld [vmem:[#allocation3 + $0x98] sm:$0xff] }
 0x775   : > { %1980 = vst.msk [vmem:[#allocation3 + $0x78] sm:$0xff] %vm544_vm3, %v1972_v54  ;;  %v1571_v11 = vadd.f32 %v7317_v30, %v1434_v47  ;;  %v2476_v4 = vmul.f32 1.442695, %v7324_v18  ;;  %v7327_v30 = vld [vmem:[#allocation52_spill] sm:$0xff] }
 0x776   : > { %v1410_v15 = vpop.permute.xlu1 %1409 }
 0x777   : > { %1579 = vst.msk [vmem:[#allocation4 + $0x10] sm:$0xff] %vm609_vm0, %v1571_v11  ;;  %v1435_v14 = vmul.f32 %v1410_v15, %v1387_v34  ;;  %5067 = vpow2.f32 %v2476_v4  ;;  %v7326_v34 = vld [vmem:[#allocation50_spill] sm:$0xff] }
 0x778   : > { %v6746_v7 = vpop.eup %5065  ;;  %v7328_v11 = vsub.f32 %v7326_v34, %v7327_v30 }
 0x779   : > { %v1572_v5 = vadd.f32 %v7318_v33, %v1435_v14  ;;  %v2558_v54 = vmul.f32 %v6746_v7, %v2550_v57  ;;  %v7329_v14 = vld [vmem:[#allocation53_spill] sm:$0xff] }
 0x77a   : > { %v1420_v42 = vpop.permute.xlu1 %1419  ;;  %v2466_v15 = vmul.f32 1.442695, %v7328_v11 }
 0x77b   : > { %1580 = vst.msk [vmem:[#allocation4 + $0x18] sm:$0xff] %vm609_vm0, %v1572_v5  ;;  %v1437_v24 = vmul.f32 %v1420_v42, %v1389_v16  ;;  %v7330_v16 = vsub.f32 %v7329_v14, %v6364_v12  ;;  %v7331_v5 = vld [vmem:[#allocation55_spill] sm:$0xff]  ;;  %v5191_v14 = vld [vmem:[%s5610_s12] sm:$0xff] }
 0x77c   : > { %5069 = vpow2.f32 %v2466_v15  ;;  %v7332_v42 = vsub.f32 %v7331_v5, %v6387_v21  ;;  %v2584_v15 = vsel %vm1206_vm4, %v6608_v3, 0.0  ;;  %v7333_v3 = vsub.f32 %v6412_v62, %v6419_v51  ;;  %v6856_v5 = vld [vmem:[#allocation2 + $0xd8] sm:$0xff] }
 0x77d   : > { %v1574_v29 = vadd.f32 %v7319_v1, %v1437_v24  ;;  %v2470_v33 = vmul.f32 1.442695, %v7330_v16  ;;  %v2547_v1 = vld [vmem:[#allocation3 + $0x80] sm:$0xff]  ;;  %v5192_v16 = vld [vmem:[%s5610_s12 + $0x8] sm:$0xff] }
 0x77e   : > { %v1430_v53 = vpop.permute.xlu1 %1429  ;;  %v2474_v24 = vmul.f32 1.442695, %v7332_v42 }
 0x77f   : > { %1582 = vst.msk [vmem:[#allocation4 + $0x28] sm:$0xff] %vm609_vm0, %v1574_v29  ;;  %v1439_v20 = vmul.f32 %v1430_v53, %v1391_v60  ;;  %5071 = vpow2.f32 %v2470_v33  ;;  %v4963_v33 = vpack.i.bf16 %v5192_v16, %v5191_v14 }
 0x780   : > { %5073 = vpow2.f32 %v2474_v24 }
 0x781   : > { %v1576_v25 = vadd.f32 %v7322_v8, %v1439_v20  ;;  %v6750_v23 = vpop.eup %5067  ;;  %v2551_v8 = vld [vmem:[#allocation3 + $0xa0] sm:$0xff] }
 0x782   : > { %v1993_v26 = vpop.permute.xlu1 %1992  ;;  %v2560_v37 = vmul.f32 %v6750_v23, %v2552_v27 }
 0x783   : > { %1584 = vst.msk [vmem:[#allocation4 + $0x38] sm:$0xff] %vm609_vm0, %v1576_v25  ;;  %v2030_v31 = vmul.f32 %v1993_v26, %v1982_v13  ;;  %v2549_v13 = vld [vmem:[#allocation3 + $0x90] sm:$0xff] }
 0x785   : > { %v2199_v50 = vadd.f32 %v7323_v32, %v2030_v31 }
 0x786   : > { %v2568_v17 = vpop.xlane.xlu0 %2567  ;;  %v2003_v6 = vpop.permute.xlu1 %2002 }
 0x787   : > { %2207 = vst.msk [vmem:[#allocation4 + $0x40] sm:$0xff] %vm609_vm0, %v2199_v50  ;;  %v2588_v63 = vadd.f32 %v2568_v17, %v2556_v9  ;;  %v2032_v2 = vmul.f32 %v2003_v6, %v1984_v22  ;;  %v5070_v60 = vpop.eup %5069 }
 0x788   : > { %v2555_v29 = vmul.f32 %v5070_v60, %v2547_v1  ;;  %v6867_v1 = vld [vmem:[#allocation2 + $0xe0] sm:$0xff] }
 0x789   : > { %2596 = vst.msk [vmem:[#allocation3 + $0x88] sm:$0xff] %vm544_vm3, %v2588_v63  ;;  %v2201_v39 = vadd.f32 %v7325_v49, %v2032_v2  ;;  %v5072_v53 = vpop.eup %5071 }
 0x78a   : > { %v2557_v19 = vmul.f32 %v5072_v53, %v2549_v13  ;;  %v6764_v52 = vpop.eup %5073 }
 0x78b   : > { %2209 = vst.msk [vmem:[#allocation4 + $0x50] sm:$0xff] %vm609_vm0, %v2201_v39  ;;  %v2559_v21 = vmul.f32 %v6764_v52, %v2551_v8  ;;  %v5193_v8 = vld [vmem:[%s5610_s12 + $0x10] sm:$0xff] }
 0x793   : > { %v2574_v47 = vpop.xlane.xlu0 %2573 }
 0x794   : > { %v2590_v48 = vadd.f32 %v2574_v47, %v2558_v54  ;;  %v2581_v54 = vsel %vm1206_vm4, %v6604_v56, 0.0 }
 0x796   : > { %2598 = vst.msk [vmem:[#allocation3 + $0x98] sm:$0xff] %vm544_vm3, %v2590_v48 }
 0x79b   : > { %v2580_v10 = vpop.xlane.xlu0 %2579 }
 0x79c   : > { %v2592_v59 = vadd.f32 %v2580_v10, %v2560_v37 }
 0x79e   : > { %2600 = vst.msk [vmem:[#allocation3 + $0xa8] sm:$0xff] %vm544_vm3, %v2592_v59 }
 0x7b7   : > { %v2565_v20 = vpop.xlane.xlu1 %2564 }
 0x7b8   : > { %v2587_v40 = vadd.f32 %v2565_v20, %v2555_v29 }
 0x7ba   : > { %2595 = vst.msk [vmem:[#allocation3 + $0x80] sm:$0xff] %vm544_vm3, %v2587_v40  ;;  %v6878_v40 = vld [vmem:[#allocation2 + $0xe8] sm:$0xff] }
 0x7bb   : > { %v2571_v12 = vpop.xlane.xlu1 %2570 }
 0x7bc   : > { %v2589_v25 = vadd.f32 %v2571_v12, %v2557_v19  ;;  %v6880_v19 = vld [vmem:[#allocation2 + $0xf0] sm:$0xff] }
 0x7be   : > { %2597 = vst.msk [vmem:[#allocation3 + $0x90] sm:$0xff] %vm544_vm3, %v2589_v25  ;;  %v5194_v25 = vld [vmem:[%s5610_s12 + $0x18] sm:$0xff] }
 0x7bf   : > { %v2577_v26 = vpop.xlane.xlu1 %2576 }
 0x7c0   : > { %v2591_v35 = vadd.f32 %v2577_v26, %v2559_v21  ;;  %v4968_v21 = vpack.i.bf16 %v5194_v25, %v5193_v8 }
 0x7c2   : > { %2599 = vst.msk [vmem:[#allocation3 + $0xa0] sm:$0xff] %vm544_vm3, %v2591_v35 }
 0x7d0   : > { %v6769_v31 = vpop.f32.mrb[16].mxu1 }
 0x7d1   : > { %v6771_v22 = vpop.f32.mrb[17].mxu1 }
 0x7dd   : > { %v6773_v32 = vpop.f32.mrb[18].mxu1 }
 0x7de   : > { %v6775_v50 = vpop.f32.mrb[19].mxu1 }
 0x7e1   : > { %v6777_v9 = vpop.f32.mrb[20].mxu1 }
 0x7e2   : > { %v6779_v17 = vpop.f32.mrb[21].mxu1 }
 0x7e8   : > { %v6781_v6 = vpop.f32.mrb[22].mxu1 }
 0x7e9   : > { %v6783_v63 = vpop.f32.mrb[23].mxu1 }
 0x7f5   : > { %v6785_v2 = vpop.f32.mrb[24].mxu1 }
 0x7f6   : > { %v6787_v18 = vpop.f32.mrb[25].mxu1  ;;  %v3043_v4 = vsel %vm1206_vm4, %v6785_v2, -inf }
 0x7f7   : > { %3044 = vmax.xlane.f32.xlu1 %v3043_v4  ;;  %v3040_v49 = vsel %vm1206_vm4, %v6787_v18, -inf }
 0x7f8   : > { %3041 = vmax.xlane.f32.xlu0 %v3040_v49 }
 0x7f9   : > { %v6793_v39 = vpop.f32.mrb[26].mxu1 }
 0x7fa   : > { %v6795_v57 = vpop.f32.mrb[27].mxu1  ;;  %v3049_v47 = vsel %vm1206_vm4, %v6793_v39, -inf }
 0x7fb   : > { %2582 = vadd.xlane.f32.xlu1 %v2581_v54  ;;  %v3046_v37 = vsel %vm1206_vm4, %v6795_v57, -inf  ;;  %v6898_v54 = vld [vmem:[#allocation2 + $0xf8] sm:$0xff] }
 0x7fc   : > { %3050 = vmax.xlane.f32.xlu0 %v3049_v47  ;;  %v1985_v47 = vld [vmem:[#allocation4 + $0x58] sm:$0xff] }
 0x7fd   : > { %v6801_v48 = vpop.f32.mrb[28].mxu1 }
 0x7fe   : > { %v6803_v27 = vpop.f32.mrb[29].mxu1  ;;  %v3055_v30 = vsel %vm1206_vm4, %v6801_v48, -inf }
 0x7ff   : > { %v3052_v10 = vsel %vm1206_vm4, %v6803_v27, -inf }
 0x800   : > { %3047 = vmax.xlane.f32.xlu0 %v3046_v37  ;;  %3053 = vmax.xlane.f32.xlu1 %v3052_v10 }
 0x801   : > { %v6809_v59 = vpop.f32.mrb[30].mxu1 }
 0x802   : > { %v6811_v56 = vpop.f32.mrb[31].mxu1  ;;  %v3061_v11 = vsel %vm1206_vm4, %v6809_v59, -inf }
 0x803   : > { %v3058_v34 = vsel %vm1206_vm4, %v6811_v56, -inf }
 0x804   : > { %3056 = vmax.xlane.f32.xlu0 %v3055_v30  ;;  %3059 = vmax.xlane.f32.xlu1 %v3058_v34  ;;  %v2554_v30 = vld [vmem:[#allocation3 + $0xb8] sm:$0xff] }
 0x808   : > { %3062 = vmax.xlane.f32.xlu0 %v3061_v11 }
 0x80c   : > { %2585 = vadd.xlane.f32.xlu0 %v2584_v15 }
 0x815   : > { %2007 = vperm.xlu1 %4867, %v6697_v38   ;;  %v6837_v38 = vld [vmem:[#allocation2 + $0xc8] sm:$0xff] }
 0x819   : > { %2017 = vperm.xlu1 %4867, %v6709_v0  }
 0x81d   : > { %2027 = vperm.xlu1 %4867, %v6714_v44   ;;  %v2553_v44 = vld [vmem:[#allocation3 + $0xb0] sm:$0xff] }
 0x821   : > { %2614 = vperm.xlu1 %4867, %v5070_v60   ;;  %v6865_v60 = vld [vmem:[#allocation2 + $0xd0] sm:$0xff] }
 0x822   : > { %1399 = vperm.xlu0 %4861, %v6657_v55   ;;  %v2478_v55 = vmul.f32 1.442695, %v7333_v3 }
 0x824   : > { %5075 = vpow2.f32 %v2478_v55  ;;  %v1987_v55 = vld [vmem:[#allocation4 + $0x68] sm:$0xff] }
 0x825   : > { %2624 = vperm.xlu1 %4867, %v5072_v53  }
 0x826   : > { %1414 = vperm.xlu0 %4861, %v6665_v46   ;;  %v6839_v46 = vld [vmem:[#allocation2 + $0xc0] sm:$0xff] }
 0x829   : > { %4964 = vrot.lane.b32.xlu1 %v4963_v33, %s5239_s30 }
 0x82a   : > { %1424 = vperm.xlu0 %4861, %v6677_v36  }
 0x82e   : > { %1997 = vperm.xlu0 %4861, %v6686_v43   ;;  %v6841_v0 = vpop.eup %5075 }
 0x82f   : > { %v2561_v51 = vmul.f32 %v6841_v0, %v2553_v44  ;;  %v5196_v44 = vld [vmem:[%s5610_s12 + $0x38] sm:$0xff] }
 0x832   : > { %2012 = vperm.xlu0 %4861, %v6695_v58  }
 0x836   : > { %2022 = vperm.xlu0 %4861, %v6703_v61   ;;  %v7334_v61 = vsub.f32 %v6405_v41, %v6415_v45 }
 0x83a   : > { %2619 = vperm.xlu0 %4861, %v6734_v28   ;;  %v2480_v28 = vmul.f32 1.442695, %v7334_v61 }
 0x83c   : > { %5077 = vpow2.f32 %v2480_v28  ;;  %v5197_v28 = vld [vmem:[%s5610_s12 + $0x20] sm:$0xff] }
 0x846   : > { %v6900_v37 = vpop.eup %5077 }
 0x847   : > { %v2562_v3 = vmul.f32 %v6900_v37, %v2554_v30 }
 0x884   : > { %v3045_v36 = vpop.xlane.xlu1 %3044 }
 0x885   : > { %v6844_v43 = vmax.f32 %v6837_v38, %v3045_v36  ;;  %v3042_v58 = vpop.xlane.xlu0 %3041  ;;  %v5195_v36 = vld [vmem:[%s5610_s12 + $0x30] sm:$0xff] }
 0x886   : > { %v6850_v62 = vmax.f32 %v6839_v46, %v3042_v58  ;;  %v4978_v58 = vpack.i.bf16 %v5196_v44, %v5195_v36 }
 0x887   : > { %3444 = vst.msk [vmem:[#allocation2 + $0xc8] sm:$0xff] %vm544_vm3, %v6844_v43  ;;  %3103 = vperm.xlu0 %4861, %v6844_v43   ;;  %v3073_v11 = vsub.f32 %v6837_v38, %v6844_v43  ;;  %v7335_v38 = vld [vmem:[#allocation43_spill] sm:$0xff] }
 0x888   : > { %3443 = vst.msk [vmem:[#allocation2 + $0xc0] sm:$0xff] %vm544_vm3, %v6850_v62  ;;  %v2583_v42 = vpop.xlane.xlu1 %2582  ;;  %3098 = vperm.xlu1 %4867, %v6850_v62  }
 0x889   : > { %v2593_v41 = vadd.f32 %v2583_v42, %v2561_v51  ;;  %v3051_v45 = vpop.xlane.xlu0 %3050  ;;  %v5198_v51 = vld [vmem:[%s5610_s12 + $0x28] sm:$0xff] }
 0x88a   : > { %v6862_v24 = vmax.f32 %v6856_v5, %v3051_v45  ;;  %v4973_v42 = vpack.i.bf16 %v5198_v51, %v5197_v28  ;;  %v3072_v45 = vsub.f32 %v6839_v46, %v6850_v62 }
 0x88b   : > { %2601 = vst.msk [vmem:[#allocation3 + $0xb0] sm:$0xff] %vm544_vm3, %v2593_v41  ;;  %v3082_v41 = vmul.f32 1.442695, %v3073_v11  ;;  %v1385_v11 = vld [vmem:[#allocation4 + $0x8] sm:$0xff] }
 0x88c   : > { %3446 = vst.msk [vmem:[#allocation2 + $0xd8] sm:$0xff] %vm544_vm3, %v6862_v24  ;;  %3113 = vperm.xlu0 %4861, %v6862_v24   ;;  %v3075_v46 = vsub.f32 %v6856_v5, %v6862_v24 }
 0x88d   : > { %v3048_v29 = vpop.xlane.xlu0 %3047  ;;  %v3054_v53 = vpop.xlane.xlu1 %3053  ;;  %5079 = vpow2.f32 %v3082_v41 }
 0x88e   : > { %v6873_v20 = vmax.f32 %v6865_v60, %v3048_v29  ;;  %v6876_v13 = vmax.f32 %v6867_v1, %v3054_v53 }
 0x890   : > { %3445 = vst.msk [vmem:[#allocation2 + $0xd0] sm:$0xff] %vm544_vm3, %v6873_v20  ;;  %v3076_v12 = vsub.f32 %v6867_v1, %v6876_v13  ;;  %3447 = vst.msk [vmem:[#allocation2 + $0xe0] sm:$0xff] %vm544_vm3, %v6876_v13  ;;  %3118 = vperm.xlu0 %4861, %v6876_v13   ;;  %3108 = vperm.xlu1 %4867, %v6873_v20   ;;  %v3460_v1 = vld [vmem:[#allocation3 + $0x30] sm:$0xff] }
 0x891   : > { %v3057_v26 = vpop.xlane.xlu0 %3056  ;;  %v3060_v35 = vpop.xlane.xlu1 %3059 }
 0x892   : > { %v6893_v4 = vmax.f32 %v6878_v40, %v3057_v26  ;;  %v6896_v49 = vmax.f32 %v6880_v19, %v3060_v35  ;;  %v7336_v26 = vld [vmem:[#allocation45_spill] sm:$0xff] }
 0x894   : > { %v3077_v10 = vsub.f32 %v6878_v40, %v6893_v4  ;;  %3448 = vst.msk [vmem:[#allocation2 + $0xe8] sm:$0xff] %vm544_vm3, %v6893_v4  ;;  %v3078_v34 = vsub.f32 %v6880_v19, %v6896_v49  ;;  %3449 = vst.msk [vmem:[#allocation2 + $0xf0] sm:$0xff] %vm544_vm3, %v6896_v49  ;;  %4969 = vrot.lane.b32.xlu0 %v4968_v21, %s5239_s30  ;;  %3123 = vperm.xlu1 %4867, %v6893_v4   ;;  %v1989_v21 = vld [vmem:[#allocation4 + $0x78] sm:$0xff] }
 0x895   : > { %v3063_v15 = vpop.xlane.xlu0 %3062  ;;  %v2008_v14 = vpop.permute.xlu1 %2007  ;;  %v2611_v40 = vld [vmem:[#allocation4 + $0xb8] sm:$0xff] }
 0x896   : > { %v6915_v16 = vmax.f32 %v6898_v54, %v3063_v15  ;;  %v2033_v33 = vmul.f32 %v2008_v14, %v1985_v47  ;;  %v3080_v47 = vmul.f32 1.442695, %v3072_v45  ;;  %v2604_v15 = vld [vmem:[#allocation4 + $0x80] sm:$0xff]  ;;  %v7337_v14 = vld [vmem:[#allocation47_spill] sm:$0xff] }
 0x897   : > { %v6951_v41 = vpop.eup %5079  ;;  %v1390_v45 = vld [vmem:[#allocation4 + $0x30] sm:$0xff] }
 0x898   : > { %v3079_v61 = vsub.f32 %v6898_v54, %v6915_v16  ;;  %3450 = vst.msk [vmem:[#allocation2 + $0xf8] sm:$0xff] %vm544_vm3, %v6915_v16  ;;  %v2202_v43 = vadd.f32 %v7335_v38, %v2033_v33  ;;  %3133 = vperm.xlu0 %4861, %v6915_v16   ;;  %3128 = vperm.xlu1 %4867, %v6896_v49   ;;  %5081 = vpow2.f32 %v3080_v47  ;;  %v2606_v38 = vld [vmem:[#allocation4 + $0x90] sm:$0xff]  ;;  %v7340_v47 = vld [vmem:[#allocation26_spill] sm:$0xff] }
 0x899   : > { %v2586_v29 = vpop.xlane.xlu0 %2585  ;;  %v2018_v53 = vpop.permute.xlu1 %2017  ;;  %v3552_v49 = vld [vmem:[#allocation3 + $0x50] sm:$0xff] }
 0x89a   : > { %2210 = vst.msk [vmem:[#allocation4 + $0x58] sm:$0xff] %vm609_vm0, %v2202_v43  ;;  %v2594_v8 = vadd.f32 %v2586_v29, %v2562_v3  ;;  %v2035_v25 = vmul.f32 %v2018_v53, %v1987_v55  ;;  %v3086_v3 = vmul.f32 1.442695, %v3075_v46  ;;  %v3074_v55 = vsub.f32 %v6865_v60, %v6873_v20  ;;  %v7338_v43 = vld [vmem:[#allocation19_spill] sm:$0xff]  ;;  %v7339_v29 = vld [vmem:[#allocation24_spill] sm:$0xff] }
 0x89c   : > { %2602 = vst.msk [vmem:[#allocation3 + $0xb8] sm:$0xff] %vm544_vm3, %v2594_v8  ;;  %v2204_v35 = vadd.f32 %v7336_v26, %v2035_v25  ;;  %4979 = vrot.lane.b32.xlu0 %v4978_v58, %s5239_s30  ;;  %4974 = vrot.lane.b32.xlu1 %v4973_v42, %s5239_s30  ;;  %v1388_v58 = vld [vmem:[#allocation4 + $0x20] sm:$0xff]  ;;  %5083 = vpow2.f32 %v3086_v3 }
 0x89d   : > { %v2028_v62 = vpop.permute.xlu1 %2027 }
 0x89e   : > { %2212 = vst.msk [vmem:[#allocation4 + $0x68] sm:$0xff] %vm609_vm0, %v2204_v35  ;;  %v2037_v30 = vmul.f32 %v2028_v62, %v1989_v21  ;;  %v1983_v35 = vld [vmem:[#allocation4 + $0x48] sm:$0xff] }
 0x8a0   : > { %v2206_v33 = vadd.f32 %v7337_v14, %v2037_v30  ;;  %2634 = vperm.xlu0 %4861, %v6764_v52   ;;  %2629 = vperm.xlu1 %4867, %v6746_v7   ;;  %v3084_v7 = vmul.f32 1.442695, %v3074_v55 }
 0x8a1   : > { %v1400_v36 = vpop.permute.xlu0 %1399  ;;  %v2615_v44 = vpop.permute.xlu1 %2614 }
 0x8a2   : > { %2214 = vst.msk [vmem:[#allocation4 + $0x78] sm:$0xff] %vm609_vm0, %v2206_v33  ;;  %v1433_v5 = vmul.f32 %v1400_v36, %v1385_v11  ;;  %v2652_v24 = vmul.f32 %v2615_v44, %v2604_v15  ;;  %5085 = vpow2.f32 %v3084_v7  ;;  %v6959_v26 = vpop.eup %5081  ;;  %v1986_v11 = vld [vmem:[#allocation4 + $0x60] sm:$0xff]  ;;  %v1988_v36 = vld [vmem:[#allocation4 + $0x70] sm:$0xff]  ;;  %v7342_v44 = vld [vmem:[#allocation46_spill] sm:$0xff] }
 0x8a3   : > { %v7341_v15 = vld [vmem:[#allocation41_spill] sm:$0xff] }
 0x8a4   : > { %v1570_v28 = vadd.f32 %v7338_v43, %v1433_v5  ;;  %v2813_v51 = vadd.f32 %v6771_v22, %v2652_v24  ;;  %2644 = vperm.xlu0 %4861, %v6841_v0   ;;  %2639 = vperm.xlu1 %4867, %v6750_v23   ;;  %v7343_v43 = vld [vmem:[#allocation48_spill] sm:$0xff] }
 0x8a5   : > { %v1415_v52 = vpop.permute.xlu0 %1414  ;;  %v2625_v60 = vpop.permute.xlu1 %2624 }
 0x8a6   : > { %1578 = vst.msk [vmem:[#allocation4 + $0x8] sm:$0xff] %vm609_vm0, %v1570_v28  ;;  %2821 = vst.msk [vmem:[#allocation4 + $0x80] sm:$0xff] %vm609_vm0, %v2813_v51  ;;  %v1436_v20 = vmul.f32 %v1415_v52, %v1388_v58  ;;  %v2654_v42 = vmul.f32 %v2625_v60, %v2606_v38  ;;  %v6964_v30 = vpop.eup %5083  ;;  %v2605_v38 = vld [vmem:[#allocation4 + $0x88] sm:$0xff] }
 0x8a8   : > { %v1573_v53 = vadd.f32 %v7339_v29, %v1436_v20  ;;  %v2815_v22 = vadd.f32 %v6775_v50, %v2654_v42  ;;  %3233 = vperm.xlu0 %4861, %v6951_v41   ;;  %2649 = vperm.xlu1 %4867, %v6900_v37  }
 0x8a9   : > { %v1425_v23 = vpop.permute.xlu0 %1424  ;;  %v4965_v0 = vpop.permute.xlu1 %4964 }
 0x8aa   : > { %1581 = vst.msk [vmem:[#allocation4 + $0x20] sm:$0xff] %vm609_vm0, %v1573_v53  ;;  %2823 = vst.msk [vmem:[#allocation4 + $0x90] sm:$0xff] %vm609_vm0, %v2815_v22  ;;  %v1438_v8 = vmul.f32 %v1425_v23, %v1390_v45  ;;  %v4967_v25 = vunpack.i.h.bf16 %v4965_v0  ;;  %v4966_v21 = vunpack.i.l.bf16 %v4965_v0 }
 0x8ac   : > { %v1575_v46 = vadd.f32 %v7340_v47, %v1438_v8  ;;  %3228 = vperm.xlu1 %4867, %v6959_v26   ;;  %v4778_v50 = vpack.c.bf16 %v4967_v25, %v4966_v21  ;;  %v6969_v55 = vpop.eup %5085 }
 0x8ad   : > { %v1998_v62 = vpop.permute.xlu0 %1997 }
 0x8ae   : > { %1583 = vst.msk [vmem:[#allocation4 + $0x30] sm:$0xff] %vm609_vm0, %v1575_v46  ;;  %v2031_v37 = vmul.f32 %v1998_v62, %v1983_v35  ;;  %4779 = vmatprep.subr.bf16.mxu0 %v4778_v50 }
 0x8af   : > { %4781 = vmatpush3.bf16.msra.mxu0 %v4778_v50 }
 0x8b0   : > { %v2200_v14 = vadd.f32 %v7341_v15, %v2031_v37  ;;  %3243 = vperm.xlu1 %4867, %v6964_v30  }
 0x8b1   : > { %v2013_v33 = vpop.permute.xlu0 %2012 }
 0x8b2   : > { %2208 = vst.msk [vmem:[#allocation4 + $0x48] sm:$0xff] %vm609_vm0, %v2200_v14  ;;  %v2034_v3 = vmul.f32 %v2013_v33, %v1986_v11 }
 0x8b4   : > { %v2203_v5 = vadd.f32 %v7342_v44, %v2034_v3  ;;  %3238 = vperm.xlu1 %4867, %v6969_v55  }
 0x8b5   : > { %v2023_v24 = vpop.permute.xlu0 %2022 }
 0x8b6   : > { %2211 = vst.msk [vmem:[#allocation4 + $0x60] sm:$0xff] %vm609_vm0, %v2203_v5  ;;  %v2036_v58 = vmul.f32 %v2023_v24, %v1988_v36 }
 0x8b8   : > { %v2205_v28 = vadd.f32 %v7343_v43, %v2036_v58 }
 0x8b9   : > { %v2620_v51 = vpop.permute.xlu0 %2619 }
 0x8ba   : > { %2213 = vst.msk [vmem:[#allocation4 + $0x70] sm:$0xff] %vm609_vm0, %v2205_v28  ;;  %v2653_v7 = vmul.f32 %v2620_v51, %v2605_v38  ;;  %v2608_v51 = vld [vmem:[#allocation4 + $0xa0] sm:$0xff] }
 0x8bc   : > { %v2814_v52 = vadd.f32 %v6769_v31, %v2653_v7  ;;  %v2607_v7 = vld [vmem:[#allocation4 + $0x98] sm:$0xff] }
 0x8be   : > { %2822 = vst.msk [vmem:[#allocation4 + $0x88] sm:$0xff] %vm609_vm0, %v2814_v52 }
 0x906   : > { %v3104_v60 = vpop.permute.xlu0 %3103 }
 0x907   : > { %v3137_v20 = vsub.f32 %v6785_v2, %v3104_v60  ;;  %v3099_v42 = vpop.permute.xlu1 %3098 }
 0x908   : > { %v3136_v45 = vsub.f32 %v6787_v18, %v3099_v42 }
 0x909   : > { %v3146_v29 = vmul.f32 1.442695, %v3137_v20 }
 0x90a   : > { %v3144_v53 = vmul.f32 1.442695, %v3136_v45 }
 0x90b   : > { %5087 = vpow2.f32 %v3146_v29  ;;  %v3114_v22 = vpop.permute.xlu0 %3113 }
 0x90c   : > { %5089 = vpow2.f32 %v3144_v53  ;;  %v3139_v23 = vsub.f32 %v6793_v39, %v3114_v22 }
 0x90e   : > { %v3150_v0 = vmul.f32 1.442695, %v3139_v23 }
 0x90f   : > { %v3119_v8 = vpop.permute.xlu0 %3118  ;;  %v3109_v25 = vpop.permute.xlu1 %3108 }
 0x910   : > { %5091 = vpow2.f32 %v3150_v0  ;;  %v3140_v31 = vsub.f32 %v6803_v27, %v3119_v8  ;;  %v3138_v21 = vsub.f32 %v6795_v57, %v3109_v25  ;;  %v2610_v8 = vld [vmem:[#allocation4 + $0xb0] sm:$0xff]  ;;  %v2609_v25 = vld [vmem:[#allocation4 + $0xa8] sm:$0xff] }
 0x912   : > { %v3152_v35 = vmul.f32 1.442695, %v3140_v31  ;;  %v3148_v2 = vmul.f32 1.442695, %v3138_v21 }
 0x913   : > { %v4970_v47 = vpop.permute.xlu0 %4969  ;;  %v3124_v46 = vpop.permute.xlu1 %3123 }
 0x914   : > { %5093 = vpow2.f32 %v3152_v35  ;;  %v4972_v18 = vunpack.i.h.bf16 %v4970_v47  ;;  %v4971_v50 = vunpack.i.l.bf16 %v4970_v47  ;;  %v3141_v62 = vsub.f32 %v6801_v48, %v3124_v46 }
 0x915   : > { %v6984_v37 = vpop.eup %5087  ;;  %5095 = vpow2.f32 %v3148_v2 }
 0x916   : > { %v5090_v39 = vpop.eup %5089  ;;  %v4782_v11 = vpack.c.bf16 %v4972_v18, %v4971_v50  ;;  %v3154_v15 = vmul.f32 1.442695, %v3141_v62  ;;  %v3180_v27 = vsel %vm1206_vm4, %v6984_v37, 0.0 }
 0x917   : > { %v3134_v14 = vpop.permute.xlu0 %3133  ;;  %3181 = vadd.xlane.f32.xlu1 %v3180_v27  ;;  %4622 = vmatprep.mubr.msk.f32.mxu0 %vm1206_vm4, %v5090_v39  ;;  %v3129_v57 = vpop.permute.xlu1 %3128  ;;  %v3177_v33 = vsel %vm1206_vm4, %v5090_v39, 0.0  ;;  %v3088_v27 = vmul.f32 1.442695, %v3076_v12 }
 0x918   : > { %5097 = vpow2.f32 %v3154_v15  ;;  %v3143_v3 = vsub.f32 %v6809_v59, %v3134_v14  ;;  %3178 = vadd.xlane.f32.xlu0 %v3177_v33  ;;  %4783 = vmatprep.subr.bf16.mxu0 %v4782_v11  ;;  %v3142_v59 = vsub.f32 %v6811_v56, %v3129_v57  ;;  %v3090_v56 = vmul.f32 1.442695, %v3077_v10  ;;  %v3456_v14 = vld [vmem:[#allocation3 + $0x10] sm:$0xff]  ;;  %v3458_v57 = vld [vmem:[#allocation3 + $0x20] sm:$0xff] }
 0x919   : > { %4785 = vmatpush3.bf16.msra.mxu0 %v4782_v11 }
 0x91a   : > { %v5092_v48 = vpop.eup %5091  ;;  %v3158_v36 = vmul.f32 1.442695, %v3143_v3  ;;  %v3156_v2 = vmul.f32 1.442695, %v3142_v59  ;;  %v3550_v3 = vld [vmem:[#allocation3 + $0x40] sm:$0xff] }
 0x91b   : > { %v4980_v44 = vpop.permute.xlu0 %4979  ;;  %v4975_v5 = vpop.permute.xlu1 %4974  ;;  %v3186_v24 = vsel %vm1206_vm4, %v5092_v48, 0.0 }
 0x91c   : > { %5099 = vpow2.f32 %v3158_v36  ;;  %v4982_v58 = vunpack.i.h.bf16 %v4980_v44  ;;  %v4981_v38 = vunpack.i.l.bf16 %v4980_v44  ;;  %v4977_v43 = vunpack.i.h.bf16 %v4975_v5  ;;  %3187 = vadd.xlane.f32.xlu0 %v3186_v24 }
 0x91d   : > { %v4976_v28 = vunpack.i.l.bf16 %v4975_v5  ;;  %5101 = vpow2.f32 %v3090_v56  ;;  %v3457_v56 = vld [vmem:[#allocation3 + $0x18] sm:$0xff] }
 0x91e   : > { %v5094_v52 = vpop.eup %5093  ;;  %v4790_v20 = vpack.c.bf16 %v4982_v58, %v4981_v38  ;;  %5103 = vpow2.f32 %v3156_v2  ;;  %v3554_v38 = vld [vmem:[#allocation3 + $0x60] sm:$0xff] }
 0x91f   : > { %v5096_v60 = vpop.eup %5095  ;;  %v4786_v42 = vpack.c.bf16 %v4977_v43, %v4976_v28  ;;  %v2635_v45 = vpop.permute.xlu0 %2634  ;;  %v3189_v53 = vsel %vm1206_vm4, %v5094_v52, 0.0 }
 0x920   : > { %v2630_v29 = vpop.permute.xlu1 %2629  ;;  %v2656_v22 = vmul.f32 %v2635_v45, %v2608_v51  ;;  %3190 = vadd.xlane.f32.xlu1 %v3189_v53  ;;  %v3183_v0 = vsel %vm1206_vm4, %v5096_v60, 0.0  ;;  %v3646_v45 = vld [vmem:[#allocation3 + $0x80] sm:$0xff]  ;;  %v3455_v53 = vld [vmem:[#allocation3 + $0x8] sm:$0xff] }
 0x921   : > { %v2655_v23 = vmul.f32 %v2630_v29, %v2607_v7  ;;  %3184 = vadd.xlane.f32.xlu0 %v3183_v0  ;;  %4787 = vmatprep.subr.bf16.mxu0 %v4786_v42 }
 0x922   : > { %v5098_v31 = vpop.eup %5097  ;;  %v2817_v21 = vadd.f32 %v6779_v17, %v2656_v22  ;;  %4789 = vmatpush3.bf16.msra.mxu0 %v4786_v42 }
 0x923   : > { %v2816_v35 = vadd.f32 %v6773_v32, %v2655_v23  ;;  %v2645_v47 = vpop.permute.xlu0 %2644  ;;  %v3192_v18 = vsel %vm1206_vm4, %v5098_v31, 0.0  ;;  %4791 = vmatprep.subr.bf16.mxu0 %v4790_v20 }
 0x924   : > { %v2640_v46 = vpop.permute.xlu1 %2639  ;;  %2825 = vst.msk [vmem:[#allocation4 + $0xa0] sm:$0xff] %vm609_vm0, %v2817_v21  ;;  %v2658_v50 = vmul.f32 %v2645_v47, %v2610_v8  ;;  %v3648_v8 = vld [vmem:[#allocation3 + $0x90] sm:$0xff]  ;;  %v3650_v47 = vld [vmem:[#allocation3 + $0xa0] sm:$0xff] }
 0x925   : > { %2824 = vst.msk [vmem:[#allocation4 + $0x98] sm:$0xff] %vm609_vm0, %v2816_v35  ;;  %v2657_v62 = vmul.f32 %v2640_v46, %v2609_v25  ;;  %3193 = vadd.xlane.f32.xlu0 %v3192_v18  ;;  %v3094_v18 = vmul.f32 1.442695, %v3079_v61  ;;  %v3551_v61 = vld [vmem:[#allocation3 + $0x48] sm:$0xff] }
 0x926   : > { %v5100_v4 = vpop.eup %5099  ;;  %v2819_v17 = vadd.f32 %v6783_v63, %v2658_v50  ;;  %4793 = vmatpush3.bf16.msra.mxu0 %v4790_v20  ;;  %v3459_v50 = vld [vmem:[#allocation3 + $0x28] sm:$0xff] }
 0x927   : > { %v2818_v32 = vadd.f32 %v6777_v9, %v2657_v62  ;;  %v3198_v39 = vsel %vm1206_vm4, %v5100_v4, 0.0  ;;  %v3454_v9 = vld [vmem:[#allocation3] sm:$0xff]  ;;  %v7015_v63 = vpop.eup %5101 }
 0x928   : > { %v2650_v10 = vpop.permute.xlu1 %2649  ;;  %2827 = vst.msk [vmem:[#allocation4 + $0xb0] sm:$0xff] %vm609_vm0, %v2819_v17  ;;  %5105 = vrcp.f32 %v3454_v9  ;;  %v3652_v17 = vld [vmem:[#allocation3 + $0xb0] sm:$0xff] }
 0x929   : > { %2826 = vst.msk [vmem:[#allocation4 + $0xa8] sm:$0xff] %vm609_vm0, %v2818_v32  ;;  %v2659_v11 = vmul.f32 %v2650_v10, %v2611_v40  ;;  %3199 = vadd.xlane.f32.xlu0 %v3198_v39  ;;  %4623 = vmatmul.mubr.msk.f32.vlgmr.msra.gmra.mrb[24].mxu0 %vm1206_vm4, %v6984_v37  ;;  %v5104_v37 = vpop.eup %5103  ;;  %5107 = vrcp.f32 %v3456_v14  ;;  %v3461_v10 = vld [vmem:[#allocation3 + $0x38] sm:$0xff] }
 0x92a   : > { %4625 = vmatprep.mubr.msk.f32.mxu0 %vm1206_vm4, %v5096_v60  ;;  %5109 = vpow2.f32 %v3088_v27 }
 0x92b   : > { %v2820_v15 = vadd.f32 %v6781_v6, %v2659_v11  ;;  %v3092_v6 = vmul.f32 1.442695, %v3078_v34  ;;  %5111 = vrcp.f32 %v3458_v57 }
 0x92d   : > { %2828 = vst.msk [vmem:[#allocation4 + $0xb8] sm:$0xff] %vm609_vm0, %v2820_v15  ;;  %4626 = vmatmul.mubr.msk.f32.gmra.mrb[26].mxu0 %vm1206_vm4, %v5092_v48  ;;  %5113 = vpow2.f32 %v3092_v6 }
 0x92e   : > { %4628 = vmatprep.mubr.msk.f32.mxu0 %vm1206_vm4, %v5094_v52  ;;  %5115 = vrcp.f32 %v3460_v1  ;;  %v3556_v52 = vld [vmem:[#allocation3 + $0x70] sm:$0xff] }
 0x92f   : > { %5117 = vrcp.f32 %v3550_v3 }
 0x930   : > { %5119 = vrcp.f32 %v3552_v49 }
 0x931   : > { %4629 = vmatmul.mubr.msk.f32.gmra.mrb[28].mxu0 %vm1206_vm4, %v5098_v31  ;;  %3253 = vperm.xlu1 %4867, %v7015_v63   ;;  %5121 = vrcp.f32 %v3554_v38  ;;  %v3195_v31 = vsel %vm1206_vm4, %v5104_v37, 0.0 }
 0x932   : > { %4631 = vmatprep.mubr.msk.f32.mxu0 %vm1206_vm4, %v5104_v37  ;;  %v5106_v13 = vpop.eup %5105  ;;  %5123 = vrcp.f32 %v3556_v52 }
 0x933   : > { %v5108_v12 = vpop.eup %5107  ;;  %v3470_v33 = vmul.f32 %v5106_v13, %v3454_v9  ;;  %5125 = vrcp.f32 %v3646_v45 }
 0x934   : > { %v7027_v48 = vpop.eup %5109  ;;  %v3472_v19 = vmul.f32 %v5108_v12, %v3456_v14  ;;  %5127 = vrcp.f32 %v3455_v53 }
 0x935   : > { %4632 = vmatmul.mubr.msk.f32.gmra.mrb[30].mxu0 %vm1206_vm4, %v5100_v4  ;;  %v5112_v36 = vpop.eup %5111  ;;  %v3478_v44 = vsub.f32 2.0, %v3470_v33  ;;  %5129 = vrcp.f32 %v3648_v8  ;;  %v3553_v33 = vld [vmem:[#allocation3 + $0x58] sm:$0xff] }
 0x936   : > { %v3480_v24 = vsub.f32 2.0, %v3472_v19  ;;  %v3474_v58 = vmul.f32 %v5112_v36, %v3458_v57  ;;  %5131 = vrcp.f32 %v3457_v56 }
 0x937   : > { %v7030_v34 = vpop.eup %5113  ;;  %v3486_v5 = vmul.f32 %v5106_v13, %v3478_v44  ;;  %5133 = vrcp.f32 %v3650_v47 }
 0x938   : > { %v5116_v43 = vpop.eup %5115  ;;  %v3488_v28 = vmul.f32 %v5108_v12, %v3480_v24  ;;  %v3482_v51 = vsub.f32 2.0, %v3474_v58  ;;  %5135 = vrcp.f32 %v3459_v50 }
 0x939   : > { %v3476_v7 = vmul.f32 %v5116_v43, %v3460_v1  ;;  %v5118_v60 = vpop.eup %5117  ;;  %5137 = vpow2.f32 %v3094_v18 }
 0x93a   : > { %v3490_v59 = vmul.f32 %v5112_v36, %v3482_v51  ;;  %v3566_v42 = vmul.f32 %v5118_v60, %v3550_v3  ;;  %v5120_v29 = vpop.eup %5119  ;;  %5139 = vrcp.f32 %v3652_v17 }
 0x93b   : > { %v3484_v20 = vsub.f32 2.0, %v3476_v7  ;;  %v3568_v0 = vmul.f32 %v5120_v29, %v3552_v49  ;;  %v5122_v25 = vpop.eup %5121  ;;  %5141 = vrcp.f32 %v3461_v10 }
 0x93c   : > { %v3574_v23 = vsub.f32 2.0, %v3566_v42  ;;  %v3570_v2 = vmul.f32 %v5122_v25, %v3554_v38  ;;  %v5124_v46 = vpop.eup %5123  ;;  %5143 = vrcp.f32 %v3551_v61  ;;  %v3555_v38 = vld [vmem:[#allocation3 + $0x68] sm:$0xff] }
 0x93d   : > { %v3492_v22 = vmul.f32 %v5116_v43, %v3484_v20  ;;  %v3576_v35 = vsub.f32 2.0, %v3568_v0  ;;  %v3572_v4 = vmul.f32 %v5124_v46, %v3556_v52  ;;  %v5126_v32 = vpop.eup %5125  ;;  %5145 = vrcp.f32 %v3553_v33  ;;  %v3557_v20 = vld [vmem:[#allocation3 + $0x78] sm:$0xff]  ;;  %v3647_v0 = vld [vmem:[#allocation3 + $0x88] sm:$0xff] }
 0x93e   : > { %v3582_v21 = vmul.f32 %v5118_v60, %v3574_v23  ;;  %v3578_v40 = vsub.f32 2.0, %v3570_v2  ;;  %v5128_v39 = vpop.eup %5127  ;;  %v3662_v9 = vmul.f32 %v5126_v32, %v3646_v45  ;;  %5147 = vrcp.f32 %v3555_v38 }
 0x93f   : > { %3248 = vperm.xlu0 %4861, %v7027_v48   ;;  %v3584_v62 = vmul.f32 %v5120_v29, %v3576_v35  ;;  %v3580_v15 = vsub.f32 2.0, %v3572_v4  ;;  %v5130_v54 = vpop.eup %5129  ;;  %v3471_v16 = vmul.f32 %v5128_v39, %v3455_v53  ;;  %5149 = vrcp.f32 %v3557_v20  ;;  %v3649_v35 = vld [vmem:[#allocation3 + $0x98] sm:$0xff] }
 0x940   : > { %v3586_v11 = vmul.f32 %v5122_v25, %v3578_v40  ;;  %v5132_v27 = vpop.eup %5131  ;;  %v3670_v37 = vsub.f32 2.0, %v3662_v9  ;;  %v3664_v6 = vmul.f32 %v5130_v54, %v3648_v8  ;;  %5151 = vrcp.f32 %v3647_v0 }
 0x941   : > { %v3588_v14 = vmul.f32 %v5124_v46, %v3580_v15  ;;  %v5134_v57 = vpop.eup %5133  ;;  %v3479_v13 = vsub.f32 2.0, %v3471_v16  ;;  %v3473_v12 = vmul.f32 %v5132_v27, %v3457_v56  ;;  %5153 = vrcp.f32 %v3649_v35 }
 0x942   : > { %v5136_v1 = vpop.eup %5135  ;;  %v3678_v36 = vmul.f32 %v5126_v32, %v3670_v37  ;;  %v3672_v44 = vsub.f32 2.0, %v3664_v6  ;;  %v3666_v19 = vmul.f32 %v5134_v57, %v3650_v47  ;;  %v3653_v32 = vld [vmem:[#allocation3 + $0xb8] sm:$0xff] }
 0x943   : > { %3258 = vperm.xlu0 %4861, %v7030_v34   ;;  %v7037_v3 = vpop.eup %5137  ;;  %v3481_v24 = vsub.f32 2.0, %v3473_v12  ;;  %v3475_v58 = vmul.f32 %v5136_v1, %v3459_v50  ;;  %v3651_v50 = vld [vmem:[#allocation3 + $0xa8] sm:$0xff] }
 0x944   : > { %v5140_v49 = vpop.eup %5139  ;;  %v3674_v51 = vsub.f32 2.0, %v3666_v19  ;;  %5155 = vrcp.f32 %v3651_v50 }
 0x945   : > { %v5142_v43 = vpop.eup %5141  ;;  %v3668_v7 = vmul.f32 %v5140_v49, %v3652_v17  ;;  %v3489_v52 = vmul.f32 %v5132_v27, %v3481_v24  ;;  %v3483_v60 = vsub.f32 2.0, %v3475_v58  ;;  %5157 = vrcp.f32 %v3653_v32  ;;  %v3162_v24 = vld [vmem:[#allocation3 + $0xc8] sm:$0xff]  ;;  %v7046_v58 = vpop.permute.xlu0 %3233 }
 0x946   : > { %v5144_v42 = vpop.eup %5143  ;;  %v3682_v45 = vmul.f32 %v5134_v57, %v3674_v51 }
 0x947   : > { %3504 = vperm.xlu0 %4861, %v3486_v5   ;;  %v3487_v5 = vmul.f32 %v5128_v39, %v3479_v13  ;;  %v3676_v29 = vsub.f32 2.0, %v3668_v7  ;;  %v3491_v53 = vmul.f32 %v5136_v1, %v3483_v60  ;;  %v3567_v23 = vmul.f32 %v5144_v42, %v3551_v61  ;;  %v5146_v8 = vpop.eup %5145  ;;  %v3164_v60 = vld [vmem:[#allocation3 + $0xd8] sm:$0xff] }
 0x948   : > { %v5148_v2 = vpop.eup %5147 }
 0x949   : > { %v3684_v25 = vmul.f32 %v5140_v49, %v3676_v29  ;;  %v3575_v56 = vsub.f32 2.0, %v3567_v23  ;;  %v3571_v18 = vmul.f32 %v5148_v2, %v3555_v38  ;;  %v3161_v38 = vld [vmem:[#allocation3 + $0xc0] sm:$0xff] }
 0x94a   : > { %v3169_v51 = vmul.f32 %v6959_v26, %v3161_v38 }
 0x94b   : > { %3514 = vperm.xlu0 %4861, %v3488_v28   ;;  %v3680_v28 = vmul.f32 %v5130_v54, %v3672_v44  ;;  %v3583_v47 = vmul.f32 %v5144_v42, %v3575_v56  ;;  %v3579_v4 = vsub.f32 2.0, %v3571_v18  ;;  %v7040_v44 = vpop.permute.xlu1 %3228 }
 0x94d   : > { %v3587_v39 = vmul.f32 %v5148_v2, %v3579_v4 }
 0x94f   : > { %3524 = vperm.xlu0 %4861, %v3490_v59   ;;  %v3477_v59 = vmul.f32 %v5142_v43, %v3461_v10  ;;  %v7042_v49 = vpop.permute.xlu1 %3243 }
 0x953   : > { %3534 = vperm.xlu0 %4861, %v3492_v22   ;;  %v3485_v22 = vsub.f32 2.0, %v3477_v59 }
 0x955   : > { %3196 = vadd.xlane.f32.xlu1 %v3195_v31  ;;  %v3493_v31 = vmul.f32 %v5142_v43, %v3485_v22  ;;  %v3170_v43 = vmul.f32 %v6951_v41, %v3162_v24 }
 0x957   : > { %3600 = vperm.xlu0 %4861, %v3582_v21   ;;  %v3569_v21 = vmul.f32 %v5146_v8, %v3553_v33 }
 0x959   : > { %v3577_v46 = vsub.f32 2.0, %v3569_v21 }
 0x95b   : > { %3610 = vperm.xlu0 %4861, %v3584_v62   ;;  %v5150_v62 = vpop.eup %5149  ;;  %v3585_v40 = vmul.f32 %v5146_v8, %v3577_v46  ;;  %v3166_v8 = vld [vmem:[#allocation3 + $0xe8] sm:$0xff] }
 0x95c   : > { %v3573_v17 = vmul.f32 %v5150_v62, %v3557_v20  ;;  %v5152_v10 = vpop.eup %5151  ;;  %v3172_v20 = vmul.f32 %v6964_v30, %v3164_v60  ;;  %v3174_v30 = vmul.f32 %v7015_v63, %v3166_v8 }
 0x95d   : > { %v3663_v15 = vmul.f32 %v5152_v10, %v3647_v0  ;;  %v5154_v9 = vpop.eup %5153 }
 0x95e   : > { %v3665_v61 = vmul.f32 %v5154_v9, %v3649_v35  ;;  %v5156_v27 = vpop.eup %5155  ;;  %v3168_v35 = vld [vmem:[#allocation3 + $0xf8] sm:$0xff] }
 0x95f   : > { %3620 = vperm.xlu0 %4861, %v3586_v11   ;;  %v3581_v11 = vsub.f32 2.0, %v3573_v17  ;;  %v3671_v16 = vsub.f32 2.0, %v3663_v15  ;;  %v3667_v6 = vmul.f32 %v5156_v27, %v3651_v50  ;;  %v5158_v57 = vpop.eup %5157 }
 0x960   : > { %v3673_v37 = vsub.f32 2.0, %v3665_v61  ;;  %v3669_v12 = vmul.f32 %v5158_v57, %v3653_v32 }
 0x961   : > { %v3589_v54 = vmul.f32 %v5150_v62, %v3581_v11  ;;  %v3675_v13 = vsub.f32 2.0, %v3667_v6 }
 0x962   : > { %v3681_v1 = vmul.f32 %v5154_v9, %v3673_v37 }
 0x963   : > { %3630 = vperm.xlu0 %4861, %v3588_v14   ;;  %v3679_v14 = vmul.f32 %v5152_v10, %v3671_v16  ;;  %v3683_v33 = vmul.f32 %v5156_v27, %v3675_v13 }
 0x966   : > { %3263 = vperm.xlu1 %4867, %v7037_v3  }
 0x967   : > { %3696 = vperm.xlu0 %4861, %v3678_v36   ;;  %v3677_v36 = vsub.f32 2.0, %v3669_v12 }
 0x969   : > { %v3685_v19 = vmul.f32 %v5158_v57, %v3677_v36 }
 0x96a   : > { %3509 = vperm.xlu1 %4867, %v3487_v5   ;;  %v7044_v5 = vpop.permute.xlu1 %3238 }
 0x96b   : > { %3706 = vperm.xlu0 %4861, %v3680_v28  }
 0x96e   : > { %3519 = vperm.xlu1 %4867, %v3489_v52  }
 0x96f   : > { %3716 = vperm.xlu0 %4861, %v3682_v45   ;;  %v3165_v45 = vld [vmem:[#allocation3 + $0xe0] sm:$0xff] }
 0x970   : > { %v3173_v41 = vmul.f32 %v7027_v48, %v3165_v45 }
 0x972   : > { %3529 = vperm.xlu1 %4867, %v3491_v53   ;;  %v3163_v53 = vld [vmem:[#allocation3 + $0xd0] sm:$0xff] }
 0x973   : > { %3726 = vperm.xlu0 %4861, %v3684_v25   ;;  %v3171_v26 = vmul.f32 %v6969_v55, %v3163_v53  ;;  %v3176_v55 = vmul.f32 %v7037_v3, %v3168_v35  ;;  %v3218_v35 = vld [vmem:[#allocation4 + $0xc0] sm:$0xff] }
 0x976   : > { %3539 = vperm.xlu1 %4867, %v3493_v31  }
 0x97a   : > { %3605 = vperm.xlu1 %4867, %v3583_v47  }
 0x97e   : > { %3615 = vperm.xlu1 %4867, %v3585_v40  }
 0x982   : > { %3625 = vperm.xlu1 %4867, %v3587_v39  }
 0x986   : > { %3635 = vperm.xlu1 %4867, %v3589_v54  }
 0x98a   : > { %3701 = vperm.xlu1 %4867, %v3679_v14  }
 0x98e   : > { %3711 = vperm.xlu1 %4867, %v3681_v1  }
 0x992   : > { %3721 = vperm.xlu1 %4867, %v3683_v33  }
 0x996   : > { %3731 = vperm.xlu1 %4867, %v3685_v19  }
 0x9a4   : > { %v3182_v28 = vpop.xlane.xlu1 %3181 }
 0x9a5   : > { %v3202_v7 = vadd.f32 %v3182_v28, %v3170_v43  ;;  %v3179_v52 = vpop.xlane.xlu0 %3178 }
 0x9a6   : > { %v3201_v59 = vadd.f32 %v3179_v52, %v3169_v51 }
 0x9a7   : > { %3210 = vst.msk [vmem:[#allocation3 + $0xc8] sm:$0xff] %vm544_vm3, %v3202_v7 }
 0x9a8   : > { %3209 = vst.msk [vmem:[#allocation3 + $0xc0] sm:$0xff] %vm544_vm3, %v3201_v59 }
 0x9a9   : > { %v3188_v42 = vpop.xlane.xlu0 %3187 }
 0x9aa   : > { %v3204_v29 = vadd.f32 %v3188_v42, %v3172_v20  ;;  %v3167_v20 = vld [vmem:[#allocation3 + $0xf0] sm:$0xff] }
 0x9ab   : > { %v3175_v42 = vmul.f32 %v7030_v34, %v3167_v20 }
 0x9ac   : > { %3212 = vst.msk [vmem:[#allocation3 + $0xd8] sm:$0xff] %vm544_vm3, %v3204_v29 }
 0x9ad   : > { %v3191_v22 = vpop.xlane.xlu1 %3190 }
 0x9ae   : > { %v3185_v23 = vpop.xlane.xlu0 %3184  ;;  %v3205_v0 = vadd.f32 %v3191_v22, %v3173_v41  ;;  %v3743_v25 = vld [vmem:[#allocation3 + $0xc8] sm:$0xff] }
 0x9af   : > { %v3203_v31 = vadd.f32 %v3185_v23, %v3171_v26  ;;  %5159 = vrcp.f32 %v3743_v25  ;;  %v3742_v56 = vld [vmem:[#allocation3 + $0xc0] sm:$0xff] }
 0x9b0   : > { %3213 = vst.msk [vmem:[#allocation3 + $0xe0] sm:$0xff] %vm544_vm3, %v3205_v0  ;;  %5161 = vrcp.f32 %v3742_v56 }
 0x9b1   : > { %3211 = vst.msk [vmem:[#allocation3 + $0xd0] sm:$0xff] %vm544_vm3, %v3203_v31  ;;  %v3254_v59 = vpop.permute.xlu1 %3253 }
 0x9b2   : > { %v3194_v21 = vpop.xlane.xlu0 %3193 }
 0x9b3   : > { %v3206_v48 = vadd.f32 %v3194_v21, %v3174_v30  ;;  %v3745_v2 = vld [vmem:[#allocation3 + $0xd8] sm:$0xff]  ;;  %v3219_v30 = vld [vmem:[#allocation4 + $0xc8] sm:$0xff] }
 0x9b4   : > { %5163 = vrcp.f32 %v3745_v2 }
 0x9b5   : > { %3214 = vst.msk [vmem:[#allocation3 + $0xe8] sm:$0xff] %vm544_vm3, %v3206_v48  ;;  %v3591_v48 = vld [vmem:[#allocation4 + $0x48] sm:$0xff] }
 0x9b6   : > { %v3200_v47 = vpop.xlane.xlu0 %3199 }
 0x9b7   : > { %v3208_v46 = vadd.f32 %v3200_v47, %v3176_v55  ;;  %v3746_v18 = vld [vmem:[#allocation3 + $0xe0] sm:$0xff]  ;;  %v3267_v47 = vmul.f32 %v7046_v58, %v3219_v30 }
 0x9b8   : > { %v3744_v50 = vld [vmem:[#allocation3 + $0xd0] sm:$0xff]  ;;  %5165 = vrcp.f32 %v3746_v18 }
 0x9b9   : > { %v5160_v62 = vpop.eup %5159  ;;  %3216 = vst.msk [vmem:[#allocation3 + $0xf8] sm:$0xff] %vm544_vm3, %v3208_v46  ;;  %5167 = vrcp.f32 %v3744_v50 }
 0x9ba   : > { %v5162_v40 = vpop.eup %5161  ;;  %v3759_v63 = vmul.f32 %v5160_v62, %v3743_v25 }
 0x9bb   : > { %v3758_v4 = vmul.f32 %v5162_v40, %v3742_v56 }
 0x9bc   : > { %v3767_v17 = vsub.f32 2.0, %v3759_v63  ;;  %v3747_v32 = vld [vmem:[#allocation3 + $0xe8] sm:$0xff] }
 0x9bd   : > { %v3766_v10 = vsub.f32 2.0, %v3758_v4  ;;  %5169 = vrcp.f32 %v3747_v32  ;;  %v3220_v4 = vld [vmem:[#allocation4 + $0xd0] sm:$0xff] }
 0x9be   : > { %v5164_v39 = vpop.eup %5163  ;;  %v3775_v11 = vmul.f32 %v5160_v62, %v3767_v17  ;;  %v7062_v19 = vpop.permute.xlu0 %3248  ;;  %v3221_v62 = vld [vmem:[#allocation4 + $0xd8] sm:$0xff] }
 0x9bf   : > { %v3774_v15 = vmul.f32 %v5162_v40, %v3766_v10  ;;  %v3761_v3 = vmul.f32 %v5164_v39, %v3745_v2 }
 0x9c0   : > { %3797 = vperm.xlu1 %4867, %v3775_v11   ;;  %v3749_v9 = vld [vmem:[#allocation3 + $0xf8] sm:$0xff] }
 0x9c1   : > { %3792 = vperm.xlu0 %4861, %v3774_v15   ;;  %v3769_v54 = vsub.f32 2.0, %v3761_v3  ;;  %5171 = vrcp.f32 %v3749_v9  ;;  %v3269_v15 = vmul.f32 %v7042_v49, %v3221_v62  ;;  %v3590_v3 = vld [vmem:[#allocation4 + $0x40] sm:$0xff]  ;;  %v3595_v49 = vld [vmem:[#allocation4 + $0x68] sm:$0xff] }
 0x9c2   : > { %v5166_v16 = vpop.eup %5165  ;;  %v7064_v7 = vpop.permute.xlu0 %3258 }
 0x9c3   : > { %v5168_v61 = vpop.eup %5167  ;;  %v3777_v27 = vmul.f32 %v5164_v39, %v3769_v54  ;;  %v3762_v37 = vmul.f32 %v5166_v16, %v3746_v18  ;;  %v3593_v39 = vld [vmem:[#allocation4 + $0x58] sm:$0xff] }
 0x9c4   : > { %v3760_v14 = vmul.f32 %v5168_v61, %v3744_v50  ;;  %v3266_v50 = vmul.f32 %v7040_v44, %v3218_v35  ;;  %v3268_v44 = vmul.f32 %v7044_v5, %v3220_v4  ;;  %v3687_v35 = vld [vmem:[#allocation4 + $0x88] sm:$0xff]  ;;  %v3688_v4 = vld [vmem:[#allocation4 + $0x90] sm:$0xff] }
 0x9c5   : > { %3807 = vperm.xlu1 %4867, %v3777_v27   ;;  %v3770_v12 = vsub.f32 2.0, %v3762_v37 }
 0x9c6   : > { %v3768_v6 = vsub.f32 2.0, %v3760_v14  ;;  %v7066_v52 = vpop.permute.xlu0 %3504 }
 0x9c7   : > { %v5170_v57 = vpop.eup %5169  ;;  %v3778_v38 = vmul.f32 %v5166_v16, %v3770_v12 }
 0x9c8   : > { %v3776_v1 = vmul.f32 %v5168_v61, %v3768_v6  ;;  %v3763_v13 = vmul.f32 %v5170_v57, %v3747_v32  ;;  %v3222_v61 = vld [vmem:[#allocation4 + $0xe0] sm:$0xff] }
 0x9c9   : > { %v3270_v12 = vmul.f32 %v7062_v19, %v3222_v61 }
 0x9ca   : > { %3802 = vperm.xlu0 %4861, %v3776_v1   ;;  %v3771_v33 = vsub.f32 2.0, %v3763_v13  ;;  %v7068_v60 = vpop.permute.xlu0 %3514  ;;  %v3592_v13 = vld [vmem:[#allocation4 + $0x50] sm:$0xff] }
 0x9cb   : > { %v5172_v36 = vpop.eup %5171 }
 0x9cc   : > { %v3779_v24 = vmul.f32 %v5170_v57, %v3771_v33  ;;  %v3765_v43 = vmul.f32 %v5172_v36, %v3749_v9  ;;  %v3223_v9 = vld [vmem:[#allocation4 + $0xe8] sm:$0xff] }
 0x9cd   : > { %v3271_v1 = vmul.f32 %v3254_v59, %v3223_v9  ;;  %v3597_v59 = vld [vmem:[#allocation4 + $0x78] sm:$0xff]  ;;  %v3692_v9 = vld [vmem:[#allocation4 + $0xb0] sm:$0xff] }
 0x9ce   : > { %3817 = vperm.xlu1 %4867, %v3779_v24   ;;  %3812 = vperm.xlu0 %4861, %v3778_v38   ;;  %v3773_v28 = vsub.f32 2.0, %v3765_v43  ;;  %v7071_v29 = vpop.permute.xlu0 %3524  ;;  %v3224_v38 = vld [vmem:[#allocation4 + $0xf0] sm:$0xff] }
 0x9d0   : > { %v3781_v51 = vmul.f32 %v5172_v36, %v3773_v28  ;;  %v3225_v36 = vld [vmem:[#allocation4 + $0xf8] sm:$0xff] }
 0x9d2   : > { %3827 = vperm.xlu1 %4867, %v3781_v51   ;;  %v7076_v26 = vpop.permute.xlu0 %3534 }
 0x9d6   : > { %v3601_v8 = vpop.permute.xlu0 %3600 }
 0x9d7   : > { %v3638_v54 = vmul.f32 %v3601_v8, %v3590_v3 }
 0x9da   : > { %v3611_v34 = vpop.permute.xlu0 %3610 }
 0x9db   : > { %v3640_v33 = vmul.f32 %v3611_v34, %v3592_v13 }
 0x9de   : > { %v3621_v46 = vpop.permute.xlu0 %3620 }
 0x9e2   : > { %v3197_v45 = vpop.xlane.xlu1 %3196  ;;  %v3631_v27 = vpop.permute.xlu0 %3630 }
 0x9e3   : > { %v3207_v53 = vadd.f32 %v3197_v45, %v3175_v42  ;;  %v3594_v42 = vld [vmem:[#allocation4 + $0x60] sm:$0xff] }
 0x9e4   : > { %v3642_v8 = vmul.f32 %v3621_v46, %v3594_v42 }
 0x9e5   : > { %3215 = vst.msk [vmem:[#allocation3 + $0xf0] sm:$0xff] %vm544_vm3, %v3207_v53 }
 0x9e6   : > { %v7074_v41 = vpop.permute.xlu1 %3263  ;;  %v3697_v45 = vpop.permute.xlu0 %3696 }
 0x9e7   : > { %v3273_v53 = vmul.f32 %v7074_v41, %v3225_v36 }
 0x9ea   : > { %v7078_v22 = vpop.permute.xlu1 %3509 }
 0x9ec   : > { %v3748_v23 = vld [vmem:[#allocation3 + $0xf0] sm:$0xff] }
 0x9ed   : > { %5173 = vrcp.f32 %v3748_v23 }
 0x9ee   : > { %v7080_v0 = vpop.permute.xlu1 %3519 }
 0x9f2   : > { %v7082_v25 = vpop.permute.xlu1 %3529 }
 0x9f6   : > { %v7084_v31 = vpop.permute.xlu1 %3539 }
 0x9f7   : > { %v5174_v56 = vpop.eup %5173 }
 0x9f8   : > { %v3764_v21 = vmul.f32 %v5174_v56, %v3748_v23  ;;  %v3272_v23 = vmul.f32 %v7064_v7, %v3224_v38  ;;  %v3707_v7 = vpop.permute.xlu0 %3706 }
 0x9fa   : > { %v3606_v2 = vpop.permute.xlu1 %3605  ;;  %v3772_v55 = vsub.f32 2.0, %v3764_v21 }
 0x9fb   : > { %v3639_v18 = vmul.f32 %v3606_v2, %v3591_v48  ;;  %v3596_v2 = vld [vmem:[#allocation4 + $0x70] sm:$0xff] }
 0x9fc   : > { %v4624_v40 = vpop.f32.mrb[24].mxu0  ;;  %v3780_v63 = vmul.f32 %v5174_v56, %v3772_v55  ;;  %v3644_v55 = vmul.f32 %v3631_v27, %v3596_v2 }
 0x9fd   : > { %v3428_v17 = vadd.f32 %v4624_v40, %v3267_v47  ;;  %v3388_v32 = vpop.f32.mrb[25].mxu0  ;;  %3848 = vrot.lane.b32.xlu1 %v3639_v18, %s5239_s30  ;;  %v3689_v47 = vld [vmem:[#allocation4 + $0x98] sm:$0xff]  ;;  %v3686_v18 = vld [vmem:[#allocation4 + $0x80] sm:$0xff]  ;;  %v3691_v40 = vld [vmem:[#allocation4 + $0xa8] sm:$0xff] }
 0x9fe   : > { %v3427_v10 = vadd.f32 %v3388_v32, %v3266_v50  ;;  %3822 = vperm.xlu0 %4861, %v3780_v63   ;;  %v3616_v11 = vpop.permute.xlu1 %3615  ;;  %v3734_v62 = vmul.f32 %v3697_v45, %v3686_v18 }
 0x9ff   : > { %3436 = vst.msk [vmem:[#allocation4 + $0xc8] sm:$0xff] %vm609_vm0, %v3428_v17  ;;  %v3641_v58 = vmul.f32 %v3616_v11, %v3593_v39  ;;  %v3717_v17 = vpop.permute.xlu0 %3716  ;;  %v3693_v39 = vld [vmem:[#allocation4 + $0xb8] sm:$0xff] }
 0xa00   : > { %3435 = vst.msk [vmem:[#allocation4 + $0xc0] sm:$0xff] %vm609_vm0, %v3427_v10  ;;  %v4627_v16 = vpop.f32.mrb[26].mxu0  ;;  %v3736_v10 = vmul.f32 %v3707_v7, %v3688_v4 }
 0xa01   : > { %v3430_v14 = vadd.f32 %v4627_v16, %v3269_v15  ;;  %v3398_v37 = vpop.f32.mrb[27].mxu0  ;;  %3852 = vrot.lane.b32.xlu1 %v3641_v58, %s5239_s30  ;;  %v3690_v15 = vld [vmem:[#allocation4 + $0xa0] sm:$0xff] }
 0xa02   : > { %v3429_v6 = vadd.f32 %v3398_v37, %v3268_v44  ;;  %3846 = vrot.lane.b32.xlu0 %v3638_v54, %s5239_s30  ;;  %v3626_v57 = vpop.permute.xlu1 %3625  ;;  %v3738_v58 = vmul.f32 %v3717_v17, %v3690_v15 }
 0xa03   : > { %3438 = vst.msk [vmem:[#allocation4 + $0xd8] sm:$0xff] %vm609_vm0, %v3430_v14  ;;  %v3643_v5 = vmul.f32 %v3626_v57, %v3595_v49  ;;  %v3727_v44 = vpop.permute.xlu0 %3726 }
 0xa04   : > { %3437 = vst.msk [vmem:[#allocation4 + $0xd0] sm:$0xff] %vm609_vm0, %v3429_v6  ;;  %v4630_v24 = vpop.f32.mrb[28].mxu0  ;;  %v3740_v54 = vmul.f32 %v3727_v44, %v3692_v9 }
 0xa05   : > { %v3432_v43 = vadd.f32 %v4630_v24, %v3271_v1  ;;  %v3408_v28 = vpop.f32.mrb[29].mxu0  ;;  %3856 = vrot.lane.b32.xlu1 %v3643_v5, %s5239_s30 }
 0xa06   : > { %v3431_v51 = vadd.f32 %v3408_v28, %v3270_v12  ;;  %3850 = vrot.lane.b32.xlu0 %v3640_v33, %s5239_s30  ;;  %v3636_v20 = vpop.permute.xlu1 %3635  ;;  %v3783_v61 = vld [vmem:[#allocation4 + $0xc8] sm:$0xff] }
 0xa07   : > { %3440 = vst.msk [vmem:[#allocation4 + $0xe8] sm:$0xff] %vm609_vm0, %v3432_v43  ;;  %v3645_v19 = vmul.f32 %v3636_v20, %v3597_v59  ;;  %v3782_v37 = vld [vmem:[#allocation4 + $0xc0] sm:$0xff] }
 0xa08   : > { %3439 = vst.msk [vmem:[#allocation4 + $0xe0] sm:$0xff] %vm609_vm0, %v3431_v51  ;;  %v4633_v34 = vpop.f32.mrb[30].mxu0 }
 0xa09   : > { %v3434_v56 = vadd.f32 %v4633_v34, %v3273_v53  ;;  %v3418_v30 = vpop.f32.mrb[31].mxu0  ;;  %3860 = vrot.lane.b32.xlu1 %v3645_v19, %s5239_s30 }
 0xa0a   : > { %v3433_v21 = vadd.f32 %v3418_v30, %v3272_v23  ;;  %3854 = vrot.lane.b32.xlu0 %v3642_v8, %s5239_s30  ;;  %v3702_v48 = vpop.permute.xlu1 %3701  ;;  %v3785_v57 = vld [vmem:[#allocation4 + $0xd8] sm:$0xff] }
 0xa0b   : > { %3442 = vst.msk [vmem:[#allocation4 + $0xf8] sm:$0xff] %vm609_vm0, %v3434_v56  ;;  %v3735_v41 = vmul.f32 %v3702_v48, %v3687_v35  ;;  %v3784_v5 = vld [vmem:[#allocation4 + $0xd0] sm:$0xff] }
 0xa0c   : > { %3441 = vst.msk [vmem:[#allocation4 + $0xf0] sm:$0xff] %vm609_vm0, %v3433_v21  ;;  %v3500_v56 = vld [vmem:[#allocation4 + $0x30] sm:$0xff] }
 0xa0d   : > { %3880 = vrot.lane.b32.xlu1 %v3735_v41, %s5244_s14  ;;  %v3548_v30 = vmul.f32 %v7076_v26, %v3500_v56  ;;  %v3494_v26 = vld [vmem:[#allocation4] sm:$0xff] }
 0xa0e   : > { %3858 = vrot.lane.b32.xlu0 %v3644_v55, %s5239_s30  ;;  %v3712_v46 = vpop.permute.xlu1 %3711  ;;  %v3787_v38 = vld [vmem:[#allocation4 + $0xe8] sm:$0xff] }
 0xa0f   : > { %v3737_v50 = vmul.f32 %v3712_v46, %v3689_v47  ;;  %v3786_v36 = vld [vmem:[#allocation4 + $0xe0] sm:$0xff] }
 0xa11   : > { %3884 = vrot.lane.b32.xlu1 %v3737_v50, %s5244_s14 }
 0xa12   : > { %3878 = vrot.lane.b32.xlu0 %v3734_v62, %s5244_s14  ;;  %v3722_v63 = vpop.permute.xlu1 %3721  ;;  %v3789_v59 = vld [vmem:[#allocation4 + $0xf8] sm:$0xff] }
 0xa13   : > { %v3739_v32 = vmul.f32 %v3722_v63, %v3691_v40  ;;  %v3788_v45 = vld [vmem:[#allocation4 + $0xf0] sm:$0xff]  ;;  %v3495_v63 = vld [vmem:[#allocation4 + $0x8] sm:$0xff] }
 0xa14   : > { %v3543_v17 = vmul.f32 %v7078_v22, %v3495_v63 }
 0xa15   : > { %3888 = vrot.lane.b32.xlu1 %v3739_v32, %s5244_s14  ;;  %v3542_v32 = vmul.f32 %v7066_v52, %v3494_v26 }
 0xa16   : > { %3882 = vrot.lane.b32.xlu0 %v3736_v10, %s5244_s14  ;;  %v3732_v11 = vpop.permute.xlu1 %3731 }
 0xa17   : > { %v3741_v3 = vmul.f32 %v3732_v11, %v3693_v39 }
 0xa19   : > { %3892 = vrot.lane.b32.xlu1 %v3741_v3, %s5244_s14  ;;  %v3497_v3 = vld [vmem:[#allocation4 + $0x18] sm:$0xff] }
 0xa1a   : > { %3886 = vrot.lane.b32.xlu0 %v3738_v58, %s5244_s14  ;;  %v3545_v44 = vmul.f32 %v7080_v0, %v3497_v3  ;;  %v3499_v0 = vld [vmem:[#allocation4 + $0x28] sm:$0xff] }
 0xa1e   : > { %3890 = vrot.lane.b32.xlu0 %v3740_v54, %s5244_s14 }
 0xa3f   : > { %v3798_v16 = vpop.permute.xlu1 %3797 }
 0xa40   : > { %v3831_v27 = vmul.f32 %v3798_v16, %v3783_v61  ;;  %v3793_v14 = vpop.permute.xlu0 %3792 }
 0xa41   : > { %v3830_v6 = vmul.f32 %v3793_v14, %v3782_v37 }
 0xa42   : > { %3912 = vrot.lane.b32.xlu1 %v3831_v27, %s5243_s13  ;;  %v3496_v27 = vld [vmem:[#allocation4 + $0x10] sm:$0xff] }
 0xa43   : > { %3910 = vrot.lane.b32.xlu0 %v3830_v6, %s5243_s13  ;;  %v3544_v37 = vmul.f32 %v7068_v60, %v3496_v27 }
 0xa44   : > { %v3808_v49 = vpop.permute.xlu1 %3807 }
 0xa45   : > { %v3833_v1 = vmul.f32 %v3808_v49, %v3785_v57  ;;  %v3498_v49 = vld [vmem:[#allocation4 + $0x20] sm:$0xff] }
 0xa47   : > { %3916 = vrot.lane.b32.xlu1 %v3833_v1, %s5243_s13 }
 0xa49   : > { %v3803_v13 = vpop.permute.xlu0 %3802 }
 0xa4a   : > { %v3832_v12 = vmul.f32 %v3803_v13, %v3784_v5  ;;  %v3546_v13 = vmul.f32 %v7071_v29, %v3498_v49  ;;  %v3547_v5 = vmul.f32 %v7082_v25, %v3499_v0 }
 0xa4c   : > { %3914 = vrot.lane.b32.xlu0 %v3832_v12, %s5243_s13 }
 0xa4d   : > { %v3813_v33 = vpop.permute.xlu0 %3812  ;;  %v3818_v24 = vpop.permute.xlu1 %3817 }
 0xa4e   : > { %v3834_v43 = vmul.f32 %v3813_v33, %v3786_v36  ;;  %v3835_v28 = vmul.f32 %v3818_v24, %v3787_v38  ;;  %v3501_v36 = vld [vmem:[#allocation4 + $0x38] sm:$0xff] }
 0xa4f   : > { %v3549_v29 = vmul.f32 %v7084_v31, %v3501_v36 }
 0xa50   : > { %3920 = vrot.lane.b32.xlu1 %v3835_v28, %s5243_s13  ;;  %3918 = vrot.lane.b32.xlu0 %v3834_v43, %s5243_s13 }
 0xa51   : > { %v3828_v51 = vpop.permute.xlu1 %3827 }
 0xa52   : > { %v3837_v20 = vmul.f32 %v3828_v51, %v3789_v59 }
 0xa54   : > { %3924 = vrot.lane.b32.xlu1 %v3837_v20, %s5243_s13 }
 0xa6f   : > { %v3849_v8 = vpop.permute.xlu1 %3848 }
 0xa70   : > { %v3935_v10 = vsel %vm609_vm0, %v3543_v17, %v3849_v8 }
 0xa73   : > { %v3853_v21 = vpop.permute.xlu1 %3852 }
 0xa74   : > { %v3937_v54 = vsel %vm609_vm0, %v3545_v44, %v3853_v21 }
 0xa77   : > { %v3857_v41 = vpop.permute.xlu1 %3856 }
 0xa78   : > { %v3939_v33 = vsel %vm609_vm0, %v3547_v5, %v3857_v41 }
 0xa7b   : > { %v3861_v7 = vpop.permute.xlu1 %3860 }
 0xa7c   : > { %v3941_v59 = vsel %vm609_vm0, %v3549_v29, %v3861_v7 }
 0xa7d   : > { %v3823_v42 = vpop.permute.xlu0 %3822 }
 0xa7e   : > { %v3836_v53 = vmul.f32 %v3823_v42, %v3788_v45 }
 0xa7f   : > { %v3881_v18 = vpop.permute.xlu1 %3880 }
 0xa80   : > { %3922 = vrot.lane.b32.xlu0 %v3836_v53, %s5243_s13  ;;  %v3943_v39 = vsel %vm1206_vm4, %v3935_v10, %v3881_v18 }
 0xa81   : > { %v3847_v19 = vpop.permute.xlu0 %3846 }
 0xa82   : > { %v3934_v11 = vsel %vm609_vm0, %v3542_v32, %v3847_v19 }
 0xa83   : > { %v3885_v62 = vpop.permute.xlu1 %3884 }
 0xa84   : > { %v3945_v16 = vsel %vm1206_vm4, %v3937_v54, %v3885_v62 }
 0xa85   : > { %v3851_v23 = vpop.permute.xlu0 %3850 }
 0xa86   : > { %v3936_v6 = vsel %vm609_vm0, %v3544_v37, %v3851_v23 }
 0xa87   : > { %v3889_v40 = vpop.permute.xlu1 %3888 }
 0xa88   : > { %v3947_v24 = vsel %vm1206_vm4, %v3939_v33, %v3889_v40 }
 0xa89   : > { %v3855_v34 = vpop.permute.xlu0 %3854 }
 0xa8a   : > { %v3938_v60 = vsel %vm609_vm0, %v3546_v13, %v3855_v34 }
 0xa8b   : > { %v3893_v4 = vpop.permute.xlu1 %3892 }
 0xa8c   : > { %v3949_v20 = vsel %vm1206_vm4, %v3941_v59, %v3893_v4 }
 0xa8d   : > { %v3859_v35 = vpop.permute.xlu0 %3858 }
 0xa8e   : > { %v3940_v48 = vsel %vm609_vm0, %v3548_v30, %v3859_v35 }
 0xa91   : > { %v3879_v2 = vpop.permute.xlu0 %3878 }
 0xa92   : > { %v3942_v22 = vsel %vm1206_vm4, %v3934_v11, %v3879_v2 }
 0xa95   : > { %v3883_v55 = vpop.permute.xlu0 %3882 }
 0xa96   : > { %v3944_v57 = vsel %vm1206_vm4, %v3936_v6, %v3883_v55 }
 0xa99   : > { %v3887_v47 = vpop.permute.xlu0 %3886 }
 0xa9a   : > { %v3946_v38 = vsel %vm1206_vm4, %v3938_v60, %v3887_v47 }
 0xa9d   : > { %v3891_v46 = vpop.permute.xlu0 %3890 }
 0xa9e   : > { %v3948_v50 = vsel %vm1206_vm4, %v3940_v48, %v3891_v46 }
 0xab4   : > { %v3913_v15 = vpop.permute.xlu1 %3912 }
 0xab5   : > { %v3952_v52 = vsel %vm3950_vm5, %v3943_v39, %v3913_v15  ;;  %v3911_v58 = vpop.permute.xlu0 %3910 }
 0xab6   : > { %3960 = vst [vmem:[%s7135_s25 + $0x8] sm:$0xff] %v3952_v52  ;;  %v3951_v9 = vsel %vm3950_vm5, %v3942_v22, %v3911_v58 }
 0xab7   : > { %3959 = vst [vmem:[%s7135_s25] sm:$0xff] %v3951_v9 }
 0xab9   : > { %v3917_v61 = vpop.permute.xlu1 %3916 }
 0xaba   : > { %v3954_v14 = vsel %vm3950_vm5, %v3945_v16, %v3917_v61 }
 0xabb   : > { %3962 = vst [vmem:[%s7135_s25 + $0x18] sm:$0xff] %v3954_v14 }
 0xabe   : > { %v3915_v1 = vpop.permute.xlu0 %3914 }
 0xabf   : > { %v3953_v12 = vsel %vm3950_vm5, %v3944_v57, %v3915_v1 }
 0xac0   : > { %3961 = vst [vmem:[%s7135_s25 + $0x10] sm:$0xff] %v3953_v12 }
 0xac2   : > { %v3921_v43 = vpop.permute.xlu1 %3920  ;;  %v3919_v28 = vpop.permute.xlu0 %3918 }
 0xac3   : > { %v3956_v25 = vsel %vm3950_vm5, %v3947_v24, %v3921_v43  ;;  %v3955_v51 = vsel %vm3950_vm5, %v3946_v38, %v3919_v28 }
 0xac4   : > { %3964 = vst [vmem:[%s7135_s25 + $0x28] sm:$0xff] %v3956_v25  ;;  %3963 = vst [vmem:[%s7135_s25 + $0x20] sm:$0xff] %v3955_v51 }
 0xac6   : > { %v3925_v42 = vpop.permute.xlu1 %3924 }
 0xac7   : > { %v3958_v45 = vsel %vm3950_vm5, %v3949_v20, %v3925_v42 }
 0xac8   : > { %3966 = vst [vmem:[%s7135_s25 + $0x38] sm:$0xff] %v3958_v45 }
 0xaf2   : > { %v3923_v53 = vpop.permute.xlu0 %3922 }
 0xaf3   : > { %v3957_v19 = vsel %vm3950_vm5, %v3948_v50, %v3923_v53 }
 0xaf4   : > { %3965 = vst [vmem:[%s7135_s25 + $0x30] sm:$0xff] %v3957_v19 }
 0xaf5 PF: > { %s15_s22 = sadd.s32 1, %s5237_s22   ;;  %s7344_s18 = smov %s5225_s19 }
 0xaf6   : > { %p12_p10 = scmp.ge.s32.totalorder %s15_s22, 4   ;;  %s7345_s19 = smov %s5314_s27 }
 0xaf7   : > { %s7346_s20 = smov %s5233_s21  ;;  %s7347_s21 = smov %s7349_s23 }
 0xaf8   :  { %14 = sbr.rel (!%p12_p10) target bundleno = 3 (0x3), region = 235 }

</bundles_post_ra>
